<compile_context>
chip_gen: v7x
topology: tpu7x:2x2x1
jax: 0.10.0
libtpu: 0.0.40
codegen_flags: <defaults>
</compile_context>

<pallas_src>
import functools

import jax
import jax.numpy as jnp
from jax import lax
from jax.experimental import pallas as pl
from jax.experimental.pallas import tpu as pltpu


def _leaky(z):
    return jnp.where(z > 0, z, 0.1 * z)


def _ghost_bottleneck_kernel(
    x_ref,                     # (1, C1, HW)        VMEM
    w1_ref, b1_ref,            # (G1, C1), (G1,)    SMEM  GhostConv1.cv1 (1x1)
    w5a_ref, b5a_ref,          # (G1, 25), (G1,)    SMEM  GhostConv1.cv2 (dw5x5)
    w2_ref, b2_ref,            # (Cm, Cm), (Cm,)    SMEM  GhostConv2.cv1 (1x1)
    w5b_ref, b5b_ref,          # (Cm, 25), (Cm,)    SMEM  GhostConv2.cv2 (dw5x5)
    out_ref,                   # (1, C2, HW)        VMEM
    pad_ref,                   # (Cm, HW + 2*PAD)   VMEM scratch for dw taps
    *, W, PAD):
    HW = x_ref.shape[2]
    C1 = x_ref.shape[1]
    Cm = w2_ref.shape[0]
    f32 = jnp.float32

    # Column-validity masks for horizontal tap offsets dw in {-2,-1,+1,+2}
    # (shared by both depthwise convs).  Row i of mask2d is for dw = i - 2.
    col = lax.broadcasted_iota(jnp.int32, (5, HW), 1) % W
    off = lax.broadcasted_iota(jnp.int32, (5, HW), 0) - 2
    mask2d = jnp.logical_and(col + off >= 0, col + off < W).astype(f32)
    masks = [mask2d[i:i + 1, :] for i in range(5)]

    # Lane-dense input / residual rows, one (1, HW) slab per channel.
    x_rows = [x_ref[0, pl.ds(c, 1), :].astype(f32) for c in range(C1)]

    # Zero the depthwise scratch so its padding lanes are 0 every grid step.
    pad_ref[...] = jnp.zeros_like(pad_ref)

    def conv1x1(rows_in, w_ref, b_ref):
        # y[co, :] = sum_c w[co, c] * x[c, :] + b[co]   (VPU broadcast-FMA)
        n_out = w_ref.shape[0]
        out = []
        for co in range(n_out):
            acc = w_ref[co, 0] * rows_in[0]
            for c in range(1, len(rows_in)):
                acc = acc + w_ref[co, c] * rows_in[c]
            out.append(acc + b_ref[co])
        return out

    def dwconv5x5(rows_in, w_ref, b_ref):
        # Per-channel 5x5 conv, padding 2, via lane shifts of a padded flat row.
        n = len(rows_in)
        for c in range(n):  # stage all rows into the zero-padded scratch
            pad_ref[pl.ds(c, 1), pl.ds(PAD, HW)] = rows_in[c]
        out = []
        for c in range(n):
            acc = None
            for b in range(-2, 3):          # horizontal offset (lane +- b)
                t = None
                for a in range(-2, 3):      # vertical offset (lane +- a*W)
                    s = a * W + b
                    tap = pad_ref[pl.ds(c, 1), pl.ds(PAD + s, HW)]
                    contrib = w_ref[c, (a + 2) * 5 + (b + 2)] * tap
                    t = contrib if t is None else t + contrib
                if b != 0:
                    t = t * masks[b + 2]    # kill W-boundary wraparound
                acc = t if acc is None else acc + t
            out.append(acc + b_ref[c])
        return out

    # --- GhostConv 1 (act = LeakyReLU(0.1)) ---
    y1a = [_leaky(r) for r in conv1x1(x_rows, w1_ref, b1_ref)]
    y1b = [_leaky(r) for r in dwconv5x5(y1a, w5a_ref, b5a_ref)]
    g1 = y1a + y1b                          # channel concat == list concat

    # --- GhostConv 2 (act = Identity) ---
    y2a = conv1x1(g1, w2_ref, b2_ref)
    y2b = dwconv5x5(y2a, w5b_ref, b5b_ref)

    # --- out = cat([y2a, y2b], C) + x, written straight into channel slices ---
    for co in range(Cm):
        out_ref[0, pl.ds(co, 1), :] = (y2a[co] + x_rows[co]).astype(out_ref.dtype)
        out_ref[0, pl.ds(Cm + co, 1), :] = (
            y2b[co] + x_rows[Cm + co]).astype(out_ref.dtype)


@jax.jit
def ghost_bottleneck_pallas(x_nchw, w1, b1, w5a, b5a, w2, b2, w5b, b5b):
    """GhostBottleneck forward (s=1).  x_nchw: (N, C, H, W); BN pre-folded."""
    N, C1, H, W = x_nchw.shape
    G1 = w1.shape[0]
    Cm = w2.shape[0]
    C2 = 2 * Cm
    assert C2 == C1 and Cm == 2 * G1, "GhostBottleneck(s=1) needs c2 == c1, c2 % 4 == 0"

    HW = H * W
    PAD = ((2 * W + 2 + 127) // 128) * 128        # lane-tile aligned interior
    HWP = HW + 2 * PAD

    x_flat = x_nchw.reshape(N, C1, HW)            # NCHW -> (N, C, H*W): free

    smem = pltpu.MemorySpace.SMEM
    kernel = functools.partial(_ghost_bottleneck_kernel, W=W, PAD=PAD)

    out_flat = pl.pallas_call(
        kernel,
        out_shape=jax.ShapeDtypeStruct((N, C2, HW), x_nchw.dtype),
        grid=(N,),
        in_specs=[
            pl.BlockSpec((1, C1, HW), lambda n: (n, 0, 0)),
            pl.BlockSpec(memory_space=smem),      # w1   (G1, C1)
            pl.BlockSpec(memory_space=smem),      # b1   (G1,)
            pl.BlockSpec(memory_space=smem),      # w5a  (G1, 25)
            pl.BlockSpec(memory_space=smem),      # b5a  (G1,)
            pl.BlockSpec(memory_space=smem),      # w2   (Cm, Cm)
            pl.BlockSpec(memory_space=smem),      # b2   (Cm,)
            pl.BlockSpec(memory_space=smem),      # w5b  (Cm, 25)
            pl.BlockSpec(memory_space=smem),      # b5b  (Cm,)
        ],
        out_specs=pl.BlockSpec((1, C2, HW), lambda n: (n, 0, 0)),
        scratch_shapes=[pltpu.VMEM((Cm, HWP), jnp.float32)],
        compiler_params=pltpu.CompilerParams(
            dimension_semantics=("parallel",)),   # one image per TC on v7x
    )(x_flat, w1, b1, w5a, b5a, w2, b2, w5b, b5b)

    return out_flat.reshape(N, C2, H, W)


# ----------------------- pure-JAX reference (NCHW) -------------------------
def _conv_bn_act(x, w_oihw, gamma, beta, rmean, rvar, eps, groups, act, pad):
    y = lax.conv_general_dilated(
        x, w_oihw, (1, 1), [(pad, pad), (pad, pad)],
        dimension_numbers=("NCHW", "OIHW", "NCHW"),
        feature_group_count=groups, precision=lax.Precision.HIGHEST)
    scale = gamma / jnp.sqrt(rvar + eps)
    bias = beta - rmean * scale
    y = y * scale[None, :, None, None] + bias[None, :, None, None]
    return jnp.where(y > 0, y, 0.1 * y) if act else y


def _reference(x, p, eps=1e-5):
    y1a = _conv_bn_act(x, p["w1"], *p["bn1"], eps, 1, True, 0)
    y1b = _conv_bn_act(y1a, p["w5a"], *p["bn5a"], eps, y1a.shape[1], True, 2)
    g1 = jnp.concatenate([y1a, y1b], axis=1)
    y2a = _conv_bn_act(g1, p["w2"], *p["bn2"], eps, 1, False, 0)
    y2b = _conv_bn_act(y2a, p["w5b"], *p["bn5b"], eps, y2a.shape[1], False, 2)
    g2 = jnp.concatenate([y2a, y2b], axis=1)
    return g2 + x


if __name__ == "__main__":
    # GhostBottleneck(c1=8, c2=8, k=3, s=1):
    #   GhostConv(8, 4):            cv1 = Conv(8, 2, 1),  cv2 = Conv(2, 2, 5, g=2)
    #   GhostConv(4, 8, act=False): cv1 = Conv(4, 4, 1),  cv2 = Conv(4, 4, 5, g=4)
    N, C, H, W = 2, 8, 16, 16
    Cm, G1 = C // 2, C // 4
    eps = 1e-5

    key = jax.random.PRNGKey(0)
    ks = jax.random.split(key, 9)

    def bn_params(k, c):
        k1, k2, k3, k4 = jax.random.split(k, 4)
        gamma = 1.0 + 0.1 * jax.random.normal(k1, (c,), jnp.float32)
        beta = 0.1 * jax.random.normal(k2, (c,), jnp.float32)
        rmean = 0.1 * jax.random.normal(k3, (c,), jnp.float32)
        rvar = jax.nn.softplus(jax.random.normal(k4, (c,), jnp.float32)) + 0.5
        return gamma, beta, rmean, rvar

    x = jax.random.normal(ks[0], (N, C, H, W), jnp.float32)
    p = {
        "w1":  0.3 * jax.random.normal(ks[1], (G1, C, 1, 1), jnp.float32),
        "bn1": bn_params(ks[2], G1),
        "w5a": 0.1 * jax.random.normal(ks[3], (G1, 1, 5, 5), jnp.float32),
        "bn5a": bn_params(ks[4], G1),
        "w2":  0.3 * jax.random.normal(ks[5], (Cm, Cm, 1, 1), jnp.float32),
        "bn2": bn_params(ks[6], Cm),
        "w5b": 0.1 * jax.random.normal(ks[7], (Cm, 1, 5, 5), jnp.float32),
        "bn5b": bn_params(ks[8], Cm),
    }

    def fold(w_oihw, bn):        # fold inference-BN into conv weight + bias
        gamma, beta, rmean, rvar = bn
        scale = gamma / jnp.sqrt(rvar + eps)
        bias = beta - rmean * scale
        return w_oihw * scale[:, None, None, None], bias

    w1f, b1 = fold(p["w1"], p["bn1"])
    w5af, b5a = fold(p["w5a"], p["bn5a"])
    w2f, b2 = fold(p["w2"], p["bn2"])
    w5bf, b5b = fold(p["w5b"], p["bn5b"])

    w1_k = w1f[:, :, 0, 0]                      # (G1, C)
    w5a_k = w5af[:, 0].reshape(G1, 25)          # (G1, 25)
    w2_k = w2f[:, :, 0, 0]                      # (Cm, Cm)
    w5b_k = w5bf[:, 0].reshape(Cm, 25)          # (Cm, 25)

    out = ghost_bottleneck_pallas(x, w1_k, b1, w5a_k, b5a, w2_k, b2, w5b_k, b5b)
    out = jax.block_until_ready(out)

    ref = _reference(x, p, eps)
    assert out.shape == (N, C, H, W)
    err = float(jnp.max(jnp.abs(out - ref)))
    assert jnp.allclose(out, ref, atol=2e-4, rtol=2e-4), f"mismatch vs reference: {err}"

    print("KERNEL_OK")
</pallas_src>

<mosaic_0001>
module attributes {stable_mosaic.version = 11 : i64} {
  func.func @_ghost_bottleneck_kernel(%arg0: i32, %arg1: memref<1x8x256xf32, #tpu.memory_space<vmem>>, %arg2: memref<2x8xf32, #tpu.memory_space<smem>>, %arg3: memref<2xf32, #tpu.memory_space<smem>>, %arg4: memref<2x25xf32, #tpu.memory_space<smem>>, %arg5: memref<2xf32, #tpu.memory_space<smem>>, %arg6: memref<4x4xf32, #tpu.memory_space<smem>>, %arg7: memref<4xf32, #tpu.memory_space<smem>>, %arg8: memref<4x25xf32, #tpu.memory_space<smem>>, %arg9: memref<4xf32, #tpu.memory_space<smem>>, %arg10: memref<1x8x256xf32, #tpu.memory_space<vmem>>, %arg11: memref<4x512xf32, #tpu.memory_space<vmem>>) attributes {dimension_semantics = [#tpu.dimension_semantics<parallel>], iteration_bounds = array<i64: 2>, scalar_prefetch = 0 : i64, scratch_operands = 1 : i64, tpu.core_type = #tpu.core_type<tc>, window_params = [{transform_indices = @transform_0, window_bounds = array<i64: 1, 8, 256>}, {transform_indices = @transform_1, window_bounds = array<i64: 2, 8>}, {transform_indices = @transform_2, window_bounds = array<i64: 2>}, {transform_indices = @transform_3, window_bounds = array<i64: 2, 25>}, {transform_indices = @transform_4, window_bounds = array<i64: 2>}, {transform_indices = @transform_5, window_bounds = array<i64: 4, 4>}, {transform_indices = @transform_6, window_bounds = array<i64: 4>}, {transform_indices = @transform_7, window_bounds = array<i64: 4, 25>}, {transform_indices = @transform_8, window_bounds = array<i64: 4>}, {transform_indices = @transform_9, window_bounds = array<i64: 1, 8, 256>}]} {
    %0 = tpu.iota {dimensions = array<i32: 1>} : vector<5x256xi32>
    %c16_i32 = arith.constant 16 : i32
    %c0_i32 = arith.constant 0 : i32
    %1 = arith.cmpi eq, %c16_i32, %c0_i32 : i32
    %c1_i32 = arith.constant 1 : i32
    %2 = arith.select %1, %c1_i32, %c16_i32 : i32
    %3 = vector.broadcast %2 : i32 to vector<5x256xi32>
    %4 = arith.remsi %0, %3 : vector<5x256xi32>
    %c0_i32_0 = arith.constant 0 : i32
    %5 = vector.broadcast %c0_i32_0 : i32 to vector<5x256xi32>
    %6 = arith.cmpi ne, %4, %5 : vector<5x256xi32>
    %c0_i32_1 = arith.constant 0 : i32
    %7 = vector.broadcast %c0_i32_1 : i32 to vector<5x256xi32>
    %8 = arith.cmpi slt, %4, %7 : vector<5x256xi32>
    %c0_i32_2 = arith.constant 0 : i32
    %9 = arith.cmpi slt, %2, %c0_i32_2 : i32
    %10 = vector.broadcast %9 : i1 to vector<5x256xi1>
    %11 = vector.broadcast %10 : vector<5x256xi1> to vector<5x256xi1>
    %12 = arith.xori %8, %11 : vector<5x256xi1>
    %13 = arith.andi %12, %6 : vector<5x256xi1>
    %14 = vector.broadcast %2 : i32 to vector<5x256xi32>
    %15 = arith.addi %4, %14 : vector<5x256xi32>
    %16 = arith.select %13, %15, %4 : vector<5x256xi1>, vector<5x256xi32>
    %17 = tpu.iota {dimensions = array<i32: 0>} : vector<5x256xi32>
    %c2_i32 = arith.constant 2 : i32
    %18 = vector.broadcast %c2_i32 : i32 to vector<5x256xi32>
    %19 = arith.subi %17, %18 : vector<5x256xi32>
    %20 = arith.addi %16, %19 : vector<5x256xi32>
    %c0_i32_3 = arith.constant 0 : i32
    %21 = vector.broadcast %c0_i32_3 : i32 to vector<5x256xi32>
    %22 = arith.cmpi sge, %20, %21 : vector<5x256xi32>
    %23 = arith.addi %16, %19 : vector<5x256xi32>
    %c16_i32_4 = arith.constant 16 : i32
    %24 = vector.broadcast %c16_i32_4 : i32 to vector<5x256xi32>
    %25 = arith.cmpi slt, %23, %24 : vector<5x256xi32>
    %26 = arith.andi %22, %25 : vector<5x256xi1>
    %27 = arith.extui %26 : vector<5x256xi1> to vector<5x256xi32>
    %28 = arith.sitofp %27 : vector<5x256xi32> to vector<5x256xf32>
    %29 = vector.extract_strided_slice %28 {offsets = [0, 0], sizes = [1, 256], strides = [1, 1]} : vector<5x256xf32> to vector<1x256xf32>
    %30 = vector.extract_strided_slice %28 {offsets = [1, 0], sizes = [1, 256], strides = [1, 1]} : vector<5x256xf32> to vector<1x256xf32>
    %31 = vector.extract_strided_slice %28 {offsets = [3, 0], sizes = [1, 256], strides = [1, 1]} : vector<5x256xf32> to vector<1x256xf32>
    %32 = vector.extract_strided_slice %28 {offsets = [4, 0], sizes = [1, 256], strides = [1, 1]} : vector<5x256xf32> to vector<1x256xf32>
    %c0 = arith.constant 0 : index
    %c0_5 = arith.constant 0 : index
    %c0_6 = arith.constant 0 : index
    %33 = vector.load %arg1[%c0, %c0_5, %c0_6] : memref<1x8x256xf32, #tpu.memory_space<vmem>>, vector<1x1x256xf32>
    %34 = vector.shape_cast %33 : vector<1x1x256xf32> to vector<1x256xf32>
    %c0_7 = arith.constant 0 : index
    %c1 = arith.constant 1 : index
    %c0_8 = arith.constant 0 : index
    %35 = vector.load %arg1[%c0_7, %c1, %c0_8] : memref<1x8x256xf32, #tpu.memory_space<vmem>>, vector<1x1x256xf32>
    %36 = vector.shape_cast %35 : vector<1x1x256xf32> to vector<1x256xf32>
    %c0_9 = arith.constant 0 : index
    %c2 = arith.constant 2 : index
    %c0_10 = arith.constant 0 : index
    %37 = vector.load %arg1[%c0_9, %c2, %c0_10] : memref<1x8x256xf32, #tpu.memory_space<vmem>>, vector<1x1x256xf32>
    %38 = vector.shape_cast %37 : vector<1x1x256xf32> to vector<1x256xf32>
    %c0_11 = arith.constant 0 : index
    %c3 = arith.constant 3 : index
    %c0_12 = arith.constant 0 : index
    %39 = vector.load %arg1[%c0_11, %c3, %c0_12] : memref<1x8x256xf32, #tpu.memory_space<vmem>>, vector<1x1x256xf32>
    %40 = vector.shape_cast %39 : vector<1x1x256xf32> to vector<1x256xf32>
    %c0_13 = arith.constant 0 : index
    %c4 = arith.constant 4 : index
    %c0_14 = arith.constant 0 : index
    %41 = vector.load %arg1[%c0_13, %c4, %c0_14] : memref<1x8x256xf32, #tpu.memory_space<vmem>>, vector<1x1x256xf32>
    %42 = vector.shape_cast %41 : vector<1x1x256xf32> to vector<1x256xf32>
    %c0_15 = arith.constant 0 : index
    %c5 = arith.constant 5 : index
    %c0_16 = arith.constant 0 : index
    %43 = vector.load %arg1[%c0_15, %c5, %c0_16] : memref<1x8x256xf32, #tpu.memory_space<vmem>>, vector<1x1x256xf32>
    %44 = vector.shape_cast %43 : vector<1x1x256xf32> to vector<1x256xf32>
    %c0_17 = arith.constant 0 : index
    %c6 = arith.constant 6 : index
    %c0_18 = arith.constant 0 : index
    %45 = vector.load %arg1[%c0_17, %c6, %c0_18] : memref<1x8x256xf32, #tpu.memory_space<vmem>>, vector<1x1x256xf32>
    %46 = vector.shape_cast %45 : vector<1x1x256xf32> to vector<1x256xf32>
    %c0_19 = arith.constant 0 : index
    %c7 = arith.constant 7 : index
    %c0_20 = arith.constant 0 : index
    %47 = vector.load %arg1[%c0_19, %c7, %c0_20] : memref<1x8x256xf32, #tpu.memory_space<vmem>>, vector<1x1x256xf32>
    %48 = vector.shape_cast %47 : vector<1x1x256xf32> to vector<1x256xf32>
    %cst = arith.constant 0.000000e+00 : f32
    %49 = vector.broadcast %cst : f32 to vector<4x512xf32>
    %c0_21 = arith.constant 0 : index
    %c0_22 = arith.constant 0 : index
    %50 = vector.load %arg11[%c0_21, %c0_22] : memref<4x512xf32, #tpu.memory_space<vmem>>, vector<4x512xf32>
    tpu.vector_store %arg11[%c0_21, %c0_22], %49 {strides = array<i32>} : memref<4x512xf32, #tpu.memory_space<vmem>>, vector<4x512xf32>,
    %c0_23 = arith.constant 0 : index
    %c0_24 = arith.constant 0 : index
    %51 = memref.load %arg2[%c0_23, %c0_24] : memref<2x8xf32, #tpu.memory_space<smem>>
    %52 = vector.broadcast %51 : f32 to vector<1x256xf32>
    %53 = arith.mulf %52, %34 : vector<1x256xf32>
    %c0_25 = arith.constant 0 : index
    %c1_26 = arith.constant 1 : index
    %54 = memref.load %arg2[%c0_25, %c1_26] : memref<2x8xf32, #tpu.memory_space<smem>>
    %55 = vector.broadcast %54 : f32 to vector<1x256xf32>
    %56 = arith.mulf %55, %36 : vector<1x256xf32>
    %57 = arith.addf %53, %56 : vector<1x256xf32>
    %c0_27 = arith.constant 0 : index
    %c2_28 = arith.constant 2 : index
    %58 = memref.load %arg2[%c0_27, %c2_28] : memref<2x8xf32, #tpu.memory_space<smem>>
    %59 = vector.broadcast %58 : f32 to vector<1x256xf32>
    %60 = arith.mulf %59, %38 : vector<1x256xf32>
    %61 = arith.addf %57, %60 : vector<1x256xf32>
    %c0_29 = arith.constant 0 : index
    %c3_30 = arith.constant 3 : index
    %62 = memref.load %arg2[%c0_29, %c3_30] : memref<2x8xf32, #tpu.memory_space<smem>>
    %63 = vector.broadcast %62 : f32 to vector<1x256xf32>
    %64 = arith.mulf %63, %40 : vector<1x256xf32>
    %65 = arith.addf %61, %64 : vector<1x256xf32>
    %c0_31 = arith.constant 0 : index
    %c4_32 = arith.constant 4 : index
    %66 = memref.load %arg2[%c0_31, %c4_32] : memref<2x8xf32, #tpu.memory_space<smem>>
    %67 = vector.broadcast %66 : f32 to vector<1x256xf32>
    %68 = arith.mulf %67, %42 : vector<1x256xf32>
    %69 = arith.addf %65, %68 : vector<1x256xf32>
    %c0_33 = arith.constant 0 : index
    %c5_34 = arith.constant 5 : index
    %70 = memref.load %arg2[%c0_33, %c5_34] : memref<2x8xf32, #tpu.memory_space<smem>>
    %71 = vector.broadcast %70 : f32 to vector<1x256xf32>
    %72 = arith.mulf %71, %44 : vector<1x256xf32>
    %73 = arith.addf %69, %72 : vector<1x256xf32>
    %c0_35 = arith.constant 0 : index
    %c6_36 = arith.constant 6 : index
    %74 = memref.load %arg2[%c0_35, %c6_36] : memref<2x8xf32, #tpu.memory_space<smem>>
    %75 = vector.broadcast %74 : f32 to vector<1x256xf32>
    %76 = arith.mulf %75, %46 : vector<1x256xf32>
    %77 = arith.addf %73, %76 : vector<1x256xf32>
    %c0_37 = arith.constant 0 : index
    %c7_38 = arith.constant 7 : index
    %78 = memref.load %arg2[%c0_37, %c7_38] : memref<2x8xf32, #tpu.memory_space<smem>>
    %79 = vector.broadcast %78 : f32 to vector<1x256xf32>
    %80 = arith.mulf %79, %48 : vector<1x256xf32>
    %81 = arith.addf %77, %80 : vector<1x256xf32>
    %c0_39 = arith.constant 0 : index
    %82 = memref.load %arg3[%c0_39] : memref<2xf32, #tpu.memory_space<smem>>
    %83 = vector.broadcast %82 : f32 to vector<1x256xf32>
    %84 = arith.addf %81, %83 : vector<1x256xf32>
    %c1_40 = arith.constant 1 : index
    %c0_41 = arith.constant 0 : index
    %85 = memref.load %arg2[%c1_40, %c0_41] : memref<2x8xf32, #tpu.memory_space<smem>>
    %86 = vector.broadcast %85 : f32 to vector<1x256xf32>
    %87 = arith.mulf %86, %34 : vector<1x256xf32>
    %c1_42 = arith.constant 1 : index
    %c1_43 = arith.constant 1 : index
    %88 = memref.load %arg2[%c1_42, %c1_43] : memref<2x8xf32, #tpu.memory_space<smem>>
    %89 = vector.broadcast %88 : f32 to vector<1x256xf32>
    %90 = arith.mulf %89, %36 : vector<1x256xf32>
    %91 = arith.addf %87, %90 : vector<1x256xf32>
    %c1_44 = arith.constant 1 : index
    %c2_45 = arith.constant 2 : index
    %92 = memref.load %arg2[%c1_44, %c2_45] : memref<2x8xf32, #tpu.memory_space<smem>>
    %93 = vector.broadcast %92 : f32 to vector<1x256xf32>
    %94 = arith.mulf %93, %38 : vector<1x256xf32>
    %95 = arith.addf %91, %94 : vector<1x256xf32>
    %c1_46 = arith.constant 1 : index
    %c3_47 = arith.constant 3 : index
    %96 = memref.load %arg2[%c1_46, %c3_47] : memref<2x8xf32, #tpu.memory_space<smem>>
    %97 = vector.broadcast %96 : f32 to vector<1x256xf32>
    %98 = arith.mulf %97, %40 : vector<1x256xf32>
    %99 = arith.addf %95, %98 : vector<1x256xf32>
    %c1_48 = arith.constant 1 : index
    %c4_49 = arith.constant 4 : index
    %100 = memref.load %arg2[%c1_48, %c4_49] : memref<2x8xf32, #tpu.memory_space<smem>>
    %101 = vector.broadcast %100 : f32 to vector<1x256xf32>
    %102 = arith.mulf %101, %42 : vector<1x256xf32>
    %103 = arith.addf %99, %102 : vector<1x256xf32>
    %c1_50 = arith.constant 1 : index
    %c5_51 = arith.constant 5 : index
    %104 = memref.load %arg2[%c1_50, %c5_51] : memref<2x8xf32, #tpu.memory_space<smem>>
    %105 = vector.broadcast %104 : f32 to vector<1x256xf32>
    %106 = arith.mulf %105, %44 : vector<1x256xf32>
    %107 = arith.addf %103, %106 : vector<1x256xf32>
    %c1_52 = arith.constant 1 : index
    %c6_53 = arith.constant 6 : index
    %108 = memref.load %arg2[%c1_52, %c6_53] : memref<2x8xf32, #tpu.memory_space<smem>>
    %109 = vector.broadcast %108 : f32 to vector<1x256xf32>
    %110 = arith.mulf %109, %46 : vector<1x256xf32>
    %111 = arith.addf %107, %110 : vector<1x256xf32>
    %c1_54 = arith.constant 1 : index
    %c7_55 = arith.constant 7 : index
    %112 = memref.load %arg2[%c1_54, %c7_55] : memref<2x8xf32, #tpu.memory_space<smem>>
    %113 = vector.broadcast %112 : f32 to vector<1x256xf32>
    %114 = arith.mulf %113, %48 : vector<1x256xf32>
    %115 = arith.addf %111, %114 : vector<1x256xf32>
    %c1_56 = arith.constant 1 : index
    %116 = memref.load %arg3[%c1_56] : memref<2xf32, #tpu.memory_space<smem>>
    %117 = vector.broadcast %116 : f32 to vector<1x256xf32>
    %118 = arith.addf %115, %117 : vector<1x256xf32>
    %cst_57 = arith.constant 0.000000e+00 : f32
    %119 = vector.broadcast %cst_57 : f32 to vector<1x256xf32>
    %120 = arith.cmpf ogt, %84, %119 : vector<1x256xf32>
    %cst_58 = arith.constant 1.000000e-01 : f32
    %121 = vector.broadcast %cst_58 : f32 to vector<1x256xf32>
    %122 = arith.mulf %121, %84 : vector<1x256xf32>
    %123 = arith.select %120, %84, %122 : vector<1x256xi1>, vector<1x256xf32>
    %cst_59 = arith.constant 0.000000e+00 : f32
    %124 = vector.broadcast %cst_59 : f32 to vector<1x256xf32>
    %125 = arith.cmpf ogt, %118, %124 : vector<1x256xf32>
    %cst_60 = arith.constant 1.000000e-01 : f32
    %126 = vector.broadcast %cst_60 : f32 to vector<1x256xf32>
    %127 = arith.mulf %126, %118 : vector<1x256xf32>
    %128 = arith.select %125, %118, %127 : vector<1x256xi1>, vector<1x256xf32>
    %c0_61 = arith.constant 0 : index
    %c128 = arith.constant 128 : index
    %129 = vector.load %arg11[%c0_61, %c128] : memref<4x512xf32, #tpu.memory_space<vmem>>, vector<1x256xf32>
    tpu.vector_store %arg11[%c0_61, %c128], %123 {strides = array<i32>} : memref<4x512xf32, #tpu.memory_space<vmem>>, vector<1x256xf32>,
    %c1_62 = arith.constant 1 : index
    %c128_63 = arith.constant 128 : index
    %130 = vector.load %arg11[%c1_62, %c128_63] : memref<4x512xf32, #tpu.memory_space<vmem>>, vector<1x256xf32>
    tpu.vector_store %arg11[%c1_62, %c128_63], %128 {strides = array<i32>} : memref<4x512xf32, #tpu.memory_space<vmem>>, vector<1x256xf32>,
    %c0_64 = arith.constant 0 : index
    %c94 = arith.constant 94 : index
    %131 = vector.load %arg11[%c0_64, %c94] : memref<4x512xf32, #tpu.memory_space<vmem>>, vector<1x256xf32>
    %c0_65 = arith.constant 0 : index
    %c0_66 = arith.constant 0 : index
    %132 = memref.load %arg4[%c0_65, %c0_66] : memref<2x25xf32, #tpu.memory_space<smem>>
    %133 = vector.broadcast %132 : f32 to vector<1x256xf32>
    %134 = arith.mulf %133, %131 : vector<1x256xf32>
    %c0_67 = arith.constant 0 : index
    %c110 = arith.constant 110 : index
    %135 = vector.load %arg11[%c0_67, %c110] : memref<4x512xf32, #tpu.memory_space<vmem>>, vector<1x256xf32>
    %c0_68 = arith.constant 0 : index
    %c5_69 = arith.constant 5 : index
    %136 = memref.load %arg4[%c0_68, %c5_69] : memref<2x25xf32, #tpu.memory_space<smem>>
    %137 = vector.broadcast %136 : f32 to vector<1x256xf32>
    %138 = arith.mulf %137, %135 : vector<1x256xf32>
    %139 = arith.addf %134, %138 : vector<1x256xf32>
    %c0_70 = arith.constant 0 : index
    %c126 = arith.constant 126 : index
    %140 = vector.load %arg11[%c0_70, %c126] : memref<4x512xf32, #tpu.memory_space<vmem>>, vector<1x256xf32>
    %c0_71 = arith.constant 0 : index
    %c10 = arith.constant 10 : index
    %141 = memref.load %arg4[%c0_71, %c10] : memref<2x25xf32, #tpu.memory_space<smem>>
    %142 = vector.broadcast %141 : f32 to vector<1x256xf32>
    %143 = arith.mulf %142, %140 : vector<1x256xf32>
    %144 = arith.addf %139, %143 : vector<1x256xf32>
    %c0_72 = arith.constant 0 : index
    %c142 = arith.constant 142 : index
    %145 = vector.load %arg11[%c0_72, %c142] : memref<4x512xf32, #tpu.memory_space<vmem>>, vector<1x256xf32>
    %c0_73 = arith.constant 0 : index
    %c15 = arith.constant 15 : index
    %146 = memref.load %arg4[%c0_73, %c15] : memref<2x25xf32, #tpu.memory_space<smem>>
    %147 = vector.broadcast %146 : f32 to vector<1x256xf32>
    %148 = arith.mulf %147, %145 : vector<1x256xf32>
    %149 = arith.addf %144, %148 : vector<1x256xf32>
    %c0_74 = arith.constant 0 : index
    %c158 = arith.constant 158 : index
    %150 = vector.load %arg11[%c0_74, %c158] : memref<4x512xf32, #tpu.memory_space<vmem>>, vector<1x256xf32>
    %c0_75 = arith.constant 0 : index
    %c20 = arith.constant 20 : index
    %151 = memref.load %arg4[%c0_75, %c20] : memref<2x25xf32, #tpu.memory_space<smem>>
    %152 = vector.broadcast %151 : f32 to vector<1x256xf32>
    %153 = arith.mulf %152, %150 : vector<1x256xf32>
    %154 = arith.addf %149, %153 : vector<1x256xf32>
    %155 = arith.mulf %154, %29 : vector<1x256xf32>
    %c0_76 = arith.constant 0 : index
    %c95 = arith.constant 95 : index
    %156 = vector.load %arg11[%c0_76, %c95] : memref<4x512xf32, #tpu.memory_space<vmem>>, vector<1x256xf32>
    %c0_77 = arith.constant 0 : index
    %c1_78 = arith.constant 1 : index
    %157 = memref.load %arg4[%c0_77, %c1_78] : memref<2x25xf32, #tpu.memory_space<smem>>
    %158 = vector.broadcast %157 : f32 to vector<1x256xf32>
    %159 = arith.mulf %158, %156 : vector<1x256xf32>
    %c0_79 = arith.constant 0 : index
    %c111 = arith.constant 111 : index
    %160 = vector.load %arg11[%c0_79, %c111] : memref<4x512xf32, #tpu.memory_space<vmem>>, vector<1x256xf32>
    %c0_80 = arith.constant 0 : index
    %c6_81 = arith.constant 6 : index
    %161 = memref.load %arg4[%c0_80, %c6_81] : memref<2x25xf32, #tpu.memory_space<smem>>
    %162 = vector.broadcast %161 : f32 to vector<1x256xf32>
    %163 = arith.mulf %162, %160 : vector<1x256xf32>
    %164 = arith.addf %159, %163 : vector<1x256xf32>
    %c0_82 = arith.constant 0 : index
    %c127 = arith.constant 127 : index
    %165 = vector.load %arg11[%c0_82, %c127] : memref<4x512xf32, #tpu.memory_space<vmem>>, vector<1x256xf32>
    %c0_83 = arith.constant 0 : index
    %c11 = arith.constant 11 : index
    %166 = memref.load %arg4[%c0_83, %c11] : memref<2x25xf32, #tpu.memory_space<smem>>
    %167 = vector.broadcast %166 : f32 to vector<1x256xf32>
    %168 = arith.mulf %167, %165 : vector<1x256xf32>
    %169 = arith.addf %164, %168 : vector<1x256xf32>
    %c0_84 = arith.constant 0 : index
    %c143 = arith.constant 143 : index
    %170 = vector.load %arg11[%c0_84, %c143] : memref<4x512xf32, #tpu.memory_space<vmem>>, vector<1x256xf32>
    %c0_85 = arith.constant 0 : index
    %c16 = arith.constant 16 : index
    %171 = memref.load %arg4[%c0_85, %c16] : memref<2x25xf32, #tpu.memory_space<smem>>
    %172 = vector.broadcast %171 : f32 to vector<1x256xf32>
    %173 = arith.mulf %172, %170 : vector<1x256xf32>
    %174 = arith.addf %169, %173 : vector<1x256xf32>
    %c0_86 = arith.constant 0 : index
    %c159 = arith.constant 159 : index
    %175 = vector.load %arg11[%c0_86, %c159] : memref<4x512xf32, #tpu.memory_space<vmem>>, vector<1x256xf32>
    %c0_87 = arith.constant 0 : index
    %c21 = arith.constant 21 : index
    %176 = memref.load %arg4[%c0_87, %c21] : memref<2x25xf32, #tpu.memory_space<smem>>
    %177 = vector.broadcast %176 : f32 to vector<1x256xf32>
    %178 = arith.mulf %177, %175 : vector<1x256xf32>
    %179 = arith.addf %174, %178 : vector<1x256xf32>
    %180 = arith.mulf %179, %30 : vector<1x256xf32>
    %181 = arith.addf %155, %180 : vector<1x256xf32>
    %c0_88 = arith.constant 0 : index
    %c96 = arith.constant 96 : index
    %182 = vector.load %arg11[%c0_88, %c96] : memref<4x512xf32, #tpu.memory_space<vmem>>, vector<1x256xf32>
    %c0_89 = arith.constant 0 : index
    %c2_90 = arith.constant 2 : index
    %183 = memref.load %arg4[%c0_89, %c2_90] : memref<2x25xf32, #tpu.memory_space<smem>>
    %184 = vector.broadcast %183 : f32 to vector<1x256xf32>
    %185 = arith.mulf %184, %182 : vector<1x256xf32>
    %c0_91 = arith.constant 0 : index
    %c112 = arith.constant 112 : index
    %186 = vector.load %arg11[%c0_91, %c112] : memref<4x512xf32, #tpu.memory_space<vmem>>, vector<1x256xf32>
    %c0_92 = arith.constant 0 : index
    %c7_93 = arith.constant 7 : index
    %187 = memref.load %arg4[%c0_92, %c7_93] : memref<2x25xf32, #tpu.memory_space<smem>>
    %188 = vector.broadcast %187 : f32 to vector<1x256xf32>
    %189 = arith.mulf %188, %186 : vector<1x256xf32>
    %190 = arith.addf %185, %189 : vector<1x256xf32>
    %c0_94 = arith.constant 0 : index
    %c128_95 = arith.constant 128 : index
    %191 = vector.load %arg11[%c0_94, %c128_95] : memref<4x512xf32, #tpu.memory_space<vmem>>, vector<1x256xf32>
    %c0_96 = arith.constant 0 : index
    %c12 = arith.constant 12 : index
    %192 = memref.load %arg4[%c0_96, %c12] : memref<2x25xf32, #tpu.memory_space<smem>>
    %193 = vector.broadcast %192 : f32 to vector<1x256xf32>
    %194 = arith.mulf %193, %191 : vector<1x256xf32>
    %195 = arith.addf %190, %194 : vector<1x256xf32>
    %c0_97 = arith.constant 0 : index
    %c144 = arith.constant 144 : index
    %196 = vector.load %arg11[%c0_97, %c144] : memref<4x512xf32, #tpu.memory_space<vmem>>, vector<1x256xf32>
    %c0_98 = arith.constant 0 : index
    %c17 = arith.constant 17 : index
    %197 = memref.load %arg4[%c0_98, %c17] : memref<2x25xf32, #tpu.memory_space<smem>>
    %198 = vector.broadcast %197 : f32 to vector<1x256xf32>
    %199 = arith.mulf %198, %196 : vector<1x256xf32>
    %200 = arith.addf %195, %199 : vector<1x256xf32>
    %c0_99 = arith.constant 0 : index
    %c160 = arith.constant 160 : index
    %201 = vector.load %arg11[%c0_99, %c160] : memref<4x512xf32, #tpu.memory_space<vmem>>, vector<1x256xf32>
    %c0_100 = arith.constant 0 : index
    %c22 = arith.constant 22 : index
    %202 = memref.load %arg4[%c0_100, %c22] : memref<2x25xf32, #tpu.memory_space<smem>>
    %203 = vector.broadcast %202 : f32 to vector<1x256xf32>
    %204 = arith.mulf %203, %201 : vector<1x256xf32>
    %205 = arith.addf %200, %204 : vector<1x256xf32>
    %206 = arith.addf %181, %205 : vector<1x256xf32>
    %c0_101 = arith.constant 0 : index
    %c97 = arith.constant 97 : index
    %207 = vector.load %arg11[%c0_101, %c97] : memref<4x512xf32, #tpu.memory_space<vmem>>, vector<1x256xf32>
    %c0_102 = arith.constant 0 : index
    %c3_103 = arith.constant 3 : index
    %208 = memref.load %arg4[%c0_102, %c3_103] : memref<2x25xf32, #tpu.memory_space<smem>>
    %209 = vector.broadcast %208 : f32 to vector<1x256xf32>
    %210 = arith.mulf %209, %207 : vector<1x256xf32>
    %c0_104 = arith.constant 0 : index
    %c113 = arith.constant 113 : index
    %211 = vector.load %arg11[%c0_104, %c113] : memref<4x512xf32, #tpu.memory_space<vmem>>, vector<1x256xf32>
    %c0_105 = arith.constant 0 : index
    %c8 = arith.constant 8 : index
    %212 = memref.load %arg4[%c0_105, %c8] : memref<2x25xf32, #tpu.memory_space<smem>>
    %213 = vector.broadcast %212 : f32 to vector<1x256xf32>
    %214 = arith.mulf %213, %211 : vector<1x256xf32>
    %215 = arith.addf %210, %214 : vector<1x256xf32>
    %c0_106 = arith.constant 0 : index
    %c129 = arith.constant 129 : index
    %216 = vector.load %arg11[%c0_106, %c129] : memref<4x512xf32, #tpu.memory_space<vmem>>, vector<1x256xf32>
    %c0_107 = arith.constant 0 : index
    %c13 = arith.constant 13 : index
    %217 = memref.load %arg4[%c0_107, %c13] : memref<2x25xf32, #tpu.memory_space<smem>>
    %218 = vector.broadcast %217 : f32 to vector<1x256xf32>
    %219 = arith.mulf %218, %216 : vector<1x256xf32>
    %220 = arith.addf %215, %219 : vector<1x256xf32>
    %c0_108 = arith.constant 0 : index
    %c145 = arith.constant 145 : index
    %221 = vector.load %arg11[%c0_108, %c145] : memref<4x512xf32, #tpu.memory_space<vmem>>, vector<1x256xf32>
    %c0_109 = arith.constant 0 : index
    %c18 = arith.constant 18 : index
    %222 = memref.load %arg4[%c0_109, %c18] : memref<2x25xf32, #tpu.memory_space<smem>>
    %223 = vector.broadcast %222 : f32 to vector<1x256xf32>
    %224 = arith.mulf %223, %221 : vector<1x256xf32>
    %225 = arith.addf %220, %224 : vector<1x256xf32>
    %c0_110 = arith.constant 0 : index
    %c161 = arith.constant 161 : index
    %226 = vector.load %arg11[%c0_110, %c161] : memref<4x512xf32, #tpu.memory_space<vmem>>, vector<1x256xf32>
    %c0_111 = arith.constant 0 : index
    %c23 = arith.constant 23 : index
    %227 = memref.load %arg4[%c0_111, %c23] : memref<2x25xf32, #tpu.memory_space<smem>>
    %228 = vector.broadcast %227 : f32 to vector<1x256xf32>
    %229 = arith.mulf %228, %226 : vector<1x256xf32>
    %230 = arith.addf %225, %229 : vector<1x256xf32>
    %231 = arith.mulf %230, %31 : vector<1x256xf32>
    %232 = arith.addf %206, %231 : vector<1x256xf32>
    %c0_112 = arith.constant 0 : index
    %c98 = arith.constant 98 : index
    %233 = vector.load %arg11[%c0_112, %c98] : memref<4x512xf32, #tpu.memory_space<vmem>>, vector<1x256xf32>
    %c0_113 = arith.constant 0 : index
    %c4_114 = arith.constant 4 : index
    %234 = memref.load %arg4[%c0_113, %c4_114] : memref<2x25xf32, #tpu.memory_space<smem>>
    %235 = vector.broadcast %234 : f32 to vector<1x256xf32>
    %236 = arith.mulf %235, %233 : vector<1x256xf32>
    %c0_115 = arith.constant 0 : index
    %c114 = arith.constant 114 : index
    %237 = vector.load %arg11[%c0_115, %c114] : memref<4x512xf32, #tpu.memory_space<vmem>>, vector<1x256xf32>
    %c0_116 = arith.constant 0 : index
    %c9 = arith.constant 9 : index
    %238 = memref.load %arg4[%c0_116, %c9] : memref<2x25xf32, #tpu.memory_space<smem>>
    %239 = vector.broadcast %238 : f32 to vector<1x256xf32>
    %240 = arith.mulf %239, %237 : vector<1x256xf32>
    %241 = arith.addf %236, %240 : vector<1x256xf32>
    %c0_117 = arith.constant 0 : index
    %c130 = arith.constant 130 : index
    %242 = vector.load %arg11[%c0_117, %c130] : memref<4x512xf32, #tpu.memory_space<vmem>>, vector<1x256xf32>
    %c0_118 = arith.constant 0 : index
    %c14 = arith.constant 14 : index
    %243 = memref.load %arg4[%c0_118, %c14] : memref<2x25xf32, #tpu.memory_space<smem>>
    %244 = vector.broadcast %243 : f32 to vector<1x256xf32>
    %245 = arith.mulf %244, %242 : vector<1x256xf32>
    %246 = arith.addf %241, %245 : vector<1x256xf32>
    %c0_119 = arith.constant 0 : index
    %c146 = arith.constant 146 : index
    %247 = vector.load %arg11[%c0_119, %c146] : memref<4x512xf32, #tpu.memory_space<vmem>>, vector<1x256xf32>
    %c0_120 = arith.constant 0 : index
    %c19 = arith.constant 19 : index
    %248 = memref.load %arg4[%c0_120, %c19] : memref<2x25xf32, #tpu.memory_space<smem>>
    %249 = vector.broadcast %248 : f32 to vector<1x256xf32>
    %250 = arith.mulf %249, %247 : vector<1x256xf32>
    %251 = arith.addf %246, %250 : vector<1x256xf32>
    %c0_121 = arith.constant 0 : index
    %c162 = arith.constant 162 : index
    %252 = vector.load %arg11[%c0_121, %c162] : memref<4x512xf32, #tpu.memory_space<vmem>>, vector<1x256xf32>
    %c0_122 = arith.constant 0 : index
    %c24 = arith.constant 24 : index
    %253 = memref.load %arg4[%c0_122, %c24] : memref<2x25xf32, #tpu.memory_space<smem>>
    %254 = vector.broadcast %253 : f32 to vector<1x256xf32>
    %255 = arith.mulf %254, %252 : vector<1x256xf32>
    %256 = arith.addf %251, %255 : vector<1x256xf32>
    %257 = arith.mulf %256, %32 : vector<1x256xf32>
    %258 = arith.addf %232, %257 : vector<1x256xf32>
    %c0_123 = arith.constant 0 : index
    %259 = memref.load %arg5[%c0_123] : memref<2xf32, #tpu.memory_space<smem>>
    %260 = vector.broadcast %259 : f32 to vector<1x256xf32>
    %261 = arith.addf %258, %260 : vector<1x256xf32>
    %c1_124 = arith.constant 1 : index
    %c94_125 = arith.constant 94 : index
    %262 = vector.load %arg11[%c1_124, %c94_125] : memref<4x512xf32, #tpu.memory_space<vmem>>, vector<1x256xf32>
    %c1_126 = arith.constant 1 : index
    %c0_127 = arith.constant 0 : index
    %263 = memref.load %arg4[%c1_126, %c0_127] : memref<2x25xf32, #tpu.memory_space<smem>>
    %264 = vector.broadcast %263 : f32 to vector<1x256xf32>
    %265 = arith.mulf %264, %262 : vector<1x256xf32>
    %c1_128 = arith.constant 1 : index
    %c110_129 = arith.constant 110 : index
    %266 = vector.load %arg11[%c1_128, %c110_129] : memref<4x512xf32, #tpu.memory_space<vmem>>, vector<1x256xf32>
    %c1_130 = arith.constant 1 : index
    %c5_131 = arith.constant 5 : index
    %267 = memref.load %arg4[%c1_130, %c5_131] : memref<2x25xf32, #tpu.memory_space<smem>>
    %268 = vector.broadcast %267 : f32 to vector<1x256xf32>
    %269 = arith.mulf %268, %266 : vector<1x256xf32>
    %270 = arith.addf %265, %269 : vector<1x256xf32>
    %c1_132 = arith.constant 1 : index
    %c126_133 = arith.constant 126 : index
    %271 = vector.load %arg11[%c1_132, %c126_133] : memref<4x512xf32, #tpu.memory_space<vmem>>, vector<1x256xf32>
    %c1_134 = arith.constant 1 : index
    %c10_135 = arith.constant 10 : index
    %272 = memref.load %arg4[%c1_134, %c10_135] : memref<2x25xf32, #tpu.memory_space<smem>>
    %273 = vector.broadcast %272 : f32 to vector<1x256xf32>
    %274 = arith.mulf %273, %271 : vector<1x256xf32>
    %275 = arith.addf %270, %274 : vector<1x256xf32>
    %c1_136 = arith.constant 1 : index
    %c142_137 = arith.constant 142 : index
    %276 = vector.load %arg11[%c1_136, %c142_137] : memref<4x512xf32, #tpu.memory_space<vmem>>, vector<1x256xf32>
    %c1_138 = arith.constant 1 : index
    %c15_139 = arith.constant 15 : index
    %277 = memref.load %arg4[%c1_138, %c15_139] : memref<2x25xf32, #tpu.memory_space<smem>>
    %278 = vector.broadcast %277 : f32 to vector<1x256xf32>
    %279 = arith.mulf %278, %276 : vector<1x256xf32>
    %280 = arith.addf %275, %279 : vector<1x256xf32>
    %c1_140 = arith.constant 1 : index
    %c158_141 = arith.constant 158 : index
    %281 = vector.load %arg11[%c1_140, %c158_141] : memref<4x512xf32, #tpu.memory_space<vmem>>, vector<1x256xf32>
    %c1_142 = arith.constant 1 : index
    %c20_143 = arith.constant 20 : index
    %282 = memref.load %arg4[%c1_142, %c20_143] : memref<2x25xf32, #tpu.memory_space<smem>>
    %283 = vector.broadcast %282 : f32 to vector<1x256xf32>
    %284 = arith.mulf %283, %281 : vector<1x256xf32>
    %285 = arith.addf %280, %284 : vector<1x256xf32>
    %286 = arith.mulf %285, %29 : vector<1x256xf32>
    %c1_144 = arith.constant 1 : index
    %c95_145 = arith.constant 95 : index
    %287 = vector.load %arg11[%c1_144, %c95_145] : memref<4x512xf32, #tpu.memory_space<vmem>>, vector<1x256xf32>
    %c1_146 = arith.constant 1 : index
    %c1_147 = arith.constant 1 : index
    %288 = memref.load %arg4[%c1_146, %c1_147] : memref<2x25xf32, #tpu.memory_space<smem>>
    %289 = vector.broadcast %288 : f32 to vector<1x256xf32>
    %290 = arith.mulf %289, %287 : vector<1x256xf32>
    %c1_148 = arith.constant 1 : index
    %c111_149 = arith.constant 111 : index
    %291 = vector.load %arg11[%c1_148, %c111_149] : memref<4x512xf32, #tpu.memory_space<vmem>>, vector<1x256xf32>
    %c1_150 = arith.constant 1 : index
    %c6_151 = arith.constant 6 : index
    %292 = memref.load %arg4[%c1_150, %c6_151] : memref<2x25xf32, #tpu.memory_space<smem>>
    %293 = vector.broadcast %292 : f32 to vector<1x256xf32>
    %294 = arith.mulf %293, %291 : vector<1x256xf32>
    %295 = arith.addf %290, %294 : vector<1x256xf32>
    %c1_152 = arith.constant 1 : index
    %c127_153 = arith.constant 127 : index
    %296 = vector.load %arg11[%c1_152, %c127_153] : memref<4x512xf32, #tpu.memory_space<vmem>>, vector<1x256xf32>
    %c1_154 = arith.constant 1 : index
    %c11_155 = arith.constant 11 : index
    %297 = memref.load %arg4[%c1_154, %c11_155] : memref<2x25xf32, #tpu.memory_space<smem>>
    %298 = vector.broadcast %297 : f32 to vector<1x256xf32>
    %299 = arith.mulf %298, %296 : vector<1x256xf32>
    %300 = arith.addf %295, %299 : vector<1x256xf32>
    %c1_156 = arith.constant 1 : index
    %c143_157 = arith.constant 143 : index
    %301 = vector.load %arg11[%c1_156, %c143_157] : memref<4x512xf32, #tpu.memory_space<vmem>>, vector<1x256xf32>
    %c1_158 = arith.constant 1 : index
    %c16_159 = arith.constant 16 : index
    %302 = memref.load %arg4[%c1_158, %c16_159] : memref<2x25xf32, #tpu.memory_space<smem>>
    %303 = vector.broadcast %302 : f32 to vector<1x256xf32>
    %304 = arith.mulf %303, %301 : vector<1x256xf32>
    %305 = arith.addf %300, %304 : vector<1x256xf32>
    %c1_160 = arith.constant 1 : index
    %c159_161 = arith.constant 159 : index
    %306 = vector.load %arg11[%c1_160, %c159_161] : memref<4x512xf32, #tpu.memory_space<vmem>>, vector<1x256xf32>
    %c1_162 = arith.constant 1 : index
    %c21_163 = arith.constant 21 : index
    %307 = memref.load %arg4[%c1_162, %c21_163] : memref<2x25xf32, #tpu.memory_space<smem>>
    %308 = vector.broadcast %307 : f32 to vector<1x256xf32>
    %309 = arith.mulf %308, %306 : vector<1x256xf32>
    %310 = arith.addf %305, %309 : vector<1x256xf32>
    %311 = arith.mulf %310, %30 : vector<1x256xf32>
    %312 = arith.addf %286, %311 : vector<1x256xf32>
    %c1_164 = arith.constant 1 : index
    %c96_165 = arith.constant 96 : index
    %313 = vector.load %arg11[%c1_164, %c96_165] : memref<4x512xf32, #tpu.memory_space<vmem>>, vector<1x256xf32>
    %c1_166 = arith.constant 1 : index
    %c2_167 = arith.constant 2 : index
    %314 = memref.load %arg4[%c1_166, %c2_167] : memref<2x25xf32, #tpu.memory_space<smem>>
    %315 = vector.broadcast %314 : f32 to vector<1x256xf32>
    %316 = arith.mulf %315, %313 : vector<1x256xf32>
    %c1_168 = arith.constant 1 : index
    %c112_169 = arith.constant 112 : index
    %317 = vector.load %arg11[%c1_168, %c112_169] : memref<4x512xf32, #tpu.memory_space<vmem>>, vector<1x256xf32>
    %c1_170 = arith.constant 1 : index
    %c7_171 = arith.constant 7 : index
    %318 = memref.load %arg4[%c1_170, %c7_171] : memref<2x25xf32, #tpu.memory_space<smem>>
    %319 = vector.broadcast %318 : f32 to vector<1x256xf32>
    %320 = arith.mulf %319, %317 : vector<1x256xf32>
    %321 = arith.addf %316, %320 : vector<1x256xf32>
    %c1_172 = arith.constant 1 : index
    %c128_173 = arith.constant 128 : index
    %322 = vector.load %arg11[%c1_172, %c128_173] : memref<4x512xf32, #tpu.memory_space<vmem>>, vector<1x256xf32>
    %c1_174 = arith.constant 1 : index
    %c12_175 = arith.constant 12 : index
    %323 = memref.load %arg4[%c1_174, %c12_175] : memref<2x25xf32, #tpu.memory_space<smem>>
    %324 = vector.broadcast %323 : f32 to vector<1x256xf32>
    %325 = arith.mulf %324, %322 : vector<1x256xf32>
    %326 = arith.addf %321, %325 : vector<1x256xf32>
    %c1_176 = arith.constant 1 : index
    %c144_177 = arith.constant 144 : index
    %327 = vector.load %arg11[%c1_176, %c144_177] : memref<4x512xf32, #tpu.memory_space<vmem>>, vector<1x256xf32>
    %c1_178 = arith.constant 1 : index
    %c17_179 = arith.constant 17 : index
    %328 = memref.load %arg4[%c1_178, %c17_179] : memref<2x25xf32, #tpu.memory_space<smem>>
    %329 = vector.broadcast %328 : f32 to vector<1x256xf32>
    %330 = arith.mulf %329, %327 : vector<1x256xf32>
    %331 = arith.addf %326, %330 : vector<1x256xf32>
    %c1_180 = arith.constant 1 : index
    %c160_181 = arith.constant 160 : index
    %332 = vector.load %arg11[%c1_180, %c160_181] : memref<4x512xf32, #tpu.memory_space<vmem>>, vector<1x256xf32>
    %c1_182 = arith.constant 1 : index
    %c22_183 = arith.constant 22 : index
    %333 = memref.load %arg4[%c1_182, %c22_183] : memref<2x25xf32, #tpu.memory_space<smem>>
    %334 = vector.broadcast %333 : f32 to vector<1x256xf32>
    %335 = arith.mulf %334, %332 : vector<1x256xf32>
    %336 = arith.addf %331, %335 : vector<1x256xf32>
    %337 = arith.addf %312, %336 : vector<1x256xf32>
    %c1_184 = arith.constant 1 : index
    %c97_185 = arith.constant 97 : index
    %338 = vector.load %arg11[%c1_184, %c97_185] : memref<4x512xf32, #tpu.memory_space<vmem>>, vector<1x256xf32>
    %c1_186 = arith.constant 1 : index
    %c3_187 = arith.constant 3 : index
    %339 = memref.load %arg4[%c1_186, %c3_187] : memref<2x25xf32, #tpu.memory_space<smem>>
    %340 = vector.broadcast %339 : f32 to vector<1x256xf32>
    %341 = arith.mulf %340, %338 : vector<1x256xf32>
    %c1_188 = arith.constant 1 : index
    %c113_189 = arith.constant 113 : index
    %342 = vector.load %arg11[%c1_188, %c113_189] : memref<4x512xf32, #tpu.memory_space<vmem>>, vector<1x256xf32>
    %c1_190 = arith.constant 1 : index
    %c8_191 = arith.constant 8 : index
    %343 = memref.load %arg4[%c1_190, %c8_191] : memref<2x25xf32, #tpu.memory_space<smem>>
    %344 = vector.broadcast %343 : f32 to vector<1x256xf32>
    %345 = arith.mulf %344, %342 : vector<1x256xf32>
    %346 = arith.addf %341, %345 : vector<1x256xf32>
    %c1_192 = arith.constant 1 : index
    %c129_193 = arith.constant 129 : index
    %347 = vector.load %arg11[%c1_192, %c129_193] : memref<4x512xf32, #tpu.memory_space<vmem>>, vector<1x256xf32>
    %c1_194 = arith.constant 1 : index
    %c13_195 = arith.constant 13 : index
    %348 = memref.load %arg4[%c1_194, %c13_195] : memref<2x25xf32, #tpu.memory_space<smem>>
    %349 = vector.broadcast %348 : f32 to vector<1x256xf32>
    %350 = arith.mulf %349, %347 : vector<1x256xf32>
    %351 = arith.addf %346, %350 : vector<1x256xf32>
    %c1_196 = arith.constant 1 : index
    %c145_197 = arith.constant 145 : index
    %352 = vector.load %arg11[%c1_196, %c145_197] : memref<4x512xf32, #tpu.memory_space<vmem>>, vector<1x256xf32>
    %c1_198 = arith.constant 1 : index
    %c18_199 = arith.constant 18 : index
    %353 = memref.load %arg4[%c1_198, %c18_199] : memref<2x25xf32, #tpu.memory_space<smem>>
    %354 = vector.broadcast %353 : f32 to vector<1x256xf32>
    %355 = arith.mulf %354, %352 : vector<1x256xf32>
    %356 = arith.addf %351, %355 : vector<1x256xf32>
    %c1_200 = arith.constant 1 : index
    %c161_201 = arith.constant 161 : index
    %357 = vector.load %arg11[%c1_200, %c161_201] : memref<4x512xf32, #tpu.memory_space<vmem>>, vector<1x256xf32>
    %c1_202 = arith.constant 1 : index
    %c23_203 = arith.constant 23 : index
    %358 = memref.load %arg4[%c1_202, %c23_203] : memref<2x25xf32, #tpu.memory_space<smem>>
    %359 = vector.broadcast %358 : f32 to vector<1x256xf32>
    %360 = arith.mulf %359, %357 : vector<1x256xf32>
    %361 = arith.addf %356, %360 : vector<1x256xf32>
    %362 = arith.mulf %361, %31 : vector<1x256xf32>
    %363 = arith.addf %337, %362 : vector<1x256xf32>
    %c1_204 = arith.constant 1 : index
    %c98_205 = arith.constant 98 : index
    %364 = vector.load %arg11[%c1_204, %c98_205] : memref<4x512xf32, #tpu.memory_space<vmem>>, vector<1x256xf32>
    %c1_206 = arith.constant 1 : index
    %c4_207 = arith.constant 4 : index
    %365 = memref.load %arg4[%c1_206, %c4_207] : memref<2x25xf32, #tpu.memory_space<smem>>
    %366 = vector.broadcast %365 : f32 to vector<1x256xf32>
    %367 = arith.mulf %366, %364 : vector<1x256xf32>
    %c1_208 = arith.constant 1 : index
    %c114_209 = arith.constant 114 : index
    %368 = vector.load %arg11[%c1_208, %c114_209] : memref<4x512xf32, #tpu.memory_space<vmem>>, vector<1x256xf32>
    %c1_210 = arith.constant 1 : index
    %c9_211 = arith.constant 9 : index
    %369 = memref.load %arg4[%c1_210, %c9_211] : memref<2x25xf32, #tpu.memory_space<smem>>
    %370 = vector.broadcast %369 : f32 to vector<1x256xf32>
    %371 = arith.mulf %370, %368 : vector<1x256xf32>
    %372 = arith.addf %367, %371 : vector<1x256xf32>
    %c1_212 = arith.constant 1 : index
    %c130_213 = arith.constant 130 : index
    %373 = vector.load %arg11[%c1_212, %c130_213] : memref<4x512xf32, #tpu.memory_space<vmem>>, vector<1x256xf32>
    %c1_214 = arith.constant 1 : index
    %c14_215 = arith.constant 14 : index
    %374 = memref.load %arg4[%c1_214, %c14_215] : memref<2x25xf32, #tpu.memory_space<smem>>
    %375 = vector.broadcast %374 : f32 to vector<1x256xf32>
    %376 = arith.mulf %375, %373 : vector<1x256xf32>
    %377 = arith.addf %372, %376 : vector<1x256xf32>
    %c1_216 = arith.constant 1 : index
    %c146_217 = arith.constant 146 : index
    %378 = vector.load %arg11[%c1_216, %c146_217] : memref<4x512xf32, #tpu.memory_space<vmem>>, vector<1x256xf32>
    %c1_218 = arith.constant 1 : index
    %c19_219 = arith.constant 19 : index
    %379 = memref.load %arg4[%c1_218, %c19_219] : memref<2x25xf32, #tpu.memory_space<smem>>
    %380 = vector.broadcast %379 : f32 to vector<1x256xf32>
    %381 = arith.mulf %380, %378 : vector<1x256xf32>
    %382 = arith.addf %377, %381 : vector<1x256xf32>
    %c1_220 = arith.constant 1 : index
    %c162_221 = arith.constant 162 : index
    %383 = vector.load %arg11[%c1_220, %c162_221] : memref<4x512xf32, #tpu.memory_space<vmem>>, vector<1x256xf32>
    %c1_222 = arith.constant 1 : index
    %c24_223 = arith.constant 24 : index
    %384 = memref.load %arg4[%c1_222, %c24_223] : memref<2x25xf32, #tpu.memory_space<smem>>
    %385 = vector.broadcast %384 : f32 to vector<1x256xf32>
    %386 = arith.mulf %385, %383 : vector<1x256xf32>
    %387 = arith.addf %382, %386 : vector<1x256xf32>
    %388 = arith.mulf %387, %32 : vector<1x256xf32>
    %389 = arith.addf %363, %388 : vector<1x256xf32>
    %c1_224 = arith.constant 1 : index
    %390 = memref.load %arg5[%c1_224] : memref<2xf32, #tpu.memory_space<smem>>
    %391 = vector.broadcast %390 : f32 to vector<1x256xf32>
    %392 = arith.addf %389, %391 : vector<1x256xf32>
    %cst_225 = arith.constant 0.000000e+00 : f32
    %393 = vector.broadcast %cst_225 : f32 to vector<1x256xf32>
    %394 = arith.cmpf ogt, %261, %393 : vector<1x256xf32>
    %cst_226 = arith.constant 1.000000e-01 : f32
    %395 = vector.broadcast %cst_226 : f32 to vector<1x256xf32>
    %396 = arith.mulf %395, %261 : vector<1x256xf32>
    %397 = arith.select %394, %261, %396 : vector<1x256xi1>, vector<1x256xf32>
    %cst_227 = arith.constant 0.000000e+00 : f32
    %398 = vector.broadcast %cst_227 : f32 to vector<1x256xf32>
    %399 = arith.cmpf ogt, %392, %398 : vector<1x256xf32>
    %cst_228 = arith.constant 1.000000e-01 : f32
    %400 = vector.broadcast %cst_228 : f32 to vector<1x256xf32>
    %401 = arith.mulf %400, %392 : vector<1x256xf32>
    %402 = arith.select %399, %392, %401 : vector<1x256xi1>, vector<1x256xf32>
    %c0_229 = arith.constant 0 : index
    %c0_230 = arith.constant 0 : index
    %403 = memref.load %arg6[%c0_229, %c0_230] : memref<4x4xf32, #tpu.memory_space<smem>>
    %404 = vector.broadcast %403 : f32 to vector<1x256xf32>
    %405 = arith.mulf %404, %123 : vector<1x256xf32>
    %c0_231 = arith.constant 0 : index
    %c1_232 = arith.constant 1 : index
    %406 = memref.load %arg6[%c0_231, %c1_232] : memref<4x4xf32, #tpu.memory_space<smem>>
    %407 = vector.broadcast %406 : f32 to vector<1x256xf32>
    %408 = arith.mulf %407, %128 : vector<1x256xf32>
    %409 = arith.addf %405, %408 : vector<1x256xf32>
    %c0_233 = arith.constant 0 : index
    %c2_234 = arith.constant 2 : index
    %410 = memref.load %arg6[%c0_233, %c2_234] : memref<4x4xf32, #tpu.memory_space<smem>>
    %411 = vector.broadcast %410 : f32 to vector<1x256xf32>
    %412 = arith.mulf %411, %397 : vector<1x256xf32>
    %413 = arith.addf %409, %412 : vector<1x256xf32>
    %c0_235 = arith.constant 0 : index
    %c3_236 = arith.constant 3 : index
    %414 = memref.load %arg6[%c0_235, %c3_236] : memref<4x4xf32, #tpu.memory_space<smem>>
    %415 = vector.broadcast %414 : f32 to vector<1x256xf32>
    %416 = arith.mulf %415, %402 : vector<1x256xf32>
    %417 = arith.addf %413, %416 : vector<1x256xf32>
    %c0_237 = arith.constant 0 : index
    %418 = memref.load %arg7[%c0_237] : memref<4xf32, #tpu.memory_space<smem>>
    %419 = vector.broadcast %418 : f32 to vector<1x256xf32>
    %420 = arith.addf %417, %419 : vector<1x256xf32>
    %c1_238 = arith.constant 1 : index
    %c0_239 = arith.constant 0 : index
    %421 = memref.load %arg6[%c1_238, %c0_239] : memref<4x4xf32, #tpu.memory_space<smem>>
    %422 = vector.broadcast %421 : f32 to vector<1x256xf32>
    %423 = arith.mulf %422, %123 : vector<1x256xf32>
    %c1_240 = arith.constant 1 : index
    %c1_241 = arith.constant 1 : index
    %424 = memref.load %arg6[%c1_240, %c1_241] : memref<4x4xf32, #tpu.memory_space<smem>>
    %425 = vector.broadcast %424 : f32 to vector<1x256xf32>
    %426 = arith.mulf %425, %128 : vector<1x256xf32>
    %427 = arith.addf %423, %426 : vector<1x256xf32>
    %c1_242 = arith.constant 1 : index
    %c2_243 = arith.constant 2 : index
    %428 = memref.load %arg6[%c1_242, %c2_243] : memref<4x4xf32, #tpu.memory_space<smem>>
    %429 = vector.broadcast %428 : f32 to vector<1x256xf32>
    %430 = arith.mulf %429, %397 : vector<1x256xf32>
    %431 = arith.addf %427, %430 : vector<1x256xf32>
    %c1_244 = arith.constant 1 : index
    %c3_245 = arith.constant 3 : index
    %432 = memref.load %arg6[%c1_244, %c3_245] : memref<4x4xf32, #tpu.memory_space<smem>>
    %433 = vector.broadcast %432 : f32 to vector<1x256xf32>
    %434 = arith.mulf %433, %402 : vector<1x256xf32>
    %435 = arith.addf %431, %434 : vector<1x256xf32>
    %c1_246 = arith.constant 1 : index
    %436 = memref.load %arg7[%c1_246] : memref<4xf32, #tpu.memory_space<smem>>
    %437 = vector.broadcast %436 : f32 to vector<1x256xf32>
    %438 = arith.addf %435, %437 : vector<1x256xf32>
    %c2_247 = arith.constant 2 : index
    %c0_248 = arith.constant 0 : index
    %439 = memref.load %arg6[%c2_247, %c0_248] : memref<4x4xf32, #tpu.memory_space<smem>>
    %440 = vector.broadcast %439 : f32 to vector<1x256xf32>
    %441 = arith.mulf %440, %123 : vector<1x256xf32>
    %c2_249 = arith.constant 2 : index
    %c1_250 = arith.constant 1 : index
    %442 = memref.load %arg6[%c2_249, %c1_250] : memref<4x4xf32, #tpu.memory_space<smem>>
    %443 = vector.broadcast %442 : f32 to vector<1x256xf32>
    %444 = arith.mulf %443, %128 : vector<1x256xf32>
    %445 = arith.addf %441, %444 : vector<1x256xf32>
    %c2_251 = arith.constant 2 : index
    %c2_252 = arith.constant 2 : index
    %446 = memref.load %arg6[%c2_251, %c2_252] : memref<4x4xf32, #tpu.memory_space<smem>>
    %447 = vector.broadcast %446 : f32 to vector<1x256xf32>
    %448 = arith.mulf %447, %397 : vector<1x256xf32>
    %449 = arith.addf %445, %448 : vector<1x256xf32>
    %c2_253 = arith.constant 2 : index
    %c3_254 = arith.constant 3 : index
    %450 = memref.load %arg6[%c2_253, %c3_254] : memref<4x4xf32, #tpu.memory_space<smem>>
    %451 = vector.broadcast %450 : f32 to vector<1x256xf32>
    %452 = arith.mulf %451, %402 : vector<1x256xf32>
    %453 = arith.addf %449, %452 : vector<1x256xf32>
    %c2_255 = arith.constant 2 : index
    %454 = memref.load %arg7[%c2_255] : memref<4xf32, #tpu.memory_space<smem>>
    %455 = vector.broadcast %454 : f32 to vector<1x256xf32>
    %456 = arith.addf %453, %455 : vector<1x256xf32>
    %c3_256 = arith.constant 3 : index
    %c0_257 = arith.constant 0 : index
    %457 = memref.load %arg6[%c3_256, %c0_257] : memref<4x4xf32, #tpu.memory_space<smem>>
    %458 = vector.broadcast %457 : f32 to vector<1x256xf32>
    %459 = arith.mulf %458, %123 : vector<1x256xf32>
    %c3_258 = arith.constant 3 : index
    %c1_259 = arith.constant 1 : index
    %460 = memref.load %arg6[%c3_258, %c1_259] : memref<4x4xf32, #tpu.memory_space<smem>>
    %461 = vector.broadcast %460 : f32 to vector<1x256xf32>
    %462 = arith.mulf %461, %128 : vector<1x256xf32>
    %463 = arith.addf %459, %462 : vector<1x256xf32>
    %c3_260 = arith.constant 3 : index
    %c2_261 = arith.constant 2 : index
    %464 = memref.load %arg6[%c3_260, %c2_261] : memref<4x4xf32, #tpu.memory_space<smem>>
    %465 = vector.broadcast %464 : f32 to vector<1x256xf32>
    %466 = arith.mulf %465, %397 : vector<1x256xf32>
    %467 = arith.addf %463, %466 : vector<1x256xf32>
    %c3_262 = arith.constant 3 : index
    %c3_263 = arith.constant 3 : index
    %468 = memref.load %arg6[%c3_262, %c3_263] : memref<4x4xf32, #tpu.memory_space<smem>>
    %469 = vector.broadcast %468 : f32 to vector<1x256xf32>
    %470 = arith.mulf %469, %402 : vector<1x256xf32>
    %471 = arith.addf %467, %470 : vector<1x256xf32>
    %c3_264 = arith.constant 3 : index
    %472 = memref.load %arg7[%c3_264] : memref<4xf32, #tpu.memory_space<smem>>
    %473 = vector.broadcast %472 : f32 to vector<1x256xf32>
    %474 = arith.addf %471, %473 : vector<1x256xf32>
    %c0_265 = arith.constant 0 : index
    %c128_266 = arith.constant 128 : index
    %475 = vector.load %arg11[%c0_265, %c128_266] : memref<4x512xf32, #tpu.memory_space<vmem>>, vector<1x256xf32>
    tpu.vector_store %arg11[%c0_265, %c128_266], %420 {strides = array<i32>} : memref<4x512xf32, #tpu.memory_space<vmem>>, vector<1x256xf32>,
    %c1_267 = arith.constant 1 : index
    %c128_268 = arith.constant 128 : index
    %476 = vector.load %arg11[%c1_267, %c128_268] : memref<4x512xf32, #tpu.memory_space<vmem>>, vector<1x256xf32>
    tpu.vector_store %arg11[%c1_267, %c128_268], %438 {strides = array<i32>} : memref<4x512xf32, #tpu.memory_space<vmem>>, vector<1x256xf32>,
    %c2_269 = arith.constant 2 : index
    %c128_270 = arith.constant 128 : index
    %477 = vector.load %arg11[%c2_269, %c128_270] : memref<4x512xf32, #tpu.memory_space<vmem>>, vector<1x256xf32>
    tpu.vector_store %arg11[%c2_269, %c128_270], %456 {strides = array<i32>} : memref<4x512xf32, #tpu.memory_space<vmem>>, vector<1x256xf32>,
    %c3_271 = arith.constant 3 : index
    %c128_272 = arith.constant 128 : index
    %478 = vector.load %arg11[%c3_271, %c128_272] : memref<4x512xf32, #tpu.memory_space<vmem>>, vector<1x256xf32>
    tpu.vector_store %arg11[%c3_271, %c128_272], %474 {strides = array<i32>} : memref<4x512xf32, #tpu.memory_space<vmem>>, vector<1x256xf32>,
    %c0_273 = arith.constant 0 : index
    %c94_274 = arith.constant 94 : index
    %479 = vector.load %arg11[%c0_273, %c94_274] : memref<4x512xf32, #tpu.memory_space<vmem>>, vector<1x256xf32>
    %c0_275 = arith.constant 0 : index
    %c0_276 = arith.constant 0 : index
    %480 = memref.load %arg8[%c0_275, %c0_276] : memref<4x25xf32, #tpu.memory_space<smem>>
    %481 = vector.broadcast %480 : f32 to vector<1x256xf32>
    %482 = arith.mulf %481, %479 : vector<1x256xf32>
    %c0_277 = arith.constant 0 : index
    %c110_278 = arith.constant 110 : index
    %483 = vector.load %arg11[%c0_277, %c110_278] : memref<4x512xf32, #tpu.memory_space<vmem>>, vector<1x256xf32>
    %c0_279 = arith.constant 0 : index
    %c5_280 = arith.constant 5 : index
    %484 = memref.load %arg8[%c0_279, %c5_280] : memref<4x25xf32, #tpu.memory_space<smem>>
    %485 = vector.broadcast %484 : f32 to vector<1x256xf32>
    %486 = arith.mulf %485, %483 : vector<1x256xf32>
    %487 = arith.addf %482, %486 : vector<1x256xf32>
    %c0_281 = arith.constant 0 : index
    %c126_282 = arith.constant 126 : index
    %488 = vector.load %arg11[%c0_281, %c126_282] : memref<4x512xf32, #tpu.memory_space<vmem>>, vector<1x256xf32>
    %c0_283 = arith.constant 0 : index
    %c10_284 = arith.constant 10 : index
    %489 = memref.load %arg8[%c0_283, %c10_284] : memref<4x25xf32, #tpu.memory_space<smem>>
    %490 = vector.broadcast %489 : f32 to vector<1x256xf32>
    %491 = arith.mulf %490, %488 : vector<1x256xf32>
    %492 = arith.addf %487, %491 : vector<1x256xf32>
    %c0_285 = arith.constant 0 : index
    %c142_286 = arith.constant 142 : index
    %493 = vector.load %arg11[%c0_285, %c142_286] : memref<4x512xf32, #tpu.memory_space<vmem>>, vector<1x256xf32>
    %c0_287 = arith.constant 0 : index
    %c15_288 = arith.constant 15 : index
    %494 = memref.load %arg8[%c0_287, %c15_288] : memref<4x25xf32, #tpu.memory_space<smem>>
    %495 = vector.broadcast %494 : f32 to vector<1x256xf32>
    %496 = arith.mulf %495, %493 : vector<1x256xf32>
    %497 = arith.addf %492, %496 : vector<1x256xf32>
    %c0_289 = arith.constant 0 : index
    %c158_290 = arith.constant 158 : index
    %498 = vector.load %arg11[%c0_289, %c158_290] : memref<4x512xf32, #tpu.memory_space<vmem>>, vector<1x256xf32>
    %c0_291 = arith.constant 0 : index
    %c20_292 = arith.constant 20 : index
    %499 = memref.load %arg8[%c0_291, %c20_292] : memref<4x25xf32, #tpu.memory_space<smem>>
    %500 = vector.broadcast %499 : f32 to vector<1x256xf32>
    %501 = arith.mulf %500, %498 : vector<1x256xf32>
    %502 = arith.addf %497, %501 : vector<1x256xf32>
    %503 = arith.mulf %502, %29 : vector<1x256xf32>
    %c0_293 = arith.constant 0 : index
    %c95_294 = arith.constant 95 : index
    %504 = vector.load %arg11[%c0_293, %c95_294] : memref<4x512xf32, #tpu.memory_space<vmem>>, vector<1x256xf32>
    %c0_295 = arith.constant 0 : index
    %c1_296 = arith.constant 1 : index
    %505 = memref.load %arg8[%c0_295, %c1_296] : memref<4x25xf32, #tpu.memory_space<smem>>
    %506 = vector.broadcast %505 : f32 to vector<1x256xf32>
    %507 = arith.mulf %506, %504 : vector<1x256xf32>
    %c0_297 = arith.constant 0 : index
    %c111_298 = arith.constant 111 : index
    %508 = vector.load %arg11[%c0_297, %c111_298] : memref<4x512xf32, #tpu.memory_space<vmem>>, vector<1x256xf32>
    %c0_299 = arith.constant 0 : index
    %c6_300 = arith.constant 6 : index
    %509 = memref.load %arg8[%c0_299, %c6_300] : memref<4x25xf32, #tpu.memory_space<smem>>
    %510 = vector.broadcast %509 : f32 to vector<1x256xf32>
    %511 = arith.mulf %510, %508 : vector<1x256xf32>
    %512 = arith.addf %507, %511 : vector<1x256xf32>
    %c0_301 = arith.constant 0 : index
    %c127_302 = arith.constant 127 : index
    %513 = vector.load %arg11[%c0_301, %c127_302] : memref<4x512xf32, #tpu.memory_space<vmem>>, vector<1x256xf32>
    %c0_303 = arith.constant 0 : index
    %c11_304 = arith.constant 11 : index
    %514 = memref.load %arg8[%c0_303, %c11_304] : memref<4x25xf32, #tpu.memory_space<smem>>
    %515 = vector.broadcast %514 : f32 to vector<1x256xf32>
    %516 = arith.mulf %515, %513 : vector<1x256xf32>
    %517 = arith.addf %512, %516 : vector<1x256xf32>
    %c0_305 = arith.constant 0 : index
    %c143_306 = arith.constant 143 : index
    %518 = vector.load %arg11[%c0_305, %c143_306] : memref<4x512xf32, #tpu.memory_space<vmem>>, vector<1x256xf32>
    %c0_307 = arith.constant 0 : index
    %c16_308 = arith.constant 16 : index
    %519 = memref.load %arg8[%c0_307, %c16_308] : memref<4x25xf32, #tpu.memory_space<smem>>
    %520 = vector.broadcast %519 : f32 to vector<1x256xf32>
    %521 = arith.mulf %520, %518 : vector<1x256xf32>
    %522 = arith.addf %517, %521 : vector<1x256xf32>
    %c0_309 = arith.constant 0 : index
    %c159_310 = arith.constant 159 : index
    %523 = vector.load %arg11[%c0_309, %c159_310] : memref<4x512xf32, #tpu.memory_space<vmem>>, vector<1x256xf32>
    %c0_311 = arith.constant 0 : index
    %c21_312 = arith.constant 21 : index
    %524 = memref.load %arg8[%c0_311, %c21_312] : memref<4x25xf32, #tpu.memory_space<smem>>
    %525 = vector.broadcast %524 : f32 to vector<1x256xf32>
    %526 = arith.mulf %525, %523 : vector<1x256xf32>
    %527 = arith.addf %522, %526 : vector<1x256xf32>
    %528 = arith.mulf %527, %30 : vector<1x256xf32>
    %529 = arith.addf %503, %528 : vector<1x256xf32>
    %c0_313 = arith.constant 0 : index
    %c96_314 = arith.constant 96 : index
    %530 = vector.load %arg11[%c0_313, %c96_314] : memref<4x512xf32, #tpu.memory_space<vmem>>, vector<1x256xf32>
    %c0_315 = arith.constant 0 : index
    %c2_316 = arith.constant 2 : index
    %531 = memref.load %arg8[%c0_315, %c2_316] : memref<4x25xf32, #tpu.memory_space<smem>>
    %532 = vector.broadcast %531 : f32 to vector<1x256xf32>
    %533 = arith.mulf %532, %530 : vector<1x256xf32>
    %c0_317 = arith.constant 0 : index
    %c112_318 = arith.constant 112 : index
    %534 = vector.load %arg11[%c0_317, %c112_318] : memref<4x512xf32, #tpu.memory_space<vmem>>, vector<1x256xf32>
    %c0_319 = arith.constant 0 : index
    %c7_320 = arith.constant 7 : index
    %535 = memref.load %arg8[%c0_319, %c7_320] : memref<4x25xf32, #tpu.memory_space<smem>>
    %536 = vector.broadcast %535 : f32 to vector<1x256xf32>
    %537 = arith.mulf %536, %534 : vector<1x256xf32>
    %538 = arith.addf %533, %537 : vector<1x256xf32>
    %c0_321 = arith.constant 0 : index
    %c128_322 = arith.constant 128 : index
    %539 = vector.load %arg11[%c0_321, %c128_322] : memref<4x512xf32, #tpu.memory_space<vmem>>, vector<1x256xf32>
    %c0_323 = arith.constant 0 : index
    %c12_324 = arith.constant 12 : index
    %540 = memref.load %arg8[%c0_323, %c12_324] : memref<4x25xf32, #tpu.memory_space<smem>>
    %541 = vector.broadcast %540 : f32 to vector<1x256xf32>
    %542 = arith.mulf %541, %539 : vector<1x256xf32>
    %543 = arith.addf %538, %542 : vector<1x256xf32>
    %c0_325 = arith.constant 0 : index
    %c144_326 = arith.constant 144 : index
    %544 = vector.load %arg11[%c0_325, %c144_326] : memref<4x512xf32, #tpu.memory_space<vmem>>, vector<1x256xf32>
    %c0_327 = arith.constant 0 : index
    %c17_328 = arith.constant 17 : index
    %545 = memref.load %arg8[%c0_327, %c17_328] : memref<4x25xf32, #tpu.memory_space<smem>>
    %546 = vector.broadcast %545 : f32 to vector<1x256xf32>
    %547 = arith.mulf %546, %544 : vector<1x256xf32>
    %548 = arith.addf %543, %547 : vector<1x256xf32>
    %c0_329 = arith.constant 0 : index
    %c160_330 = arith.constant 160 : index
    %549 = vector.load %arg11[%c0_329, %c160_330] : memref<4x512xf32, #tpu.memory_space<vmem>>, vector<1x256xf32>
    %c0_331 = arith.constant 0 : index
    %c22_332 = arith.constant 22 : index
    %550 = memref.load %arg8[%c0_331, %c22_332] : memref<4x25xf32, #tpu.memory_space<smem>>
    %551 = vector.broadcast %550 : f32 to vector<1x256xf32>
    %552 = arith.mulf %551, %549 : vector<1x256xf32>
    %553 = arith.addf %548, %552 : vector<1x256xf32>
    %554 = arith.addf %529, %553 : vector<1x256xf32>
    %c0_333 = arith.constant 0 : index
    %c97_334 = arith.constant 97 : index
    %555 = vector.load %arg11[%c0_333, %c97_334] : memref<4x512xf32, #tpu.memory_space<vmem>>, vector<1x256xf32>
    %c0_335 = arith.constant 0 : index
    %c3_336 = arith.constant 3 : index
    %556 = memref.load %arg8[%c0_335, %c3_336] : memref<4x25xf32, #tpu.memory_space<smem>>
    %557 = vector.broadcast %556 : f32 to vector<1x256xf32>
    %558 = arith.mulf %557, %555 : vector<1x256xf32>
    %c0_337 = arith.constant 0 : index
    %c113_338 = arith.constant 113 : index
    %559 = vector.load %arg11[%c0_337, %c113_338] : memref<4x512xf32, #tpu.memory_space<vmem>>, vector<1x256xf32>
    %c0_339 = arith.constant 0 : index
    %c8_340 = arith.constant 8 : index
    %560 = memref.load %arg8[%c0_339, %c8_340] : memref<4x25xf32, #tpu.memory_space<smem>>
    %561 = vector.broadcast %560 : f32 to vector<1x256xf32>
    %562 = arith.mulf %561, %559 : vector<1x256xf32>
    %563 = arith.addf %558, %562 : vector<1x256xf32>
    %c0_341 = arith.constant 0 : index
    %c129_342 = arith.constant 129 : index
    %564 = vector.load %arg11[%c0_341, %c129_342] : memref<4x512xf32, #tpu.memory_space<vmem>>, vector<1x256xf32>
    %c0_343 = arith.constant 0 : index
    %c13_344 = arith.constant 13 : index
    %565 = memref.load %arg8[%c0_343, %c13_344] : memref<4x25xf32, #tpu.memory_space<smem>>
    %566 = vector.broadcast %565 : f32 to vector<1x256xf32>
    %567 = arith.mulf %566, %564 : vector<1x256xf32>
    %568 = arith.addf %563, %567 : vector<1x256xf32>
    %c0_345 = arith.constant 0 : index
    %c145_346 = arith.constant 145 : index
    %569 = vector.load %arg11[%c0_345, %c145_346] : memref<4x512xf32, #tpu.memory_space<vmem>>, vector<1x256xf32>
    %c0_347 = arith.constant 0 : index
    %c18_348 = arith.constant 18 : index
    %570 = memref.load %arg8[%c0_347, %c18_348] : memref<4x25xf32, #tpu.memory_space<smem>>
    %571 = vector.broadcast %570 : f32 to vector<1x256xf32>
    %572 = arith.mulf %571, %569 : vector<1x256xf32>
    %573 = arith.addf %568, %572 : vector<1x256xf32>
    %c0_349 = arith.constant 0 : index
    %c161_350 = arith.constant 161 : index
    %574 = vector.load %arg11[%c0_349, %c161_350] : memref<4x512xf32, #tpu.memory_space<vmem>>, vector<1x256xf32>
    %c0_351 = arith.constant 0 : index
    %c23_352 = arith.constant 23 : index
    %575 = memref.load %arg8[%c0_351, %c23_352] : memref<4x25xf32, #tpu.memory_space<smem>>
    %576 = vector.broadcast %575 : f32 to vector<1x256xf32>
    %577 = arith.mulf %576, %574 : vector<1x256xf32>
    %578 = arith.addf %573, %577 : vector<1x256xf32>
    %579 = arith.mulf %578, %31 : vector<1x256xf32>
    %580 = arith.addf %554, %579 : vector<1x256xf32>
    %c0_353 = arith.constant 0 : index
    %c98_354 = arith.constant 98 : index
    %581 = vector.load %arg11[%c0_353, %c98_354] : memref<4x512xf32, #tpu.memory_space<vmem>>, vector<1x256xf32>
    %c0_355 = arith.constant 0 : index
    %c4_356 = arith.constant 4 : index
    %582 = memref.load %arg8[%c0_355, %c4_356] : memref<4x25xf32, #tpu.memory_space<smem>>
    %583 = vector.broadcast %582 : f32 to vector<1x256xf32>
    %584 = arith.mulf %583, %581 : vector<1x256xf32>
    %c0_357 = arith.constant 0 : index
    %c114_358 = arith.constant 114 : index
    %585 = vector.load %arg11[%c0_357, %c114_358] : memref<4x512xf32, #tpu.memory_space<vmem>>, vector<1x256xf32>
    %c0_359 = arith.constant 0 : index
    %c9_360 = arith.constant 9 : index
    %586 = memref.load %arg8[%c0_359, %c9_360] : memref<4x25xf32, #tpu.memory_space<smem>>
    %587 = vector.broadcast %586 : f32 to vector<1x256xf32>
    %588 = arith.mulf %587, %585 : vector<1x256xf32>
    %589 = arith.addf %584, %588 : vector<1x256xf32>
    %c0_361 = arith.constant 0 : index
    %c130_362 = arith.constant 130 : index
    %590 = vector.load %arg11[%c0_361, %c130_362] : memref<4x512xf32, #tpu.memory_space<vmem>>, vector<1x256xf32>
    %c0_363 = arith.constant 0 : index
    %c14_364 = arith.constant 14 : index
    %591 = memref.load %arg8[%c0_363, %c14_364] : memref<4x25xf32, #tpu.memory_space<smem>>
    %592 = vector.broadcast %591 : f32 to vector<1x256xf32>
    %593 = arith.mulf %592, %590 : vector<1x256xf32>
    %594 = arith.addf %589, %593 : vector<1x256xf32>
    %c0_365 = arith.constant 0 : index
    %c146_366 = arith.constant 146 : index
    %595 = vector.load %arg11[%c0_365, %c146_366] : memref<4x512xf32, #tpu.memory_space<vmem>>, vector<1x256xf32>
    %c0_367 = arith.constant 0 : index
    %c19_368 = arith.constant 19 : index
    %596 = memref.load %arg8[%c0_367, %c19_368] : memref<4x25xf32, #tpu.memory_space<smem>>
    %597 = vector.broadcast %596 : f32 to vector<1x256xf32>
    %598 = arith.mulf %597, %595 : vector<1x256xf32>
    %599 = arith.addf %594, %598 : vector<1x256xf32>
    %c0_369 = arith.constant 0 : index
    %c162_370 = arith.constant 162 : index
    %600 = vector.load %arg11[%c0_369, %c162_370] : memref<4x512xf32, #tpu.memory_space<vmem>>, vector<1x256xf32>
    %c0_371 = arith.constant 0 : index
    %c24_372 = arith.constant 24 : index
    %601 = memref.load %arg8[%c0_371, %c24_372] : memref<4x25xf32, #tpu.memory_space<smem>>
    %602 = vector.broadcast %601 : f32 to vector<1x256xf32>
    %603 = arith.mulf %602, %600 : vector<1x256xf32>
    %604 = arith.addf %599, %603 : vector<1x256xf32>
    %605 = arith.mulf %604, %32 : vector<1x256xf32>
    %606 = arith.addf %580, %605 : vector<1x256xf32>
    %c0_373 = arith.constant 0 : index
    %607 = memref.load %arg9[%c0_373] : memref<4xf32, #tpu.memory_space<smem>>
    %608 = vector.broadcast %607 : f32 to vector<1x256xf32>
    %609 = arith.addf %606, %608 : vector<1x256xf32>
    %c1_374 = arith.constant 1 : index
    %c94_375 = arith.constant 94 : index
    %610 = vector.load %arg11[%c1_374, %c94_375] : memref<4x512xf32, #tpu.memory_space<vmem>>, vector<1x256xf32>
    %c1_376 = arith.constant 1 : index
    %c0_377 = arith.constant 0 : index
    %611 = memref.load %arg8[%c1_376, %c0_377] : memref<4x25xf32, #tpu.memory_space<smem>>
    %612 = vector.broadcast %611 : f32 to vector<1x256xf32>
    %613 = arith.mulf %612, %610 : vector<1x256xf32>
    %c1_378 = arith.constant 1 : index
    %c110_379 = arith.constant 110 : index
    %614 = vector.load %arg11[%c1_378, %c110_379] : memref<4x512xf32, #tpu.memory_space<vmem>>, vector<1x256xf32>
    %c1_380 = arith.constant 1 : index
    %c5_381 = arith.constant 5 : index
    %615 = memref.load %arg8[%c1_380, %c5_381] : memref<4x25xf32, #tpu.memory_space<smem>>
    %616 = vector.broadcast %615 : f32 to vector<1x256xf32>
    %617 = arith.mulf %616, %614 : vector<1x256xf32>
    %618 = arith.addf %613, %617 : vector<1x256xf32>
    %c1_382 = arith.constant 1 : index
    %c126_383 = arith.constant 126 : index
    %619 = vector.load %arg11[%c1_382, %c126_383] : memref<4x512xf32, #tpu.memory_space<vmem>>, vector<1x256xf32>
    %c1_384 = arith.constant 1 : index
    %c10_385 = arith.constant 10 : index
    %620 = memref.load %arg8[%c1_384, %c10_385] : memref<4x25xf32, #tpu.memory_space<smem>>
    %621 = vector.broadcast %620 : f32 to vector<1x256xf32>
    %622 = arith.mulf %621, %619 : vector<1x256xf32>
    %623 = arith.addf %618, %622 : vector<1x256xf32>
    %c1_386 = arith.constant 1 : index
    %c142_387 = arith.constant 142 : index
    %624 = vector.load %arg11[%c1_386, %c142_387] : memref<4x512xf32, #tpu.memory_space<vmem>>, vector<1x256xf32>
    %c1_388 = arith.constant 1 : index
    %c15_389 = arith.constant 15 : index
    %625 = memref.load %arg8[%c1_388, %c15_389] : memref<4x25xf32, #tpu.memory_space<smem>>
    %626 = vector.broadcast %625 : f32 to vector<1x256xf32>
    %627 = arith.mulf %626, %624 : vector<1x256xf32>
    %628 = arith.addf %623, %627 : vector<1x256xf32>
    %c1_390 = arith.constant 1 : index
    %c158_391 = arith.constant 158 : index
    %629 = vector.load %arg11[%c1_390, %c158_391] : memref<4x512xf32, #tpu.memory_space<vmem>>, vector<1x256xf32>
    %c1_392 = arith.constant 1 : index
    %c20_393 = arith.constant 20 : index
    %630 = memref.load %arg8[%c1_392, %c20_393] : memref<4x25xf32, #tpu.memory_space<smem>>
    %631 = vector.broadcast %630 : f32 to vector<1x256xf32>
    %632 = arith.mulf %631, %629 : vector<1x256xf32>
    %633 = arith.addf %628, %632 : vector<1x256xf32>
    %634 = arith.mulf %633, %29 : vector<1x256xf32>
    %c1_394 = arith.constant 1 : index
    %c95_395 = arith.constant 95 : index
    %635 = vector.load %arg11[%c1_394, %c95_395] : memref<4x512xf32, #tpu.memory_space<vmem>>, vector<1x256xf32>
    %c1_396 = arith.constant 1 : index
    %c1_397 = arith.constant 1 : index
    %636 = memref.load %arg8[%c1_396, %c1_397] : memref<4x25xf32, #tpu.memory_space<smem>>
    %637 = vector.broadcast %636 : f32 to vector<1x256xf32>
    %638 = arith.mulf %637, %635 : vector<1x256xf32>
    %c1_398 = arith.constant 1 : index
    %c111_399 = arith.constant 111 : index
    %639 = vector.load %arg11[%c1_398, %c111_399] : memref<4x512xf32, #tpu.memory_space<vmem>>, vector<1x256xf32>
    %c1_400 = arith.constant 1 : index
    %c6_401 = arith.constant 6 : index
    %640 = memref.load %arg8[%c1_400, %c6_401] : memref<4x25xf32, #tpu.memory_space<smem>>
    %641 = vector.broadcast %640 : f32 to vector<1x256xf32>
    %642 = arith.mulf %641, %639 : vector<1x256xf32>
    %643 = arith.addf %638, %642 : vector<1x256xf32>
    %c1_402 = arith.constant 1 : index
    %c127_403 = arith.constant 127 : index
    %644 = vector.load %arg11[%c1_402, %c127_403] : memref<4x512xf32, #tpu.memory_space<vmem>>, vector<1x256xf32>
    %c1_404 = arith.constant 1 : index
    %c11_405 = arith.constant 11 : index
    %645 = memref.load %arg8[%c1_404, %c11_405] : memref<4x25xf32, #tpu.memory_space<smem>>
    %646 = vector.broadcast %645 : f32 to vector<1x256xf32>
    %647 = arith.mulf %646, %644 : vector<1x256xf32>
    %648 = arith.addf %643, %647 : vector<1x256xf32>
    %c1_406 = arith.constant 1 : index
    %c143_407 = arith.constant 143 : index
    %649 = vector.load %arg11[%c1_406, %c143_407] : memref<4x512xf32, #tpu.memory_space<vmem>>, vector<1x256xf32>
    %c1_408 = arith.constant 1 : index
    %c16_409 = arith.constant 16 : index
    %650 = memref.load %arg8[%c1_408, %c16_409] : memref<4x25xf32, #tpu.memory_space<smem>>
    %651 = vector.broadcast %650 : f32 to vector<1x256xf32>
    %652 = arith.mulf %651, %649 : vector<1x256xf32>
    %653 = arith.addf %648, %652 : vector<1x256xf32>
    %c1_410 = arith.constant 1 : index
    %c159_411 = arith.constant 159 : index
    %654 = vector.load %arg11[%c1_410, %c159_411] : memref<4x512xf32, #tpu.memory_space<vmem>>, vector<1x256xf32>
    %c1_412 = arith.constant 1 : index
    %c21_413 = arith.constant 21 : index
    %655 = memref.load %arg8[%c1_412, %c21_413] : memref<4x25xf32, #tpu.memory_space<smem>>
    %656 = vector.broadcast %655 : f32 to vector<1x256xf32>
    %657 = arith.mulf %656, %654 : vector<1x256xf32>
    %658 = arith.addf %653, %657 : vector<1x256xf32>
    %659 = arith.mulf %658, %30 : vector<1x256xf32>
    %660 = arith.addf %634, %659 : vector<1x256xf32>
    %c1_414 = arith.constant 1 : index
    %c96_415 = arith.constant 96 : index
    %661 = vector.load %arg11[%c1_414, %c96_415] : memref<4x512xf32, #tpu.memory_space<vmem>>, vector<1x256xf32>
    %c1_416 = arith.constant 1 : index
    %c2_417 = arith.constant 2 : index
    %662 = memref.load %arg8[%c1_416, %c2_417] : memref<4x25xf32, #tpu.memory_space<smem>>
    %663 = vector.broadcast %662 : f32 to vector<1x256xf32>
    %664 = arith.mulf %663, %661 : vector<1x256xf32>
    %c1_418 = arith.constant 1 : index
    %c112_419 = arith.constant 112 : index
    %665 = vector.load %arg11[%c1_418, %c112_419] : memref<4x512xf32, #tpu.memory_space<vmem>>, vector<1x256xf32>
    %c1_420 = arith.constant 1 : index
    %c7_421 = arith.constant 7 : index
    %666 = memref.load %arg8[%c1_420, %c7_421] : memref<4x25xf32, #tpu.memory_space<smem>>
    %667 = vector.broadcast %666 : f32 to vector<1x256xf32>
    %668 = arith.mulf %667, %665 : vector<1x256xf32>
    %669 = arith.addf %664, %668 : vector<1x256xf32>
    %c1_422 = arith.constant 1 : index
    %c128_423 = arith.constant 128 : index
    %670 = vector.load %arg11[%c1_422, %c128_423] : memref<4x512xf32, #tpu.memory_space<vmem>>, vector<1x256xf32>
    %c1_424 = arith.constant 1 : index
    %c12_425 = arith.constant 12 : index
    %671 = memref.load %arg8[%c1_424, %c12_425] : memref<4x25xf32, #tpu.memory_space<smem>>
    %672 = vector.broadcast %671 : f32 to vector<1x256xf32>
    %673 = arith.mulf %672, %670 : vector<1x256xf32>
    %674 = arith.addf %669, %673 : vector<1x256xf32>
    %c1_426 = arith.constant 1 : index
    %c144_427 = arith.constant 144 : index
    %675 = vector.load %arg11[%c1_426, %c144_427] : memref<4x512xf32, #tpu.memory_space<vmem>>, vector<1x256xf32>
    %c1_428 = arith.constant 1 : index
    %c17_429 = arith.constant 17 : index
    %676 = memref.load %arg8[%c1_428, %c17_429] : memref<4x25xf32, #tpu.memory_space<smem>>
    %677 = vector.broadcast %676 : f32 to vector<1x256xf32>
    %678 = arith.mulf %677, %675 : vector<1x256xf32>
    %679 = arith.addf %674, %678 : vector<1x256xf32>
    %c1_430 = arith.constant 1 : index
    %c160_431 = arith.constant 160 : index
    %680 = vector.load %arg11[%c1_430, %c160_431] : memref<4x512xf32, #tpu.memory_space<vmem>>, vector<1x256xf32>
    %c1_432 = arith.constant 1 : index
    %c22_433 = arith.constant 22 : index
    %681 = memref.load %arg8[%c1_432, %c22_433] : memref<4x25xf32, #tpu.memory_space<smem>>
    %682 = vector.broadcast %681 : f32 to vector<1x256xf32>
    %683 = arith.mulf %682, %680 : vector<1x256xf32>
    %684 = arith.addf %679, %683 : vector<1x256xf32>
    %685 = arith.addf %660, %684 : vector<1x256xf32>
    %c1_434 = arith.constant 1 : index
    %c97_435 = arith.constant 97 : index
    %686 = vector.load %arg11[%c1_434, %c97_435] : memref<4x512xf32, #tpu.memory_space<vmem>>, vector<1x256xf32>
    %c1_436 = arith.constant 1 : index
    %c3_437 = arith.constant 3 : index
    %687 = memref.load %arg8[%c1_436, %c3_437] : memref<4x25xf32, #tpu.memory_space<smem>>
    %688 = vector.broadcast %687 : f32 to vector<1x256xf32>
    %689 = arith.mulf %688, %686 : vector<1x256xf32>
    %c1_438 = arith.constant 1 : index
    %c113_439 = arith.constant 113 : index
    %690 = vector.load %arg11[%c1_438, %c113_439] : memref<4x512xf32, #tpu.memory_space<vmem>>, vector<1x256xf32>
    %c1_440 = arith.constant 1 : index
    %c8_441 = arith.constant 8 : index
    %691 = memref.load %arg8[%c1_440, %c8_441] : memref<4x25xf32, #tpu.memory_space<smem>>
    %692 = vector.broadcast %691 : f32 to vector<1x256xf32>
    %693 = arith.mulf %692, %690 : vector<1x256xf32>
    %694 = arith.addf %689, %693 : vector<1x256xf32>
    %c1_442 = arith.constant 1 : index
    %c129_443 = arith.constant 129 : index
    %695 = vector.load %arg11[%c1_442, %c129_443] : memref<4x512xf32, #tpu.memory_space<vmem>>, vector<1x256xf32>
    %c1_444 = arith.constant 1 : index
    %c13_445 = arith.constant 13 : index
    %696 = memref.load %arg8[%c1_444, %c13_445] : memref<4x25xf32, #tpu.memory_space<smem>>
    %697 = vector.broadcast %696 : f32 to vector<1x256xf32>
    %698 = arith.mulf %697, %695 : vector<1x256xf32>
    %699 = arith.addf %694, %698 : vector<1x256xf32>
    %c1_446 = arith.constant 1 : index
    %c145_447 = arith.constant 145 : index
    %700 = vector.load %arg11[%c1_446, %c145_447] : memref<4x512xf32, #tpu.memory_space<vmem>>, vector<1x256xf32>
    %c1_448 = arith.constant 1 : index
    %c18_449 = arith.constant 18 : index
    %701 = memref.load %arg8[%c1_448, %c18_449] : memref<4x25xf32, #tpu.memory_space<smem>>
    %702 = vector.broadcast %701 : f32 to vector<1x256xf32>
    %703 = arith.mulf %702, %700 : vector<1x256xf32>
    %704 = arith.addf %699, %703 : vector<1x256xf32>
    %c1_450 = arith.constant 1 : index
    %c161_451 = arith.constant 161 : index
    %705 = vector.load %arg11[%c1_450, %c161_451] : memref<4x512xf32, #tpu.memory_space<vmem>>, vector<1x256xf32>
    %c1_452 = arith.constant 1 : index
    %c23_453 = arith.constant 23 : index
    %706 = memref.load %arg8[%c1_452, %c23_453] : memref<4x25xf32, #tpu.memory_space<smem>>
    %707 = vector.broadcast %706 : f32 to vector<1x256xf32>
    %708 = arith.mulf %707, %705 : vector<1x256xf32>
    %709 = arith.addf %704, %708 : vector<1x256xf32>
    %710 = arith.mulf %709, %31 : vector<1x256xf32>
    %711 = arith.addf %685, %710 : vector<1x256xf32>
    %c1_454 = arith.constant 1 : index
    %c98_455 = arith.constant 98 : index
    %712 = vector.load %arg11[%c1_454, %c98_455] : memref<4x512xf32, #tpu.memory_space<vmem>>, vector<1x256xf32>
    %c1_456 = arith.constant 1 : index
    %c4_457 = arith.constant 4 : index
    %713 = memref.load %arg8[%c1_456, %c4_457] : memref<4x25xf32, #tpu.memory_space<smem>>
    %714 = vector.broadcast %713 : f32 to vector<1x256xf32>
    %715 = arith.mulf %714, %712 : vector<1x256xf32>
    %c1_458 = arith.constant 1 : index
    %c114_459 = arith.constant 114 : index
    %716 = vector.load %arg11[%c1_458, %c114_459] : memref<4x512xf32, #tpu.memory_space<vmem>>, vector<1x256xf32>
    %c1_460 = arith.constant 1 : index
    %c9_461 = arith.constant 9 : index
    %717 = memref.load %arg8[%c1_460, %c9_461] : memref<4x25xf32, #tpu.memory_space<smem>>
    %718 = vector.broadcast %717 : f32 to vector<1x256xf32>
    %719 = arith.mulf %718, %716 : vector<1x256xf32>
    %720 = arith.addf %715, %719 : vector<1x256xf32>
    %c1_462 = arith.constant 1 : index
    %c130_463 = arith.constant 130 : index
    %721 = vector.load %arg11[%c1_462, %c130_463] : memref<4x512xf32, #tpu.memory_space<vmem>>, vector<1x256xf32>
    %c1_464 = arith.constant 1 : index
    %c14_465 = arith.constant 14 : index
    %722 = memref.load %arg8[%c1_464, %c14_465] : memref<4x25xf32, #tpu.memory_space<smem>>
    %723 = vector.broadcast %722 : f32 to vector<1x256xf32>
    %724 = arith.mulf %723, %721 : vector<1x256xf32>
    %725 = arith.addf %720, %724 : vector<1x256xf32>
    %c1_466 = arith.constant 1 : index
    %c146_467 = arith.constant 146 : index
    %726 = vector.load %arg11[%c1_466, %c146_467] : memref<4x512xf32, #tpu.memory_space<vmem>>, vector<1x256xf32>
    %c1_468 = arith.constant 1 : index
    %c19_469 = arith.constant 19 : index
    %727 = memref.load %arg8[%c1_468, %c19_469] : memref<4x25xf32, #tpu.memory_space<smem>>
    %728 = vector.broadcast %727 : f32 to vector<1x256xf32>
    %729 = arith.mulf %728, %726 : vector<1x256xf32>
    %730 = arith.addf %725, %729 : vector<1x256xf32>
    %c1_470 = arith.constant 1 : index
    %c162_471 = arith.constant 162 : index
    %731 = vector.load %arg11[%c1_470, %c162_471] : memref<4x512xf32, #tpu.memory_space<vmem>>, vector<1x256xf32>
    %c1_472 = arith.constant 1 : index
    %c24_473 = arith.constant 24 : index
    %732 = memref.load %arg8[%c1_472, %c24_473] : memref<4x25xf32, #tpu.memory_space<smem>>
    %733 = vector.broadcast %732 : f32 to vector<1x256xf32>
    %734 = arith.mulf %733, %731 : vector<1x256xf32>
    %735 = arith.addf %730, %734 : vector<1x256xf32>
    %736 = arith.mulf %735, %32 : vector<1x256xf32>
    %737 = arith.addf %711, %736 : vector<1x256xf32>
    %c1_474 = arith.constant 1 : index
    %738 = memref.load %arg9[%c1_474] : memref<4xf32, #tpu.memory_space<smem>>
    %739 = vector.broadcast %738 : f32 to vector<1x256xf32>
    %740 = arith.addf %737, %739 : vector<1x256xf32>
    %c2_475 = arith.constant 2 : index
    %c94_476 = arith.constant 94 : index
    %741 = vector.load %arg11[%c2_475, %c94_476] : memref<4x512xf32, #tpu.memory_space<vmem>>, vector<1x256xf32>
    %c2_477 = arith.constant 2 : index
    %c0_478 = arith.constant 0 : index
    %742 = memref.load %arg8[%c2_477, %c0_478] : memref<4x25xf32, #tpu.memory_space<smem>>
    %743 = vector.broadcast %742 : f32 to vector<1x256xf32>
    %744 = arith.mulf %743, %741 : vector<1x256xf32>
    %c2_479 = arith.constant 2 : index
    %c110_480 = arith.constant 110 : index
    %745 = vector.load %arg11[%c2_479, %c110_480] : memref<4x512xf32, #tpu.memory_space<vmem>>, vector<1x256xf32>
    %c2_481 = arith.constant 2 : index
    %c5_482 = arith.constant 5 : index
    %746 = memref.load %arg8[%c2_481, %c5_482] : memref<4x25xf32, #tpu.memory_space<smem>>
    %747 = vector.broadcast %746 : f32 to vector<1x256xf32>
    %748 = arith.mulf %747, %745 : vector<1x256xf32>
    %749 = arith.addf %744, %748 : vector<1x256xf32>
    %c2_483 = arith.constant 2 : index
    %c126_484 = arith.constant 126 : index
    %750 = vector.load %arg11[%c2_483, %c126_484] : memref<4x512xf32, #tpu.memory_space<vmem>>, vector<1x256xf32>
    %c2_485 = arith.constant 2 : index
    %c10_486 = arith.constant 10 : index
    %751 = memref.load %arg8[%c2_485, %c10_486] : memref<4x25xf32, #tpu.memory_space<smem>>
    %752 = vector.broadcast %751 : f32 to vector<1x256xf32>
    %753 = arith.mulf %752, %750 : vector<1x256xf32>
    %754 = arith.addf %749, %753 : vector<1x256xf32>
    %c2_487 = arith.constant 2 : index
    %c142_488 = arith.constant 142 : index
    %755 = vector.load %arg11[%c2_487, %c142_488] : memref<4x512xf32, #tpu.memory_space<vmem>>, vector<1x256xf32>
    %c2_489 = arith.constant 2 : index
    %c15_490 = arith.constant 15 : index
    %756 = memref.load %arg8[%c2_489, %c15_490] : memref<4x25xf32, #tpu.memory_space<smem>>
    %757 = vector.broadcast %756 : f32 to vector<1x256xf32>
    %758 = arith.mulf %757, %755 : vector<1x256xf32>
    %759 = arith.addf %754, %758 : vector<1x256xf32>
    %c2_491 = arith.constant 2 : index
    %c158_492 = arith.constant 158 : index
    %760 = vector.load %arg11[%c2_491, %c158_492] : memref<4x512xf32, #tpu.memory_space<vmem>>, vector<1x256xf32>
    %c2_493 = arith.constant 2 : index
    %c20_494 = arith.constant 20 : index
    %761 = memref.load %arg8[%c2_493, %c20_494] : memref<4x25xf32, #tpu.memory_space<smem>>
    %762 = vector.broadcast %761 : f32 to vector<1x256xf32>
    %763 = arith.mulf %762, %760 : vector<1x256xf32>
    %764 = arith.addf %759, %763 : vector<1x256xf32>
    %765 = arith.mulf %764, %29 : vector<1x256xf32>
    %c2_495 = arith.constant 2 : index
    %c95_496 = arith.constant 95 : index
    %766 = vector.load %arg11[%c2_495, %c95_496] : memref<4x512xf32, #tpu.memory_space<vmem>>, vector<1x256xf32>
    %c2_497 = arith.constant 2 : index
    %c1_498 = arith.constant 1 : index
    %767 = memref.load %arg8[%c2_497, %c1_498] : memref<4x25xf32, #tpu.memory_space<smem>>
    %768 = vector.broadcast %767 : f32 to vector<1x256xf32>
    %769 = arith.mulf %768, %766 : vector<1x256xf32>
    %c2_499 = arith.constant 2 : index
    %c111_500 = arith.constant 111 : index
    %770 = vector.load %arg11[%c2_499, %c111_500] : memref<4x512xf32, #tpu.memory_space<vmem>>, vector<1x256xf32>
    %c2_501 = arith.constant 2 : index
    %c6_502 = arith.constant 6 : index
    %771 = memref.load %arg8[%c2_501, %c6_502] : memref<4x25xf32, #tpu.memory_space<smem>>
    %772 = vector.broadcast %771 : f32 to vector<1x256xf32>
    %773 = arith.mulf %772, %770 : vector<1x256xf32>
    %774 = arith.addf %769, %773 : vector<1x256xf32>
    %c2_503 = arith.constant 2 : index
    %c127_504 = arith.constant 127 : index
    %775 = vector.load %arg11[%c2_503, %c127_504] : memref<4x512xf32, #tpu.memory_space<vmem>>, vector<1x256xf32>
    %c2_505 = arith.constant 2 : index
    %c11_506 = arith.constant 11 : index
    %776 = memref.load %arg8[%c2_505, %c11_506] : memref<4x25xf32, #tpu.memory_space<smem>>
    %777 = vector.broadcast %776 : f32 to vector<1x256xf32>
    %778 = arith.mulf %777, %775 : vector<1x256xf32>
    %779 = arith.addf %774, %778 : vector<1x256xf32>
    %c2_507 = arith.constant 2 : index
    %c143_508 = arith.constant 143 : index
    %780 = vector.load %arg11[%c2_507, %c143_508] : memref<4x512xf32, #tpu.memory_space<vmem>>, vector<1x256xf32>
    %c2_509 = arith.constant 2 : index
    %c16_510 = arith.constant 16 : index
    %781 = memref.load %arg8[%c2_509, %c16_510] : memref<4x25xf32, #tpu.memory_space<smem>>
    %782 = vector.broadcast %781 : f32 to vector<1x256xf32>
    %783 = arith.mulf %782, %780 : vector<1x256xf32>
    %784 = arith.addf %779, %783 : vector<1x256xf32>
    %c2_511 = arith.constant 2 : index
    %c159_512 = arith.constant 159 : index
    %785 = vector.load %arg11[%c2_511, %c159_512] : memref<4x512xf32, #tpu.memory_space<vmem>>, vector<1x256xf32>
    %c2_513 = arith.constant 2 : index
    %c21_514 = arith.constant 21 : index
    %786 = memref.load %arg8[%c2_513, %c21_514] : memref<4x25xf32, #tpu.memory_space<smem>>
    %787 = vector.broadcast %786 : f32 to vector<1x256xf32>
    %788 = arith.mulf %787, %785 : vector<1x256xf32>
    %789 = arith.addf %784, %788 : vector<1x256xf32>
    %790 = arith.mulf %789, %30 : vector<1x256xf32>
    %791 = arith.addf %765, %790 : vector<1x256xf32>
    %c2_515 = arith.constant 2 : index
    %c96_516 = arith.constant 96 : index
    %792 = vector.load %arg11[%c2_515, %c96_516] : memref<4x512xf32, #tpu.memory_space<vmem>>, vector<1x256xf32>
    %c2_517 = arith.constant 2 : index
    %c2_518 = arith.constant 2 : index
    %793 = memref.load %arg8[%c2_517, %c2_518] : memref<4x25xf32, #tpu.memory_space<smem>>
    %794 = vector.broadcast %793 : f32 to vector<1x256xf32>
    %795 = arith.mulf %794, %792 : vector<1x256xf32>
    %c2_519 = arith.constant 2 : index
    %c112_520 = arith.constant 112 : index
    %796 = vector.load %arg11[%c2_519, %c112_520] : memref<4x512xf32, #tpu.memory_space<vmem>>, vector<1x256xf32>
    %c2_521 = arith.constant 2 : index
    %c7_522 = arith.constant 7 : index
    %797 = memref.load %arg8[%c2_521, %c7_522] : memref<4x25xf32, #tpu.memory_space<smem>>
    %798 = vector.broadcast %797 : f32 to vector<1x256xf32>
    %799 = arith.mulf %798, %796 : vector<1x256xf32>
    %800 = arith.addf %795, %799 : vector<1x256xf32>
    %c2_523 = arith.constant 2 : index
    %c128_524 = arith.constant 128 : index
    %801 = vector.load %arg11[%c2_523, %c128_524] : memref<4x512xf32, #tpu.memory_space<vmem>>, vector<1x256xf32>
    %c2_525 = arith.constant 2 : index
    %c12_526 = arith.constant 12 : index
    %802 = memref.load %arg8[%c2_525, %c12_526] : memref<4x25xf32, #tpu.memory_space<smem>>
    %803 = vector.broadcast %802 : f32 to vector<1x256xf32>
    %804 = arith.mulf %803, %801 : vector<1x256xf32>
    %805 = arith.addf %800, %804 : vector<1x256xf32>
    %c2_527 = arith.constant 2 : index
    %c144_528 = arith.constant 144 : index
    %806 = vector.load %arg11[%c2_527, %c144_528] : memref<4x512xf32, #tpu.memory_space<vmem>>, vector<1x256xf32>
    %c2_529 = arith.constant 2 : index
    %c17_530 = arith.constant 17 : index
    %807 = memref.load %arg8[%c2_529, %c17_530] : memref<4x25xf32, #tpu.memory_space<smem>>
    %808 = vector.broadcast %807 : f32 to vector<1x256xf32>
    %809 = arith.mulf %808, %806 : vector<1x256xf32>
    %810 = arith.addf %805, %809 : vector<1x256xf32>
    %c2_531 = arith.constant 2 : index
    %c160_532 = arith.constant 160 : index
    %811 = vector.load %arg11[%c2_531, %c160_532] : memref<4x512xf32, #tpu.memory_space<vmem>>, vector<1x256xf32>
    %c2_533 = arith.constant 2 : index
    %c22_534 = arith.constant 22 : index
    %812 = memref.load %arg8[%c2_533, %c22_534] : memref<4x25xf32, #tpu.memory_space<smem>>
    %813 = vector.broadcast %812 : f32 to vector<1x256xf32>
    %814 = arith.mulf %813, %811 : vector<1x256xf32>
    %815 = arith.addf %810, %814 : vector<1x256xf32>
    %816 = arith.addf %791, %815 : vector<1x256xf32>
    %c2_535 = arith.constant 2 : index
    %c97_536 = arith.constant 97 : index
    %817 = vector.load %arg11[%c2_535, %c97_536] : memref<4x512xf32, #tpu.memory_space<vmem>>, vector<1x256xf32>
    %c2_537 = arith.constant 2 : index
    %c3_538 = arith.constant 3 : index
    %818 = memref.load %arg8[%c2_537, %c3_538] : memref<4x25xf32, #tpu.memory_space<smem>>
    %819 = vector.broadcast %818 : f32 to vector<1x256xf32>
    %820 = arith.mulf %819, %817 : vector<1x256xf32>
    %c2_539 = arith.constant 2 : index
    %c113_540 = arith.constant 113 : index
    %821 = vector.load %arg11[%c2_539, %c113_540] : memref<4x512xf32, #tpu.memory_space<vmem>>, vector<1x256xf32>
    %c2_541 = arith.constant 2 : index
    %c8_542 = arith.constant 8 : index
    %822 = memref.load %arg8[%c2_541, %c8_542] : memref<4x25xf32, #tpu.memory_space<smem>>
    %823 = vector.broadcast %822 : f32 to vector<1x256xf32>
    %824 = arith.mulf %823, %821 : vector<1x256xf32>
    %825 = arith.addf %820, %824 : vector<1x256xf32>
    %c2_543 = arith.constant 2 : index
    %c129_544 = arith.constant 129 : index
    %826 = vector.load %arg11[%c2_543, %c129_544] : memref<4x512xf32, #tpu.memory_space<vmem>>, vector<1x256xf32>
    %c2_545 = arith.constant 2 : index
    %c13_546 = arith.constant 13 : index
    %827 = memref.load %arg8[%c2_545, %c13_546] : memref<4x25xf32, #tpu.memory_space<smem>>
    %828 = vector.broadcast %827 : f32 to vector<1x256xf32>
    %829 = arith.mulf %828, %826 : vector<1x256xf32>
    %830 = arith.addf %825, %829 : vector<1x256xf32>
    %c2_547 = arith.constant 2 : index
    %c145_548 = arith.constant 145 : index
    %831 = vector.load %arg11[%c2_547, %c145_548] : memref<4x512xf32, #tpu.memory_space<vmem>>, vector<1x256xf32>
    %c2_549 = arith.constant 2 : index
    %c18_550 = arith.constant 18 : index
    %832 = memref.load %arg8[%c2_549, %c18_550] : memref<4x25xf32, #tpu.memory_space<smem>>
    %833 = vector.broadcast %832 : f32 to vector<1x256xf32>
    %834 = arith.mulf %833, %831 : vector<1x256xf32>
    %835 = arith.addf %830, %834 : vector<1x256xf32>
    %c2_551 = arith.constant 2 : index
    %c161_552 = arith.constant 161 : index
    %836 = vector.load %arg11[%c2_551, %c161_552] : memref<4x512xf32, #tpu.memory_space<vmem>>, vector<1x256xf32>
    %c2_553 = arith.constant 2 : index
    %c23_554 = arith.constant 23 : index
    %837 = memref.load %arg8[%c2_553, %c23_554] : memref<4x25xf32, #tpu.memory_space<smem>>
    %838 = vector.broadcast %837 : f32 to vector<1x256xf32>
    %839 = arith.mulf %838, %836 : vector<1x256xf32>
    %840 = arith.addf %835, %839 : vector<1x256xf32>
    %841 = arith.mulf %840, %31 : vector<1x256xf32>
    %842 = arith.addf %816, %841 : vector<1x256xf32>
    %c2_555 = arith.constant 2 : index
    %c98_556 = arith.constant 98 : index
    %843 = vector.load %arg11[%c2_555, %c98_556] : memref<4x512xf32, #tpu.memory_space<vmem>>, vector<1x256xf32>
    %c2_557 = arith.constant 2 : index
    %c4_558 = arith.constant 4 : index
    %844 = memref.load %arg8[%c2_557, %c4_558] : memref<4x25xf32, #tpu.memory_space<smem>>
    %845 = vector.broadcast %844 : f32 to vector<1x256xf32>
    %846 = arith.mulf %845, %843 : vector<1x256xf32>
    %c2_559 = arith.constant 2 : index
    %c114_560 = arith.constant 114 : index
    %847 = vector.load %arg11[%c2_559, %c114_560] : memref<4x512xf32, #tpu.memory_space<vmem>>, vector<1x256xf32>
    %c2_561 = arith.constant 2 : index
    %c9_562 = arith.constant 9 : index
    %848 = memref.load %arg8[%c2_561, %c9_562] : memref<4x25xf32, #tpu.memory_space<smem>>
    %849 = vector.broadcast %848 : f32 to vector<1x256xf32>
    %850 = arith.mulf %849, %847 : vector<1x256xf32>
    %851 = arith.addf %846, %850 : vector<1x256xf32>
    %c2_563 = arith.constant 2 : index
    %c130_564 = arith.constant 130 : index
    %852 = vector.load %arg11[%c2_563, %c130_564] : memref<4x512xf32, #tpu.memory_space<vmem>>, vector<1x256xf32>
    %c2_565 = arith.constant 2 : index
    %c14_566 = arith.constant 14 : index
    %853 = memref.load %arg8[%c2_565, %c14_566] : memref<4x25xf32, #tpu.memory_space<smem>>
    %854 = vector.broadcast %853 : f32 to vector<1x256xf32>
    %855 = arith.mulf %854, %852 : vector<1x256xf32>
    %856 = arith.addf %851, %855 : vector<1x256xf32>
    %c2_567 = arith.constant 2 : index
    %c146_568 = arith.constant 146 : index
    %857 = vector.load %arg11[%c2_567, %c146_568] : memref<4x512xf32, #tpu.memory_space<vmem>>, vector<1x256xf32>
    %c2_569 = arith.constant 2 : index
    %c19_570 = arith.constant 19 : index
    %858 = memref.load %arg8[%c2_569, %c19_570] : memref<4x25xf32, #tpu.memory_space<smem>>
    %859 = vector.broadcast %858 : f32 to vector<1x256xf32>
    %860 = arith.mulf %859, %857 : vector<1x256xf32>
    %861 = arith.addf %856, %860 : vector<1x256xf32>
    %c2_571 = arith.constant 2 : index
    %c162_572 = arith.constant 162 : index
    %862 = vector.load %arg11[%c2_571, %c162_572] : memref<4x512xf32, #tpu.memory_space<vmem>>, vector<1x256xf32>
    %c2_573 = arith.constant 2 : index
    %c24_574 = arith.constant 24 : index
    %863 = memref.load %arg8[%c2_573, %c24_574] : memref<4x25xf32, #tpu.memory_space<smem>>
    %864 = vector.broadcast %863 : f32 to vector<1x256xf32>
    %865 = arith.mulf %864, %862 : vector<1x256xf32>
    %866 = arith.addf %861, %865 : vector<1x256xf32>
    %867 = arith.mulf %866, %32 : vector<1x256xf32>
    %868 = arith.addf %842, %867 : vector<1x256xf32>
    %c2_575 = arith.constant 2 : index
    %869 = memref.load %arg9[%c2_575] : memref<4xf32, #tpu.memory_space<smem>>
    %870 = vector.broadcast %869 : f32 to vector<1x256xf32>
    %871 = arith.addf %868, %870 : vector<1x256xf32>
    %c3_576 = arith.constant 3 : index
    %c94_577 = arith.constant 94 : index
    %872 = vector.load %arg11[%c3_576, %c94_577] : memref<4x512xf32, #tpu.memory_space<vmem>>, vector<1x256xf32>
    %c3_578 = arith.constant 3 : index
    %c0_579 = arith.constant 0 : index
    %873 = memref.load %arg8[%c3_578, %c0_579] : memref<4x25xf32, #tpu.memory_space<smem>>
    %874 = vector.broadcast %873 : f32 to vector<1x256xf32>
    %875 = arith.mulf %874, %872 : vector<1x256xf32>
    %c3_580 = arith.constant 3 : index
    %c110_581 = arith.constant 110 : index
    %876 = vector.load %arg11[%c3_580, %c110_581] : memref<4x512xf32, #tpu.memory_space<vmem>>, vector<1x256xf32>
    %c3_582 = arith.constant 3 : index
    %c5_583 = arith.constant 5 : index
    %877 = memref.load %arg8[%c3_582, %c5_583] : memref<4x25xf32, #tpu.memory_space<smem>>
    %878 = vector.broadcast %877 : f32 to vector<1x256xf32>
    %879 = arith.mulf %878, %876 : vector<1x256xf32>
    %880 = arith.addf %875, %879 : vector<1x256xf32>
    %c3_584 = arith.constant 3 : index
    %c126_585 = arith.constant 126 : index
    %881 = vector.load %arg11[%c3_584, %c126_585] : memref<4x512xf32, #tpu.memory_space<vmem>>, vector<1x256xf32>
    %c3_586 = arith.constant 3 : index
    %c10_587 = arith.constant 10 : index
    %882 = memref.load %arg8[%c3_586, %c10_587] : memref<4x25xf32, #tpu.memory_space<smem>>
    %883 = vector.broadcast %882 : f32 to vector<1x256xf32>
    %884 = arith.mulf %883, %881 : vector<1x256xf32>
    %885 = arith.addf %880, %884 : vector<1x256xf32>
    %c3_588 = arith.constant 3 : index
    %c142_589 = arith.constant 142 : index
    %886 = vector.load %arg11[%c3_588, %c142_589] : memref<4x512xf32, #tpu.memory_space<vmem>>, vector<1x256xf32>
    %c3_590 = arith.constant 3 : index
    %c15_591 = arith.constant 15 : index
    %887 = memref.load %arg8[%c3_590, %c15_591] : memref<4x25xf32, #tpu.memory_space<smem>>
    %888 = vector.broadcast %887 : f32 to vector<1x256xf32>
    %889 = arith.mulf %888, %886 : vector<1x256xf32>
    %890 = arith.addf %885, %889 : vector<1x256xf32>
    %c3_592 = arith.constant 3 : index
    %c158_593 = arith.constant 158 : index
    %891 = vector.load %arg11[%c3_592, %c158_593] : memref<4x512xf32, #tpu.memory_space<vmem>>, vector<1x256xf32>
    %c3_594 = arith.constant 3 : index
    %c20_595 = arith.constant 20 : index
    %892 = memref.load %arg8[%c3_594, %c20_595] : memref<4x25xf32, #tpu.memory_space<smem>>
    %893 = vector.broadcast %892 : f32 to vector<1x256xf32>
    %894 = arith.mulf %893, %891 : vector<1x256xf32>
    %895 = arith.addf %890, %894 : vector<1x256xf32>
    %896 = arith.mulf %895, %29 : vector<1x256xf32>
    %c3_596 = arith.constant 3 : index
    %c95_597 = arith.constant 95 : index
    %897 = vector.load %arg11[%c3_596, %c95_597] : memref<4x512xf32, #tpu.memory_space<vmem>>, vector<1x256xf32>
    %c3_598 = arith.constant 3 : index
    %c1_599 = arith.constant 1 : index
    %898 = memref.load %arg8[%c3_598, %c1_599] : memref<4x25xf32, #tpu.memory_space<smem>>
    %899 = vector.broadcast %898 : f32 to vector<1x256xf32>
    %900 = arith.mulf %899, %897 : vector<1x256xf32>
    %c3_600 = arith.constant 3 : index
    %c111_601 = arith.constant 111 : index
    %901 = vector.load %arg11[%c3_600, %c111_601] : memref<4x512xf32, #tpu.memory_space<vmem>>, vector<1x256xf32>
    %c3_602 = arith.constant 3 : index
    %c6_603 = arith.constant 6 : index
    %902 = memref.load %arg8[%c3_602, %c6_603] : memref<4x25xf32, #tpu.memory_space<smem>>
    %903 = vector.broadcast %902 : f32 to vector<1x256xf32>
    %904 = arith.mulf %903, %901 : vector<1x256xf32>
    %905 = arith.addf %900, %904 : vector<1x256xf32>
    %c3_604 = arith.constant 3 : index
    %c127_605 = arith.constant 127 : index
    %906 = vector.load %arg11[%c3_604, %c127_605] : memref<4x512xf32, #tpu.memory_space<vmem>>, vector<1x256xf32>
    %c3_606 = arith.constant 3 : index
    %c11_607 = arith.constant 11 : index
    %907 = memref.load %arg8[%c3_606, %c11_607] : memref<4x25xf32, #tpu.memory_space<smem>>
    %908 = vector.broadcast %907 : f32 to vector<1x256xf32>
    %909 = arith.mulf %908, %906 : vector<1x256xf32>
    %910 = arith.addf %905, %909 : vector<1x256xf32>
    %c3_608 = arith.constant 3 : index
    %c143_609 = arith.constant 143 : index
    %911 = vector.load %arg11[%c3_608, %c143_609] : memref<4x512xf32, #tpu.memory_space<vmem>>, vector<1x256xf32>
    %c3_610 = arith.constant 3 : index
    %c16_611 = arith.constant 16 : index
    %912 = memref.load %arg8[%c3_610, %c16_611] : memref<4x25xf32, #tpu.memory_space<smem>>
    %913 = vector.broadcast %912 : f32 to vector<1x256xf32>
    %914 = arith.mulf %913, %911 : vector<1x256xf32>
    %915 = arith.addf %910, %914 : vector<1x256xf32>
    %c3_612 = arith.constant 3 : index
    %c159_613 = arith.constant 159 : index
    %916 = vector.load %arg11[%c3_612, %c159_613] : memref<4x512xf32, #tpu.memory_space<vmem>>, vector<1x256xf32>
    %c3_614 = arith.constant 3 : index
    %c21_615 = arith.constant 21 : index
    %917 = memref.load %arg8[%c3_614, %c21_615] : memref<4x25xf32, #tpu.memory_space<smem>>
    %918 = vector.broadcast %917 : f32 to vector<1x256xf32>
    %919 = arith.mulf %918, %916 : vector<1x256xf32>
    %920 = arith.addf %915, %919 : vector<1x256xf32>
    %921 = arith.mulf %920, %30 : vector<1x256xf32>
    %922 = arith.addf %896, %921 : vector<1x256xf32>
    %c3_616 = arith.constant 3 : index
    %c96_617 = arith.constant 96 : index
    %923 = vector.load %arg11[%c3_616, %c96_617] : memref<4x512xf32, #tpu.memory_space<vmem>>, vector<1x256xf32>
    %c3_618 = arith.constant 3 : index
    %c2_619 = arith.constant 2 : index
    %924 = memref.load %arg8[%c3_618, %c2_619] : memref<4x25xf32, #tpu.memory_space<smem>>
    %925 = vector.broadcast %924 : f32 to vector<1x256xf32>
    %926 = arith.mulf %925, %923 : vector<1x256xf32>
    %c3_620 = arith.constant 3 : index
    %c112_621 = arith.constant 112 : index
    %927 = vector.load %arg11[%c3_620, %c112_621] : memref<4x512xf32, #tpu.memory_space<vmem>>, vector<1x256xf32>
    %c3_622 = arith.constant 3 : index
    %c7_623 = arith.constant 7 : index
    %928 = memref.load %arg8[%c3_622, %c7_623] : memref<4x25xf32, #tpu.memory_space<smem>>
    %929 = vector.broadcast %928 : f32 to vector<1x256xf32>
    %930 = arith.mulf %929, %927 : vector<1x256xf32>
    %931 = arith.addf %926, %930 : vector<1x256xf32>
    %c3_624 = arith.constant 3 : index
    %c128_625 = arith.constant 128 : index
    %932 = vector.load %arg11[%c3_624, %c128_625] : memref<4x512xf32, #tpu.memory_space<vmem>>, vector<1x256xf32>
    %c3_626 = arith.constant 3 : index
    %c12_627 = arith.constant 12 : index
    %933 = memref.load %arg8[%c3_626, %c12_627] : memref<4x25xf32, #tpu.memory_space<smem>>
    %934 = vector.broadcast %933 : f32 to vector<1x256xf32>
    %935 = arith.mulf %934, %932 : vector<1x256xf32>
    %936 = arith.addf %931, %935 : vector<1x256xf32>
    %c3_628 = arith.constant 3 : index
    %c144_629 = arith.constant 144 : index
    %937 = vector.load %arg11[%c3_628, %c144_629] : memref<4x512xf32, #tpu.memory_space<vmem>>, vector<1x256xf32>
    %c3_630 = arith.constant 3 : index
    %c17_631 = arith.constant 17 : index
    %938 = memref.load %arg8[%c3_630, %c17_631] : memref<4x25xf32, #tpu.memory_space<smem>>
    %939 = vector.broadcast %938 : f32 to vector<1x256xf32>
    %940 = arith.mulf %939, %937 : vector<1x256xf32>
    %941 = arith.addf %936, %940 : vector<1x256xf32>
    %c3_632 = arith.constant 3 : index
    %c160_633 = arith.constant 160 : index
    %942 = vector.load %arg11[%c3_632, %c160_633] : memref<4x512xf32, #tpu.memory_space<vmem>>, vector<1x256xf32>
    %c3_634 = arith.constant 3 : index
    %c22_635 = arith.constant 22 : index
    %943 = memref.load %arg8[%c3_634, %c22_635] : memref<4x25xf32, #tpu.memory_space<smem>>
    %944 = vector.broadcast %943 : f32 to vector<1x256xf32>
    %945 = arith.mulf %944, %942 : vector<1x256xf32>
    %946 = arith.addf %941, %945 : vector<1x256xf32>
    %947 = arith.addf %922, %946 : vector<1x256xf32>
    %c3_636 = arith.constant 3 : index
    %c97_637 = arith.constant 97 : index
    %948 = vector.load %arg11[%c3_636, %c97_637] : memref<4x512xf32, #tpu.memory_space<vmem>>, vector<1x256xf32>
    %c3_638 = arith.constant 3 : index
    %c3_639 = arith.constant 3 : index
    %949 = memref.load %arg8[%c3_638, %c3_639] : memref<4x25xf32, #tpu.memory_space<smem>>
    %950 = vector.broadcast %949 : f32 to vector<1x256xf32>
    %951 = arith.mulf %950, %948 : vector<1x256xf32>
    %c3_640 = arith.constant 3 : index
    %c113_641 = arith.constant 113 : index
    %952 = vector.load %arg11[%c3_640, %c113_641] : memref<4x512xf32, #tpu.memory_space<vmem>>, vector<1x256xf32>
    %c3_642 = arith.constant 3 : index
    %c8_643 = arith.constant 8 : index
    %953 = memref.load %arg8[%c3_642, %c8_643] : memref<4x25xf32, #tpu.memory_space<smem>>
    %954 = vector.broadcast %953 : f32 to vector<1x256xf32>
    %955 = arith.mulf %954, %952 : vector<1x256xf32>
    %956 = arith.addf %951, %955 : vector<1x256xf32>
    %c3_644 = arith.constant 3 : index
    %c129_645 = arith.constant 129 : index
    %957 = vector.load %arg11[%c3_644, %c129_645] : memref<4x512xf32, #tpu.memory_space<vmem>>, vector<1x256xf32>
    %c3_646 = arith.constant 3 : index
    %c13_647 = arith.constant 13 : index
    %958 = memref.load %arg8[%c3_646, %c13_647] : memref<4x25xf32, #tpu.memory_space<smem>>
    %959 = vector.broadcast %958 : f32 to vector<1x256xf32>
    %960 = arith.mulf %959, %957 : vector<1x256xf32>
    %961 = arith.addf %956, %960 : vector<1x256xf32>
    %c3_648 = arith.constant 3 : index
    %c145_649 = arith.constant 145 : index
    %962 = vector.load %arg11[%c3_648, %c145_649] : memref<4x512xf32, #tpu.memory_space<vmem>>, vector<1x256xf32>
    %c3_650 = arith.constant 3 : index
    %c18_651 = arith.constant 18 : index
    %963 = memref.load %arg8[%c3_650, %c18_651] : memref<4x25xf32, #tpu.memory_space<smem>>
    %964 = vector.broadcast %963 : f32 to vector<1x256xf32>
    %965 = arith.mulf %964, %962 : vector<1x256xf32>
    %966 = arith.addf %961, %965 : vector<1x256xf32>
    %c3_652 = arith.constant 3 : index
    %c161_653 = arith.constant 161 : index
    %967 = vector.load %arg11[%c3_652, %c161_653] : memref<4x512xf32, #tpu.memory_space<vmem>>, vector<1x256xf32>
    %c3_654 = arith.constant 3 : index
    %c23_655 = arith.constant 23 : index
    %968 = memref.load %arg8[%c3_654, %c23_655] : memref<4x25xf32, #tpu.memory_space<smem>>
    %969 = vector.broadcast %968 : f32 to vector<1x256xf32>
    %970 = arith.mulf %969, %967 : vector<1x256xf32>
    %971 = arith.addf %966, %970 : vector<1x256xf32>
    %972 = arith.mulf %971, %31 : vector<1x256xf32>
    %973 = arith.addf %947, %972 : vector<1x256xf32>
    %c3_656 = arith.constant 3 : index
    %c98_657 = arith.constant 98 : index
    %974 = vector.load %arg11[%c3_656, %c98_657] : memref<4x512xf32, #tpu.memory_space<vmem>>, vector<1x256xf32>
    %c3_658 = arith.constant 3 : index
    %c4_659 = arith.constant 4 : index
    %975 = memref.load %arg8[%c3_658, %c4_659] : memref<4x25xf32, #tpu.memory_space<smem>>
    %976 = vector.broadcast %975 : f32 to vector<1x256xf32>
    %977 = arith.mulf %976, %974 : vector<1x256xf32>
    %c3_660 = arith.constant 3 : index
    %c114_661 = arith.constant 114 : index
    %978 = vector.load %arg11[%c3_660, %c114_661] : memref<4x512xf32, #tpu.memory_space<vmem>>, vector<1x256xf32>
    %c3_662 = arith.constant 3 : index
    %c9_663 = arith.constant 9 : index
    %979 = memref.load %arg8[%c3_662, %c9_663] : memref<4x25xf32, #tpu.memory_space<smem>>
    %980 = vector.broadcast %979 : f32 to vector<1x256xf32>
    %981 = arith.mulf %980, %978 : vector<1x256xf32>
    %982 = arith.addf %977, %981 : vector<1x256xf32>
    %c3_664 = arith.constant 3 : index
    %c130_665 = arith.constant 130 : index
    %983 = vector.load %arg11[%c3_664, %c130_665] : memref<4x512xf32, #tpu.memory_space<vmem>>, vector<1x256xf32>
    %c3_666 = arith.constant 3 : index
    %c14_667 = arith.constant 14 : index
    %984 = memref.load %arg8[%c3_666, %c14_667] : memref<4x25xf32, #tpu.memory_space<smem>>
    %985 = vector.broadcast %984 : f32 to vector<1x256xf32>
    %986 = arith.mulf %985, %983 : vector<1x256xf32>
    %987 = arith.addf %982, %986 : vector<1x256xf32>
    %c3_668 = arith.constant 3 : index
    %c146_669 = arith.constant 146 : index
    %988 = vector.load %arg11[%c3_668, %c146_669] : memref<4x512xf32, #tpu.memory_space<vmem>>, vector<1x256xf32>
    %c3_670 = arith.constant 3 : index
    %c19_671 = arith.constant 19 : index
    %989 = memref.load %arg8[%c3_670, %c19_671] : memref<4x25xf32, #tpu.memory_space<smem>>
    %990 = vector.broadcast %989 : f32 to vector<1x256xf32>
    %991 = arith.mulf %990, %988 : vector<1x256xf32>
    %992 = arith.addf %987, %991 : vector<1x256xf32>
    %c3_672 = arith.constant 3 : index
    %c162_673 = arith.constant 162 : index
    %993 = vector.load %arg11[%c3_672, %c162_673] : memref<4x512xf32, #tpu.memory_space<vmem>>, vector<1x256xf32>
    %c3_674 = arith.constant 3 : index
    %c24_675 = arith.constant 24 : index
    %994 = memref.load %arg8[%c3_674, %c24_675] : memref<4x25xf32, #tpu.memory_space<smem>>
    %995 = vector.broadcast %994 : f32 to vector<1x256xf32>
    %996 = arith.mulf %995, %993 : vector<1x256xf32>
    %997 = arith.addf %992, %996 : vector<1x256xf32>
    %998 = arith.mulf %997, %32 : vector<1x256xf32>
    %999 = arith.addf %973, %998 : vector<1x256xf32>
    %c3_676 = arith.constant 3 : index
    %1000 = memref.load %arg9[%c3_676] : memref<4xf32, #tpu.memory_space<smem>>
    %1001 = vector.broadcast %1000 : f32 to vector<1x256xf32>
    %1002 = arith.addf %999, %1001 : vector<1x256xf32>
    %1003 = arith.addf %420, %34 : vector<1x256xf32>
    %c0_677 = arith.constant 0 : index
    %c0_678 = arith.constant 0 : index
    %c0_679 = arith.constant 0 : index
    %1004 = vector.load %arg10[%c0_677, %c0_678, %c0_679] : memref<1x8x256xf32, #tpu.memory_space<vmem>>, vector<1x1x256xf32>
    %1005 = vector.shape_cast %1004 : vector<1x1x256xf32> to vector<1x256xf32>
    %1006 = vector.shape_cast %1003 : vector<1x256xf32> to vector<1x1x256xf32>
    tpu.vector_store %arg10[%c0_677, %c0_678, %c0_679], %1006 {strides = array<i32>} : memref<1x8x256xf32, #tpu.memory_space<vmem>>, vector<1x1x256xf32>,
    %1007 = arith.addf %609, %42 : vector<1x256xf32>
    %c0_680 = arith.constant 0 : index
    %c4_681 = arith.constant 4 : index
    %c0_682 = arith.constant 0 : index
    %1008 = vector.load %arg10[%c0_680, %c4_681, %c0_682] : memref<1x8x256xf32, #tpu.memory_space<vmem>>, vector<1x1x256xf32>
    %1009 = vector.shape_cast %1008 : vector<1x1x256xf32> to vector<1x256xf32>
    %1010 = vector.shape_cast %1007 : vector<1x256xf32> to vector<1x1x256xf32>
    tpu.vector_store %arg10[%c0_680, %c4_681, %c0_682], %1010 {strides = array<i32>} : memref<1x8x256xf32, #tpu.memory_space<vmem>>, vector<1x1x256xf32>,
    %1011 = arith.addf %438, %36 : vector<1x256xf32>
    %c0_683 = arith.constant 0 : index
    %c1_684 = arith.constant 1 : index
    %c0_685 = arith.constant 0 : index
    %1012 = vector.load %arg10[%c0_683, %c1_684, %c0_685] : memref<1x8x256xf32, #tpu.memory_space<vmem>>, vector<1x1x256xf32>
    %1013 = vector.shape_cast %1012 : vector<1x1x256xf32> to vector<1x256xf32>
    %1014 = vector.shape_cast %1011 : vector<1x256xf32> to vector<1x1x256xf32>
    tpu.vector_store %arg10[%c0_683, %c1_684, %c0_685], %1014 {strides = array<i32>} : memref<1x8x256xf32, #tpu.memory_space<vmem>>, vector<1x1x256xf32>,
    %1015 = arith.addf %740, %44 : vector<1x256xf32>
    %c0_686 = arith.constant 0 : index
    %c5_687 = arith.constant 5 : index
    %c0_688 = arith.constant 0 : index
    %1016 = vector.load %arg10[%c0_686, %c5_687, %c0_688] : memref<1x8x256xf32, #tpu.memory_space<vmem>>, vector<1x1x256xf32>
    %1017 = vector.shape_cast %1016 : vector<1x1x256xf32> to vector<1x256xf32>
    %1018 = vector.shape_cast %1015 : vector<1x256xf32> to vector<1x1x256xf32>
    tpu.vector_store %arg10[%c0_686, %c5_687, %c0_688], %1018 {strides = array<i32>} : memref<1x8x256xf32, #tpu.memory_space<vmem>>, vector<1x1x256xf32>,
    %1019 = arith.addf %456, %38 : vector<1x256xf32>
    %c0_689 = arith.constant 0 : index
    %c2_690 = arith.constant 2 : index
    %c0_691 = arith.constant 0 : index
    %1020 = vector.load %arg10[%c0_689, %c2_690, %c0_691] : memref<1x8x256xf32, #tpu.memory_space<vmem>>, vector<1x1x256xf32>
    %1021 = vector.shape_cast %1020 : vector<1x1x256xf32> to vector<1x256xf32>
    %1022 = vector.shape_cast %1019 : vector<1x256xf32> to vector<1x1x256xf32>
    tpu.vector_store %arg10[%c0_689, %c2_690, %c0_691], %1022 {strides = array<i32>} : memref<1x8x256xf32, #tpu.memory_space<vmem>>, vector<1x1x256xf32>,
    %1023 = arith.addf %871, %46 : vector<1x256xf32>
    %c0_692 = arith.constant 0 : index
    %c6_693 = arith.constant 6 : index
    %c0_694 = arith.constant 0 : index
    %1024 = vector.load %arg10[%c0_692, %c6_693, %c0_694] : memref<1x8x256xf32, #tpu.memory_space<vmem>>, vector<1x1x256xf32>
    %1025 = vector.shape_cast %1024 : vector<1x1x256xf32> to vector<1x256xf32>
    %1026 = vector.shape_cast %1023 : vector<1x256xf32> to vector<1x1x256xf32>
    tpu.vector_store %arg10[%c0_692, %c6_693, %c0_694], %1026 {strides = array<i32>} : memref<1x8x256xf32, #tpu.memory_space<vmem>>, vector<1x1x256xf32>,
    %1027 = arith.addf %474, %40 : vector<1x256xf32>
    %c0_695 = arith.constant 0 : index
    %c3_696 = arith.constant 3 : index
    %c0_697 = arith.constant 0 : index
    %1028 = vector.load %arg10[%c0_695, %c3_696, %c0_697] : memref<1x8x256xf32, #tpu.memory_space<vmem>>, vector<1x1x256xf32>
    %1029 = vector.shape_cast %1028 : vector<1x1x256xf32> to vector<1x256xf32>
    %1030 = vector.shape_cast %1027 : vector<1x256xf32> to vector<1x1x256xf32>
    tpu.vector_store %arg10[%c0_695, %c3_696, %c0_697], %1030 {strides = array<i32>} : memref<1x8x256xf32, #tpu.memory_space<vmem>>, vector<1x1x256xf32>,
    %1031 = arith.addf %1002, %48 : vector<1x256xf32>
    %c0_698 = arith.constant 0 : index
    %c7_699 = arith.constant 7 : index
    %c0_700 = arith.constant 0 : index
    %1032 = vector.load %arg10[%c0_698, %c7_699, %c0_700] : memref<1x8x256xf32, #tpu.memory_space<vmem>>, vector<1x1x256xf32>
    %1033 = vector.shape_cast %1032 : vector<1x1x256xf32> to vector<1x256xf32>
    %1034 = vector.shape_cast %1031 : vector<1x256xf32> to vector<1x1x256xf32>
    tpu.vector_store %arg10[%c0_698, %c7_699, %c0_700], %1034 {strides = array<i32>} : memref<1x8x256xf32, #tpu.memory_space<vmem>>, vector<1x1x256xf32>,
    return
  }
  func.func @transform_0(%arg0: i32) -> (i32, i32, i32) {
    %c0_i32 = arith.constant 0 : i32
    %c0_i32_0 = arith.constant 0 : i32
    %c0_i32_1 = arith.constant 0 : i32
    return %arg0, %c0_i32, %c0_i32_0 : i32, i32, i32
  }
  func.func @transform_1(%arg0: i32) -> (i32, i32) {
    %c0_i32 = arith.constant 0 : i32
    %c0_i32_0 = arith.constant 0 : i32
    %c0_i32_1 = arith.constant 0 : i32
    return %c0_i32, %c0_i32_0 : i32, i32
  }
  func.func @transform_2(%arg0: i32) -> i32 {
    %c0_i32 = arith.constant 0 : i32
    %c0_i32_0 = arith.constant 0 : i32
    return %c0_i32 : i32
  }
  func.func @transform_3(%arg0: i32) -> (i32, i32) {
    %c0_i32 = arith.constant 0 : i32
    %c0_i32_0 = arith.constant 0 : i32
    %c0_i32_1 = arith.constant 0 : i32
    return %c0_i32, %c0_i32_0 : i32, i32
  }
  func.func @transform_4(%arg0: i32) -> i32 {
    %c0_i32 = arith.constant 0 : i32
    %c0_i32_0 = arith.constant 0 : i32
    return %c0_i32 : i32
  }
  func.func @transform_5(%arg0: i32) -> (i32, i32) {
    %c0_i32 = arith.constant 0 : i32
    %c0_i32_0 = arith.constant 0 : i32
    %c0_i32_1 = arith.constant 0 : i32
    return %c0_i32, %c0_i32_0 : i32, i32
  }
  func.func @transform_6(%arg0: i32) -> i32 {
    %c0_i32 = arith.constant 0 : i32
    %c0_i32_0 = arith.constant 0 : i32
    return %c0_i32 : i32
  }
  func.func @transform_7(%arg0: i32) -> (i32, i32) {
    %c0_i32 = arith.constant 0 : i32
    %c0_i32_0 = arith.constant 0 : i32
    %c0_i32_1 = arith.constant 0 : i32
    return %c0_i32, %c0_i32_0 : i32, i32
  }
  func.func @transform_8(%arg0: i32) -> i32 {
    %c0_i32 = arith.constant 0 : i32
    %c0_i32_0 = arith.constant 0 : i32
    return %c0_i32 : i32
  }
  func.func @transform_9(%arg0: i32) -> (i32, i32, i32) {
    %c0_i32 = arith.constant 0 : i32
    %c0_i32_0 = arith.constant 0 : i32
    %c0_i32_1 = arith.constant 0 : i32
    return %arg0, %c0_i32, %c0_i32_0 : i32, i32, i32
  }
}

</mosaic_0001>

<bundles_post_ra>
// kernel: ghost_bottleneck_pallas.1
= control target key start
LH: loop header
LB: loop body
LE: loop exit
PB: predicated region body
PF: predicated region fallthrough
CT: control target
= control target key end

     0   :  { %14 = vsyncpa [#allocation4], 0  ;;  %s4359_s0 = inlined_call_operand.vmem [shape: f32[2,8,256], index: 0, kind: input, shape index: {}]   ;;  %s4360_s1 = inlined_call_operand.vmem [shape: f32[2,8], index: 1, kind: input, shape index: {}]   ;;  %s4361_s2 = inlined_call_operand.vmem [shape: f32[2], index: 2, kind: input, shape index: {}]   ;;  %s4362_s3 = inlined_call_operand.vmem [shape: f32[2,25], index: 3, kind: input, shape index: {}]   ;;  %s4363_s4 = inlined_call_operand.vmem [shape: f32[2], index: 4, kind: input, shape index: {}]   ;;  %s4364_s5 = inlined_call_operand.vmem [shape: f32[4,4], index: 5, kind: input, shape index: {}]   ;;  %s4365_s6 = inlined_call_operand.vmem [shape: f32[4], index: 6, kind: input, shape index: {}]   ;;  %s4366_s7 = inlined_call_operand.vmem [shape: f32[4,25], index: 7, kind: input, shape index: {}]   ;;  %s4367_s8 = inlined_call_operand.vmem [shape: f32[4], index: 8, kind: input, shape index: {}]   ;;  %s4368_s9 = inlined_call_operand.vmem [shape: f32[2,8,256], index: 9, kind: output, shape index: {}]  }
   0x1   :  { %15 = vsyncpa [#allocation6], 0 }
   0x2   :  { %16 = vsyncpa [#allocation9], 0 }
   0x3   :  { %17 = vsyncpa [#allocation12], 0 }
   0x4   :  { %18 = vsyncpa [#allocation15], 0  ;;  %s3122_s30 = smov 0  }
   0x5 LB: > { %s273_s12 = sshll.u32 %s4361_s2, 4  ;;  %s3131_s13 = sadd.s32 4294967295, %s3047_s30   ;;  %s3047_s30 = sphi %s3122_s30, %s24_s30   ;;  %s274_s12 = int_to_ptr.vmem [resolvable:$true] %s273_s12 }
   0x6   : > { %p2558_p0 = scmp.ge.s32.totalorder %s3047_s30, 1  ;;  %p249_p1 = scmp.lt.s32.totalorder %s3047_s30, 3 }
   0x7   : > { %p4369_p2 = scmp.eq.s32.totalorder %s3131_s13, 0  ;;  %s295_s17 = sshll.u32 %s4363_s4, 4  ;;  %s3143_s17 = int_to_ptr.vmem [resolvable:$true] %s295_s17 }
   0x8   : > { %p3136_p3 = pnand %p2558_p0, %p249_p1  ;;  %s317_s20 = sshll.u32 %s4365_s6, 4  ;;  %s3150_s20 = int_to_ptr.vmem [resolvable:$true] %s317_s20 }
   0x9   : > { %s262_s24 = sshll.u32 %s4360_s1, 4  ;;  %s284_s27 = sshll.u32 %s4362_s3, 4  ;;  %s3161_s24 = int_to_ptr.vmem [resolvable:$true] %s262_s24  ;;  %s285_s27 = int_to_ptr.vmem [resolvable:$true] %s284_s27 }
   0xa   : > { %s4377_s14 = scalar_select %p3136_p3, 1, 0 }
   0xb   : > { %p2820_p4 = pneg %p3136_p3  ;;  %s2901_s28 = scalar_lea.vmem %s274_s12, 16 }
   0xc   : > { %p2902_p6 = scmp.ne.s32.totalorder %s274_s12, %s2901_s28  ;;  %p2909_p10 = scmp.lt.s32.totalorder %s274_s12, %s274_s12 }
   0xd   : > { %p3154_p5 = pnand %p4369_p2, %p2820_p4  ;;  %p2910_p11 = scmp.lt.s32.totalorder %s2901_s28, %s2901_s28 }
   0xf   : > { %p3168_p7 = pneg %p3154_p5  ;;  %p2911_p12 = por %p2910_p11, %p2909_p10 }
  0x11   : > { %p2904_p8 = pnand %p3168_p7, %p2902_p6 }
  0x13   : > { %p2905_p9 = pneg %p2904_p8 }
  0x15   : > { %p2912_p13 = pnand %p2911_p12, %p2905_p9 }
  0x17   : > { %2915 = shalt.err (!%p2912_p13)
}
  0x18   : > { %s3049_s10 = smov [#allocation5]   ;;  %s2916_s11 = scalar_lea.vmem %s3143_s17, 16 }
  0x19   : > { %2826 = dma.vmem_to_smem (!%p3154_p5), %s274_s12, 16, %s3049_s10, [#allocation6]  }
  0x1a   : > { %p2917_p0 = scmp.ne.s32.totalorder %s3143_s17, %s2916_s11  ;;  %p2924_p6 = scmp.lt.s32.totalorder %s3143_s17, %s3143_s17 }
  0x1b   : > { %p2925_p8 = scmp.lt.s32.totalorder %s2916_s11, %s2916_s11 }
  0x1c   : > { %p2919_p1 = pnand %p2917_p0, %p3168_p7 }
  0x1d   : > { %p2926_p2 = por %p2925_p8, %p2924_p6 }
  0x1e   : > { %p2920_p4 = pneg %p2919_p1 }
  0x20   : > { %p2927_p10 = pnand %p2926_p2, %p2920_p4 }
  0x22   : > { %2930 = shalt.err (!%p2927_p10)
}
  0x23   : > { %s3050_s15 = smov [#allocation8]   ;;  %s2931_s12 = scalar_lea.vmem %s3150_s20, 16 }
  0x24   : > { %2832 = dma.vmem_to_smem (!%p3154_p5), %s3143_s17, 16, %s3050_s15, [#allocation9]  }
  0x25   : > { %p2932_p9 = scmp.ne.s32.totalorder %s3150_s20, %s2931_s12  ;;  %p2939_p13 = scmp.lt.s32.totalorder %s3150_s20, %s3150_s20 }
  0x26   : > { %p2940_p0 = scmp.lt.s32.totalorder %s2931_s12, %s2931_s12 }
  0x27   : > { %p2934_p11 = pnand %p2932_p9, %p3168_p7 }
  0x28   : > { %p2941_p1 = por %p2940_p0, %p2939_p13 }
  0x29   : > { %p2935_p12 = pneg %p2934_p11 }
  0x2b   : > { %p2942_p2 = pnand %p2941_p1, %p2935_p12 }
  0x2d   : > { %2945 = shalt.err (!%p2942_p2)
}
  0x2e   : > { %s3051_s16 = smov [#allocation11]   ;;  %s2946_s17 = scalar_lea.vmem %s3161_s24, 32 }
  0x2f   : > { %2838 = dma.vmem_to_smem (!%p3154_p5), %s3150_s20, 16, %s3051_s16, [#allocation12]  }
  0x30   : > { %p2947_p4 = scmp.ne.s32.totalorder %s3161_s24, %s2946_s17  ;;  %p2954_p10 = scmp.lt.s32.totalorder %s3161_s24, %s3161_s24 }
  0x31   : > { %p2955_p9 = scmp.lt.s32.totalorder %s2946_s17, %s2946_s17 }
  0x32   : > { %p2949_p6 = pnand %p2947_p4, %p3168_p7 }
  0x33   : > { %p2956_p11 = por %p2955_p9, %p2954_p10 }
  0x34   : > { %p2950_p8 = pneg %p2949_p6 }
  0x36   : > { %p2957_p12 = pnand %p2956_p11, %p2950_p8 }
  0x38   : > { %2960 = shalt.err (!%p2957_p12)
}
  0x39   : > { %s3052_s18 = smov [#allocation3]   ;;  %s2961_s20 = scalar_lea.vmem %s285_s27, 32 }
  0x3a   : > { %2823 = dma.vmem_to_smem (!%p3154_p5), %s3161_s24, 32, %s3052_s18, [#allocation4]  }
  0x3b   : > { %p2962_p13 = scmp.ne.s32.totalorder %s285_s27, %s2961_s20  ;;  %p2969_p2 = scmp.lt.s32.totalorder %s285_s27, %s285_s27 }
  0x3c   : > { %p2970_p4 = scmp.lt.s32.totalorder %s2961_s20, %s2961_s20 }
  0x3d   : > { %p2964_p0 = pnand %p2962_p13, %p3168_p7 }
  0x3e   : > { %p2971_p6 = por %p2970_p4, %p2969_p2 }
  0x3f   : > { %p2965_p1 = pneg %p2964_p0 }
  0x41   : > { %p2972_p8 = pnand %p2971_p6, %p2965_p1 }
  0x43   : > { %2975 = shalt.err (!%p2972_p8)
}
  0x44   : > { %s3053_s23 = smov [#allocation7]   ;;  %s306_s26 = sshll.u32 %s4364_s5, 4  ;;  %s307_s26 = int_to_ptr.vmem [resolvable:$true] %s306_s26 }
  0x45   : > { %2829 = dma.vmem_to_smem (!%p3154_p5), %s285_s27, 32, %s3053_s23, [#allocation6]  }
  0x46   : > { %s328_s11 = sshll.u32 %s4366_s7, 4  ;;  %s2976_s15 = scalar_lea.vmem %s307_s26, 64  ;;  %s329_s11 = int_to_ptr.vmem [resolvable:$true] %s328_s11 }
  0x47   : > { %p2977_p10 = scmp.ne.s32.totalorder %s307_s26, %s2976_s15  ;;  %p2984_p12 = scmp.lt.s32.totalorder %s307_s26, %s307_s26 }
  0x48   : > { %p2985_p13 = scmp.lt.s32.totalorder %s2976_s15, %s2976_s15 }
  0x49   : > { %p2979_p9 = pnand %p2977_p10, %p3168_p7 }
  0x4a   : > { %p2986_p0 = por %p2985_p13, %p2984_p12 }
  0x4b   : > { %p2980_p11 = pneg %p2979_p9 }
  0x4d   : > { %p2987_p1 = pnand %p2986_p0, %p2980_p11 }
  0x4f   : > { %2990 = shalt.err (!%p2987_p1)
}
  0x50   : > { %s3054_s27 = smov [#allocation10]   ;;  %s2991_s12 = scalar_lea.vmem %s329_s11, 64 }
  0x51   : > { %2835 = dma.vmem_to_smem (!%p3154_p5), %s307_s26, 64, %s3054_s27, [#allocation9]  }
  0x52   : > { %p2992_p2 = scmp.ne.s32.totalorder %s329_s11, %s2991_s12  ;;  %p2999_p8 = scmp.lt.s32.totalorder %s329_s11, %s329_s11 }
  0x53   : > { %p3000_p3 = scmp.lt.s32.totalorder %s2991_s12, %s2991_s12 }
  0x54   : > { %p2994_p4 = pnand %p2992_p2, %p3168_p7 }
  0x55   : > { %p3001_p10 = por %p3000_p3, %p2999_p8 }
  0x56   : > { %p2995_p6 = pneg %p2994_p4 }
  0x58   : > { %p3002_p9 = pnand %p3001_p10, %p2995_p6 }
  0x5a   : > { %3005 = shalt.err (!%p3002_p9)
}
  0x5b   : > { %s3055_s16 = smov [#allocation13]   ;;  %s339_s19 = sshll.u32 %s4367_s8, 4  ;;  %s340_s19 = int_to_ptr.vmem [resolvable:$true] %s339_s19 }
  0x5c   : > { %2841 = dma.vmem_to_smem (!%p3154_p5), %s329_s11, 64, %s3055_s16, [#allocation12]  }
  0x5d   : > { %s3006_s22 = scalar_lea.vmem %s340_s19, 16  ;;  %p3014_p0 = scmp.lt.s32.totalorder %s340_s19, %s340_s19 }
  0x5e   : > { %p3007_p11 = scmp.ne.s32.totalorder %s340_s19, %s3006_s22  ;;  %p3015_p1 = scmp.lt.s32.totalorder %s3006_s22, %s3006_s22 }
  0x60   : > { %p3009_p12 = pnand %p3007_p11, %p3168_p7  ;;  %p3016_p3 = por %p3015_p1, %p3014_p0 }
  0x62   : > { %p3010_p13 = pneg %p3009_p12 }
  0x64   : > { %p3017_p2 = pnand %p3016_p3, %p3010_p13 }
  0x66   : > { %3020 = shalt.err (!%p3017_p2)
}
  0x67   : > { %s3056_s20 = smov [#allocation14]   ;;  %p4380_p4 = scmp.ne.s32.totalorder %s4377_s14, 0 }
  0x68   : > { %2844 = dma.vmem_to_smem (!%p3154_p5), %s340_s19, 16, %s3056_s20, [#allocation15]  }
  0x69   : > { %360 = sbr.rel (%p4380_p4) target bundleno = 1131 (0x46b), region = 56  ;;  %p4381_p6 = scmp.eq.s32.totalorder (!%p4380_p4), %s3131_s13, 0 }
  0x70   : > { %3026 = dma.done.wait (%p4381_p6), [#allocation4], 32   ;;  %p4382_p8 = pmov %p4381_p6 }
  0x71   : > { %p4383_p7 = pmov %p4381_p6 }
  0x72   : > { %3028 = vsyncadd (%p4382_p8), [#allocation4], 4294967264 }
  0x73   : > { %3030 = dma.done.wait (%p4383_p7), [#allocation6], 48   ;;  %p4384_p10 = pmov %p4381_p6 }
  0x74   : > { %p4385_p9 = pmov %p4381_p6 }
  0x75   : > { %3032 = vsyncadd (%p4384_p10), [#allocation6], 4294967248 }
  0x76   : > { %3034 = dma.done.wait (%p4385_p9), [#allocation9], 80   ;;  %p4386_p5 = pmov %p4381_p6 }
  0x78   : > { %3036 = vsyncadd (%p4386_p5), [#allocation9], 4294967216  ;;  %p4387_p11 = pmov %p4386_p5 }
  0x79   : > { %p4388_p12 = pmov %p4386_p5 }
  0x7a   : > { %3038 = dma.done.wait (%p4387_p11), [#allocation12], 80  }
  0x7b   : > { %3040 = vsyncadd (%p4388_p12), [#allocation12], 4294967216  ;;  %p4389_p13 = pmov %p4386_p5 }
  0x7c   : > { %p4390_p0 = pmov %p4386_p5 }
  0x7d   : > { %3042 = dma.done.wait (%p4389_p13), [#allocation15], 16  }
  0x7e   : > { %3044 = vsyncadd (%p4390_p0), [#allocation15], 4294967280 }
  0x7f   : > { %394 = sfence }
  0x80   : > { %v435_v0 = vlaneseq  ;;  %p425_p1 = scmp.lt.s32.totalorder %s3131_s13, 1  ;;  %v3057_v1 = vmov 0.0   ;;  %s2598_s14 = sld [smem:[#allocation3 + $0x80]]  ;;  %v3058_v4 = vmov 1966171168   ;;  %vm587_vm9 = vcmask 916480  }
  0x81   : > { %492 = vst [vmem:[#allocation2] sm:$0xff] %v3057_v1  ;;  %493 = vst [vmem:[#allocation2 + $0x8] sm:$0xff] %v3057_v1  ;;  %s2599_s21 = sld [smem:[#allocation3 + $0x81]]  ;;  %v630_v5 = vunpack.c.l.s4 %v3058_v4  ;;  %s3260_s29 = sld [smem:[#allocation3 + $0x82]]  ;;  %vm598_vm10 = vcmask 785408   ;;  %vm706_vm11 = vcmask 777216  }
  0x82   : > { %v436_v2 = vand.u32 127, %v435_v0  ;;  %v463_v3 = vshrl.u32 %v435_v0, 7  ;;  %s4397_s13 = smov (!%p425_p1, %s3131_s13), 1  ;;  %s3262_s23 = sld [smem:[#allocation3 + $0x83]]  ;;  %vm3322_vm6 = vcmp.lt.s32.totalorder %v435_v0, 256  ;;  %vm611_vm12 = vcmask 654336  }
  0x83   : > { %s2786_s24 = sshll.u32 %s4397_s13, 4  ;;  %s3265_s25 = sld [smem:[#allocation3 + $0x84]]  ;;  %v631_v12 = vunpack.c.0.s8 %v630_v5  ;;  %vm622_vm13 = vcmask 523264   ;;  %vm819_vm14 = vcmask 793600   ;;  %vm894_vm15 = vcmask 801792  }
  0x84   : > { %v437_v6 = vadd.s32 128, %v436_v2  ;;  %v442_v7 = vand.u32 15, %v436_v2  ;;  %v2581_v8 = vadd.s32 4294967294, %v463_v3  ;;  %s3272_s10 = scalar_lea.vmem %s4359_s0, %s2786_s24  ;;  %s3274_s11 = sld [smem:[#allocation3 + $0x85]] }
  0x85   : > { %v477_v11 = vld [vmem:[%s3272_s10] ss:$8 sm:$0x3]  ;;  %s3277_s15 = sld [smem:[#allocation3 + $0x86]]  ;;  %v3287_v26 = vsub.s32 %v631_v12, %v463_v3  ;;  %s2605_s27 = sld [smem:[#allocation3 + $0x87]] }
  0x86   : > { %v449_v9 = vand.u32 15, %v437_v6  ;;  %v465_v10 = vadd.s32 %v2581_v8, %v442_v7  ;;  %v2584_v13 = vld [vmem:[%s3272_s10 + $0x1] ss:$8 sm:$0x3]  ;;  %v529_v15 = vstv %s2598_s14  ;;  %s3295_s12 = sld [smem:[#allocation5 + $0x1]]  ;;  %s494_s16 = sld [smem:[#allocation3]] }
  0x87   : > { %v2585_v14 = vld [vmem:[%s3272_s10 + $0x2] ss:$8 sm:$0x3]  ;;  %v532_v16 = vstv %s2599_s21  ;;  %v2586_v18 = vld [vmem:[%s3272_s10 + $0x3] ss:$8 sm:$0x3]  ;;  %v530_v19 = vmul.f32 %v529_v15, %v477_v11  ;;  %v536_v21 = vstv %s3260_s29 }
  0x88   : > { %v466_v17 = vadd.s32 %v2581_v8, %v449_v9  ;;  %vm467_vm0 = vcmp.ge.s32.totalorder %v465_v10, 0  ;;  %vm469_vm1 = vcmp.lt.s32.totalorder %v465_v10, 16  ;;  %v533_v20 = vmul.f32 %v2584_v13, %v532_v16  ;;  %v2587_v24 = vld [vmem:[%s3272_s10 + $0x4] ss:$8 sm:$0x3]  ;;  %s2591_s17 = sld [smem:[#allocation3 + $0x1]] }
  0x89   : > { %vm471_vm2 = vmand %vm467_vm0, %vm469_vm1  ;;  %v540_v22 = vstv %s3262_s23  ;;  %v537_v25 = vmul.f32 %v2585_v14, %v536_v21  ;;  %v2588_v27 = vld [vmem:[%s3272_s10 + $0x5] ss:$8 sm:$0x3]  ;;  %v544_v30 = vstv %s3265_s25  ;;  %v2589_v32 = vld [vmem:[%s3272_s10 + $0x6] ss:$8 sm:$0x3] }
  0x8a   : > { %vm468_vm3 = vcmp.ge.s32.totalorder %v466_v17, 0  ;;  %vm470_vm4 = vcmp.lt.s32.totalorder %v466_v17, 16  ;;  %v3284_v23 = vsel %vm471_vm2, 1.0, %v3057_v1  ;;  %v534_v28 = vadd.f32 %v533_v20, %v530_v19  ;;  %v2590_v35 = vld [vmem:[%s3272_s10 + $0x7] ss:$8 sm:$0x3] }
  0x8b   : > { %vm472_vm5 = vmand %vm468_vm3, %vm470_vm4  ;;  %v541_v29 = vmul.f32 %v2586_v18, %v540_v22  ;;  %v548_v33 = vstv %s3274_s11  ;;  %v545_v37 = vmul.f32 %v2587_v24, %v544_v30  ;;  %v552_v39 = vstv %s3277_s15  ;;  %s2592_s18 = sld [smem:[#allocation3 + $0x2]]  ;;  %s2593_s19 = sld [smem:[#allocation3 + $0x3]] }
  0x8c   : > { %v3291_v31 = vsel %vm472_vm5, 1.0, %v3057_v1  ;;  %v538_v36 = vadd.f32 %v537_v25, %v534_v28  ;;  %v549_v42 = vmul.f32 %v2588_v27, %v548_v33  ;;  %s2594_s22 = sld [smem:[#allocation3 + $0x4]]  ;;  %s3306_s20 = sld [smem:[#allocation3 + $0x5]]  ;;  %v553_v45 = vmul.f32 %v2589_v32, %v552_v39 }
  0x8d   : > { %v628_v34 = vcombine.low %v3284_v23, %v3291_v31  ;;  %v876_v38 = vcombine.high %v3284_v23, %v3291_v31  ;;  %v556_v46 = vstv %s2605_s27  ;;  %s3310_s14 = sld [smem:[#allocation3 + $0x6]]  ;;  %v495_v50 = vstv %s494_s16  ;;  %s3315_s21 = sld [smem:[#allocation3 + $0x7]] }
  0x8e   : > { %v542_v41 = vadd.f32 %v541_v29, %v538_v36  ;;  %v557_v47 = vmul.f32 %v2590_v35, %v556_v46  ;;  %v498_v51 = vstv %s2591_s17  ;;  %v496_v52 = vmul.f32 %v495_v50, %v477_v11  ;;  %s3059_s29 = smov 95   ;;  %s525_s23 = sld [smem:[#allocation5]] }
  0x8f   : > { %v3304_v40 = vrot.slane %v628_v34, %v3287_v26  ;;  %v499_v53 = vmul.f32 %v2584_v13, %v498_v51  ;;  %v560_v58 = vstv %s3295_s12  ;;  %s2637_s25 = sld [smem:[#allocation7 + $0x86]]  ;;  %s2614_s28 = sld [smem:[#allocation7 + $0x10]]  ;;  %vm646_vm0 = vcmask 769024  }
  0x90   : > { %v546_v44 = vadd.f32 %v545_v37, %v542_v41  ;;  %s2612_s26 = sld [smem:[#allocation7 + $0x6]]  ;;  %s3060_s11 = smov 112   ;;  %vm714_vm1 = vcmask 1039360   ;;  %vm768_vm2 = vcmask 1031168   ;;  %vm827_vm3 = vcmask 1022976  }
  0x91   : > { %v695_v43 = vcombine.high %v3304_v40, %v3304_v40  ;;  %v502_v54 = vstv %s2592_s18  ;;  %v506_v55 = vstv %s2593_s19  ;;  %v500_v59 = vadd.f32 %v499_v53, %v496_v52  ;;  %s2613_s15 = sld [smem:[#allocation7 + $0xb]]  ;;  %s2622_s27 = sld [smem:[#allocation7 + $0x8]] }
  0x92   : > { %v550_v49 = vadd.f32 %v549_v42, %v546_v44  ;;  %v503_v57 = vmul.f32 %v2585_v14, %v502_v54  ;;  %v507_v60 = vmul.f32 %v2586_v18, %v506_v55  ;;  %v510_v61 = vstv %s2594_s22  ;;  %s2617_s12 = sld [smem:[#allocation7 + $0x7]]  ;;  %s2615_s16 = sld [smem:[#allocation7 + $0x15]] }
  0x93   : > { %v3313_v48 = vrot.slane %v695_v43, %v3287_v26  ;;  %v514_v63 = vstv %s3306_s20  ;;  %v511_v2 = vmul.f32 %v2587_v24, %v510_v61  ;;  %v518_v4 = vstv %s3310_s14  ;;  %s3341_s17 = sld [smem:[#allocation7 + $0x8b]]  ;;  %s3343_s18 = sld [smem:[#allocation7 + $0xd]] }
  0x94   : > { %v554_v56 = vadd.f32 %v553_v45, %v550_v49  ;;  %v504_v1 = vadd.f32 %v503_v57, %v500_v59  ;;  %v515_v6 = vmul.f32 %v2588_v27, %v514_v63  ;;  %v522_v9 = vstv %s3315_s21  ;;  %s3061_s19 = smov 80   ;;  %s2618_s22 = sld [smem:[#allocation7 + $0xc]] }
  0x95   : > { %703 = vrot.lane.b32.xlu0 %v3313_v48, %s3059_s29  ;;  %v519_v11 = vmul.f32 %v2589_v32, %v518_v4  ;;  %v523_v14 = vmul.f32 %v2590_v35, %v522_v9  ;;  %v526_v16 = vstv %s525_s23  ;;  %v962_v17 = vstv %s2637_s25  ;;  %s2639_s20 = sld [smem:[#allocation7 + $0x90]]  ;;  %s3062_s14 = smov 96  }
  0x96   : > { %v558_v62 = vadd.f32 %v557_v47, %v554_v56  ;;  %v508_v5 = vadd.f32 %v507_v60, %v504_v1  ;;  %v655_v24 = vstv %s2612_s26  ;;  %v676_v25 = vstv %s2614_s28  ;;  %s2627_s21 = sld [smem:[#allocation7 + $0x9]]  ;;  %s2647_s29 = sld [smem:[#allocation7 + $0x88]] }
  0x97   : > { %v665_v29 = vstv %s2613_s15  ;;  %v776_v30 = vstv %s2622_s27  ;;  %s3063_s23 = smov 64   ;;  %s2642_s25 = sld [smem:[#allocation7 + $0x87]]  ;;  %vm902_vm4 = vcmask 1014784  }
  0x98   : > { %v561_v3 = vadd.f32 %v560_v58, %v558_v62  ;;  %v512_v10 = vadd.f32 %v511_v2, %v508_v5  ;;  %v723_v37 = vstv %s2617_s12  ;;  %v686_v39 = vstv %s2615_s16  ;;  %s2619_s26 = sld [smem:[#allocation7 + $0x11]]  ;;  %s2624_s28 = sld [smem:[#allocation7 + $0x12]] }
  0x99   : > { %v972_v43 = vstv %s3341_s17  ;;  %v786_v45 = vstv %s3343_s18  ;;  %s2628_s15 = sld [smem:[#allocation7 + $0xe]]  ;;  %s2640_s27 = sld [smem:[#allocation7 + $0x95]] }
  0x9a   : > { %vm565_vm7 = vcmp.gt.f32.partialorder %v561_v3, 0.0  ;;  %v566_v8 = vmul.f32 0.1, %v561_v3  ;;  %v516_v13 = vadd.f32 %v515_v6, %v512_v10  ;;  %v734_v50 = vstv %s2618_s22  ;;  %s2643_s12 = sld [smem:[#allocation7 + $0x8c]]  ;;  %s2648_s16 = sld [smem:[#allocation7 + $0x8d]] }
  0x9b   : > { %v983_v52 = vstv %s2639_s20  ;;  %s2652_s17 = sld [smem:[#allocation7 + $0x89]]  ;;  %s2620_s18 = sld [smem:[#allocation7 + $0x16]] }
  0x9c   : > { %v3327_v12 = vsel %vm565_vm7, %v561_v3, %v566_v8  ;;  %v520_v15 = vadd.f32 %v519_v11, %v516_v13  ;;  %v836_v56 = vstv %s2627_s21  ;;  %v1067_v58 = vstv %s2647_s29  ;;  %s2625_s22 = sld [smem:[#allocation7 + $0x17]]  ;;  %s2629_s20 = sld [smem:[#allocation7 + $0x13]] }
  0x9d   : > { %575 = vst.msk [vmem:[#allocation2 + $0x5] ss:$4 sm:$0x3] %vm3322_vm6, %v3327_v12  ;;  %v1015_v61 = vstv %s2642_s25  ;;  %s2644_s21 = sld [smem:[#allocation7 + $0x91]]  ;;  %s2649_s29 = sld [smem:[#allocation7 + $0x92]] }
  0x9e   : > { %v524_v0 = vadd.f32 %v523_v14, %v520_v15  ;;  %v745_v62 = vstv %s2619_s26  ;;  %v796_v2 = vstv %s2624_s28  ;;  %s2653_s25 = sld [smem:[#allocation7 + $0x8e]]  ;;  %s2630_s26 = sld [smem:[#allocation7 + $0x18]] }
  0x9f   : > { %v847_v4 = vstv %s2628_s15  ;;  %v993_v8 = vstv %s2640_s27  ;;  %s2645_s28 = sld [smem:[#allocation7 + $0x96]]  ;;  %s2650_s15 = sld [smem:[#allocation7 + $0x97]] }
  0xa0   : > { %v527_v18 = vadd.f32 %v526_v16, %v524_v0  ;;  %v1026_v10 = vstv %s2643_s12  ;;  %v1077_v15 = vstv %s2648_s16  ;;  %s2654_s27 = sld [smem:[#allocation7 + $0x93]]  ;;  %s2655_s12 = sld [smem:[#allocation7 + $0x98]] }
  0xa1   : > { %v1119_v0 = vstv %s2652_s17  ;;  %s2607_s16 = sld [smem:[#allocation7 + $0x5]]  ;;  %s3064_s17 = smov 97  }
  0xa2   : > { %vm562_vm8 = vcmp.gt.f32.partialorder %v527_v18, 0.0  ;;  %v563_v21 = vmul.f32 0.1, %v527_v18  ;;  %s2705_s13 = sld [smem:[#allocation13 + $0x86]] }
  0xa4   : > { %v3332_v19 = vld [vmem:[#allocation2 + $0x1] ss:$4 sm:$0x7]  ;;  %v3336_v22 = vsel %vm562_vm8, %v527_v18, %v563_v21  ;;  %v806_v21 = vstv %s2625_s22  ;;  %s2608_s22 = sld [smem:[#allocation7 + $0xa]]  ;;  %vm1190_vm8 = vcmask 277504  }
  0xa5   : > { %v963_v20 = vmul.f32 %v962_v17, %v3332_v19  ;;  %573 = vst.msk [vmem:[#allocation2 + $0x4] ss:$4 sm:$0x3] %vm3322_vm6, %v3336_v22  ;;  %v973_v46 = vmul.f32 %v972_v43, %v3332_v19  ;;  %v981_v51 = vld [vmem:[#allocation2 + $0x5] ss:$4 sm:$0x7] }
  0xa6   : > { %v984_v54 = vmul.f32 %v983_v52, %v981_v51  ;;  %v3369_v57 = vld [vmem:[#allocation2 + $0x1] ss:$4 sm:$0x7]  ;;  %v994_v11 = vmul.f32 %v993_v8, %v981_v51 }
  0xa7   : > { %965 = vrot.lane.b32.xlu1 %v963_v20, %s3060_s11  ;;  %v1068_v60 = vmul.f32 %v1067_v58, %v3369_v57  ;;  %v1016_v63 = vmul.f32 %v1015_v61, %v3369_v57  ;;  %v1024_v9 = vld [vmem:[#allocation2 + $0x5] ss:$4 sm:$0x3]  ;;  %v755_v20 = vstv %s2620_s18  ;;  %s2632_s18 = sld [smem:[#allocation7 + $0x85]] }
  0xa8   : > { %v1027_v13 = vmul.f32 %v1026_v10, %v1024_v9  ;;  %v1035_v14 = vld [vmem:[#allocation2 + $0x5] ss:$4 sm:$0x7] }
  0xa9   : > { %v3384_v16 = vld [vmem:[#allocation2 + $0x1] ss:$4 sm:$0x7]  ;;  %v1078_v17 = vmul.f32 %v1077_v15, %v1035_v14 }
  0xaa   : > { %v1120_v18 = vmul.f32 %v1119_v0, %v3384_v16  ;;  %v592_v58 = vstv %s2608_s22  ;;  %s3462_s22 = sld [smem:[#allocation7 + $0x83]] }
  0xac   : > { %v3345_v27 = vld [vmem:[#allocation2] ss:$4 sm:$0x7] }
  0xad   : > { %v674_v28 = vld [vmem:[#allocation2 + $0x4] ss:$4 sm:$0x7]  ;;  %v656_v32 = vmul.f32 %v655_v24, %v3345_v27  ;;  %v666_v35 = vmul.f32 %v665_v29, %v3345_v27  ;;  %v1037_v29 = vstv %s2644_s21  ;;  %s2609_s21 = sld [smem:[#allocation7 + $0xf]] }
  0xae   : > { %v677_v33 = vmul.f32 %v676_v25, %v674_v28  ;;  %v3348_v34 = vld [vmem:[#allocation2] ss:$4 sm:$0x7]  ;;  %v687_v42 = vmul.f32 %v686_v39, %v674_v28  ;;  %v857_v28 = vstv %s2629_s20  ;;  %s2633_s20 = sld [smem:[#allocation7 + $0x8a]] }
  0xaf   : > { %658 = vrot.lane.b32.xlu0 %v656_v32, %s3060_s11  ;;  %v777_v36 = vmul.f32 %v776_v30, %v3348_v34  ;;  %v724_v41 = vmul.f32 %v723_v37, %v3348_v34  ;;  %v3358_v44 = vld [vmem:[#allocation2 + $0x4] ss:$4 sm:$0x7]  ;;  %v1038_v32 = vmul.f32 %v1037_v29, %v1035_v14 }
  0xb0   : > { %679 = vrot.lane.b32.xlu1 %v677_v33, %s3061_s19  ;;  %v787_v47 = vmul.f32 %v786_v45, %v3358_v44  ;;  %v732_v49 = vld [vmem:[#allocation2 + $0x4] ss:$4 sm:$0x3]  ;;  %v746_v1 = vmul.f32 %v745_v62, %v3358_v44  ;;  %v797_v5 = vmul.f32 %v796_v2, %v3358_v44  ;;  %v756_v24 = vmul.f32 %v755_v20, %v3358_v44 }
  0xb1   : > { %v735_v53 = vmul.f32 %v734_v50, %v732_v49  ;;  %v3367_v55 = vld [vmem:[#allocation2] ss:$4 sm:$0x7]  ;;  %v807_v25 = vmul.f32 %v806_v21, %v3358_v44  ;;  %v1087_v33 = vstv %s2649_s29  ;;  %v1047_v44 = vstv %s2645_s28  ;;  %s3065_s29 = smov 98   ;;  %s2635_s28 = sld [smem:[#allocation7 + $0x94]] }
  0xb2   : > { %v837_v59 = vmul.f32 %v836_v56, %v3367_v55  ;;  %v845_v3 = vld [vmem:[#allocation2 + $0x4] ss:$4 sm:$0x7]  ;;  %v1088_v37 = vmul.f32 %v1087_v33, %v1035_v14  ;;  %v1097_v45 = vstv %s2650_s15  ;;  %v1140_v49 = vstv %s2654_s27  ;;  %s3066_s15 = smov 94   ;;  %s2616_s27 = sld [smem:[#allocation7 + $0x2]] }
  0xb3   : > { %668 = vrot.lane.b32.xlu0 %v666_v35, %s3062_s14  ;;  %v848_v6 = vmul.f32 %v847_v4, %v845_v3  ;;  %v858_v30 = vmul.f32 %v857_v28, %v845_v3  ;;  %v1128_v35 = vld [vmem:[#allocation2 + $0x5] ss:$4 sm:$0x7]  ;;  %v3409_v52 = vld [vmem:[#allocation2] ss:$4 sm:$0x7]  ;;  %v915_v56 = vstv %s2632_s18 }
  0xb4   : > { %779 = vrot.lane.b32.xlu1 %v777_v36, %s3060_s11  ;;  %v1130_v36 = vstv %s2653_s25  ;;  %v1141_v50 = vmul.f32 %v1140_v49, %v1128_v35  ;;  %s2634_s25 = sld [smem:[#allocation7 + $0x8f]]  ;;  %v925_v61 = vstv %s2633_s20  ;;  %v603_v62 = vld [vmem:[#allocation2 + $0x4] ss:$4 sm:$0x7]  ;;  %s3456_s18 = sld [smem:[#allocation7 + $0x4]] }
  0xb5   : > { %v1131_v39 = vmul.f32 %v1130_v36, %v1128_v35  ;;  %s3465_s20 = sld [smem:[#allocation7 + $0x82]] }
  0xb7   : > { %726 = vrot.lane.b32.xlu0 %v724_v41, %s3060_s11  ;;  %v867_v41 = vstv %s2630_s26  ;;  %s2610_s26 = sld [smem:[#allocation7 + $0x14]]  ;;  %v947_v9 = vstv %s2635_s28  ;;  %s4371_s28 = smov 124  }
  0xb8   : > { %689 = vrot.lane.b32.xlu1 %v687_v42, %s3063_s23  ;;  %v815_v42 = vcombine.high %v3313_v48, %v3313_v48  ;;  %v868_v43 = vmul.f32 %v867_v41, %v845_v3  ;;  %v883_v48 = vrot.slane %v876_v38, %v3287_v26  ;;  %v3413_v38 = vld [vmem:[#allocation2 + $0x1] ss:$4 sm:$0x7]  ;;  %v720_v36 = vstv %s2616_s27  ;;  %s577_s27 = sld [smem:[#allocation7]] }
  0xb9   : > { %v935_v3 = vld [vmem:[#allocation2 + $0x5] ss:$4 sm:$0x7] }
  0xba   : > { %v890_v51 = vrot.slane %v883_v48, %v3287_v26  ;;  %v937_v4 = vstv %s2634_s25  ;;  %v948_v10 = vmul.f32 %v947_v9, %v935_v3  ;;  %s4373_s25 = smov 125  }
  0xbb   : > { %975 = vrot.lane.b32.xlu0 %v973_v46, %s3062_s14  ;;  %v1048_v46 = vmul.f32 %v1047_v44, %v1035_v14 }
  0xbc   : > { %789 = vrot.lane.b32.xlu1 %v787_v47, %s3062_s14  ;;  %v1098_v47 = vmul.f32 %v1097_v45, %v1035_v14 }
  0xbf   : > { %737 = vrot.lane.b32.xlu0 %v735_v53, %s3062_s14  ;;  %v1150_v53 = vstv %s2655_s12  ;;  %s2636_s12 = sld [smem:[#allocation7 + $0x81]] }
  0xc0   : > { %986 = vrot.lane.b32.xlu1 %v984_v54, %s3061_s19  ;;  %v581_v54 = vstv %s2607_s16  ;;  %v1151_v23 = vmul.f32 %v1150_v53, %v1128_v35  ;;  %s2611_s16 = sld [smem:[#allocation7 + $0x1]] }
  0xc1   : > { %v582_v31 = vmul.f32 %v581_v54, %v3409_v52 }
  0xc3   : > { %839 = vrot.lane.b32.xlu0 %v837_v59, %s3060_s11  ;;  %v916_v59 = vmul.f32 %v915_v56, %v3413_v38  ;;  %v833_v56 = vstv %s3456_s18  ;;  %s3603_s18 = sld [smem:[#allocation10 + $0x82]] }
  0xc4   : > { %1070 = vrot.lane.b32.xlu1 %v1068_v60, %s3060_s11  ;;  %v593_v60 = vmul.f32 %v592_v58, %v3409_v52 }
  0xc6   : > { %v652_v49 = vstv %s2611_s16  ;;  %s3596_s16 = sld [smem:[#allocation8]] }
  0xc7   : > { %1018 = vrot.lane.b32.xlu0 %v1016_v63, %s3060_s11  ;;  %v605_v63 = vstv %s2609_s21  ;;  %s3468_s21 = sld [smem:[#allocation7 + $0x84]] }
  0xc8   : > { %748 = vrot.lane.b32.xlu1 %v746_v1, %s3061_s19  ;;  %v926_v1 = vmul.f32 %v925_v61, %v3413_v38  ;;  %v606_v2 = vmul.f32 %v605_v63, %v603_v62 }
  0xcb   : > { %799 = vrot.lane.b32.xlu0 %v797_v5, %s3061_s19  ;;  %v616_v5 = vstv %s2610_s26  ;;  %s4375_s26 = smov 127  }
  0xcc   : > { %850 = vrot.lane.b32.xlu1 %v848_v6, %s3062_s14  ;;  %v938_v6 = vmul.f32 %v937_v4, %v935_v3  ;;  %v617_v8 = vmul.f32 %v616_v5, %v603_v62  ;;  %v1064_v3 = vstv %s3462_s22  ;;  %v834_v5 = vmul.f32 %v833_v56, %v3367_v55  ;;  %s2658_s22 = sld [smem:[#allocation10 + $0x2]] }
  0xcd   : > { %v1116_v9 = vstv %s3468_s21  ;;  %s2667_s21 = sld [smem:[#allocation10 + $0x102]] }
  0xcf   : > { %996 = vrot.lane.b32.xlu0 %v994_v11, %s3063_s23  ;;  %v642_v11 = vrot.slane %v3304_v40, %v3287_v26 }
  0xd0   : > { %1029 = vrot.lane.b32.xlu1 %v1027_v13, %s3062_s14 }
  0xd3   : > { %1080 = vrot.lane.b32.xlu0 %v1078_v17, %s3062_s14 }
  0xd4   : > { %1122 = vrot.lane.b32.xlu1 %v1120_v18, %s3060_s11 }
  0xd7   : > { %758 = vrot.lane.b32.xlu0 %v756_v24, %s3063_s23 }
  0xd8   : > { %809 = vrot.lane.b32.xlu1 %v807_v25, %s3063_s23 }
  0xdb   : > { %860 = vrot.lane.b32.xlu0 %v858_v30, %s3061_s19 }
  0xdc   : > { %1040 = vrot.lane.b32.xlu1 %v1038_v32, %s3061_s19 }
  0xdf   : > { %1090 = vrot.lane.b32.xlu0 %v1088_v37, %s3061_s19 }
  0xe0   : > { %1133 = vrot.lane.b32.xlu1 %v1131_v39, %s3062_s14 }
  0xe3   : > { %816 = vrot.lane.b32.xlu0 %v815_v42, %s3064_s17  ;;  %s2621_s17 = sld [smem:[#allocation7 + $0x3]] }
  0xe4   : > { %870 = vrot.lane.b32.xlu1 %v868_v43, %s3063_s23  ;;  %v721_v43 = vmul.f32 %v720_v36, %v3348_v34 }
  0xe7   : > { %1050 = vrot.lane.b32.xlu0 %v1048_v46, %s3063_s23  ;;  %v959_v46 = vstv %s2636_s12  ;;  %s2631_s12 = sld [smem:[#allocation7 + $0x80]] }
  0xe8   : > { %1100 = vrot.lane.b32.xlu1 %v1098_v47, %s3063_s23 }
  0xeb   : > { %1143 = vrot.lane.b32.xlu0 %v1141_v50, %s3061_s19 }
  0xec   : > { %891 = vrot.lane.b32.xlu1 %v890_v51, %s3065_s29  ;;  %v773_v51 = vstv %s2621_s17  ;;  %s3067_s29 = smov 126   ;;  %s3600_s17 = sld [smem:[#allocation8 + $0x1]] }
  0xef   : > { %1153 = vrot.lane.b32.xlu0 %v1151_v23, %s3063_s23  ;;  %v960_v23 = vmul.f32 %v959_v46, %v3332_v19  ;;  %v3503_v46 = vmul.f32 %v1116_v9, %v3384_v16 }
  0xf0   : > { %584 = vrot.lane.b32.xlu1 %v582_v31, %s3060_s11 }
  0xf3   : > { %595 = vrot.lane.b32.xlu0 %v593_v60, %s3062_s14  ;;  %v774_v60 = vmul.f32 %v773_v51, %v3348_v34 }
  0xf4   : > { %918 = vrot.lane.b32.xlu1 %v916_v59, %s3060_s11  ;;  %v653_v59 = vmul.f32 %v652_v49, %v3345_v27 }
  0xf7   : > { %608 = vrot.lane.b32.xlu0 %v606_v2, %s3061_s19 }
  0xf8   : > { %928 = vrot.lane.b32.xlu1 %v926_v1, %s3062_s14 }
  0xfb   : > { %619 = vrot.lane.b32.xlu0 %v617_v8, %s3063_s23 }
  0xfc   : > { %940 = vrot.lane.b32.xlu1 %v938_v6, %s3061_s19  ;;  %v1012_v6 = vstv %s3465_s20  ;;  %s2672_s20 = sld [smem:[#allocation10 + $0x182]] }
  0xff   : > { %643 = vrot.lane.b32.xlu0 %v642_v11, %s3066_s15 }
 0x100   : > { %950 = vrot.lane.b32.xlu1 %v948_v10, %s3063_s23 }
 0x107   : > { %v3432_v14 = vpop.permute.xlu0 %703 }
 0x108   : > { %v705_v11 = vrot.slane %v3432_v14, 7 }
 0x119   : > { %v3430_v13 = vpop.permute.xlu1 %965 }
 0x11a   : > { %v967_v4 = vrot.slane %v3430_v13, 1 }
 0x121   : > { %v659_v15 = vpop.permute.xlu0 %658 }
 0x122   : > { %v3434_v0 = vpop.permute.xlu1 %679  ;;  %v660_v50 = vrot.slane %v659_v15, 1 }
 0x123   : > { %v681_v55 = vrot.slane %v3434_v0, 7 }
 0x124   : > { %v661_v1 = vsel %vm587_vm9, %v659_v15, %v660_v50 }
 0x125   : > { %v669_v17 = vpop.permute.xlu0 %668  ;;  %v663_v15 = vadd.f32 %v661_v1, %v653_v59 }
 0x126   : > { %v3436_v18 = vpop.permute.xlu1 %779  ;;  %v670_v31 = vrot.slane %v669_v17, 1 }
 0x127   : > { %v781_v2 = vrot.slane %v3436_v18, 1 }
 0x128   : > { %v671_v27 = vsel %vm598_vm10, %v669_v17, %v670_v31  ;;  %v682_v31 = vsel %vm611_vm12, %v681_v55, %v3434_v0 }
 0x129   : > { %v727_v20 = vpop.permute.xlu0 %726 }
 0x12a   : > { %v3438_v21 = vpop.permute.xlu1 %689  ;;  %v728_v37 = vrot.slane %v727_v20, 1 }
 0x12b   : > { %v691_v17 = vrot.slane %v3438_v21, 7 }
 0x12c   : > { %v729_v44 = vsel %vm587_vm9, %v727_v20, %v728_v37  ;;  %v3492_v20 = vmul.f32 %v1064_v3, %v3369_v57  ;;  %v782_v37 = vsel %vm587_vm9, %v3436_v18, %v781_v2 }
 0x12d   : > { %v3440_v24 = vpop.permute.xlu0 %975  ;;  %v731_v54 = vadd.f32 %v729_v44, %v721_v43  ;;  %v968_v43 = vsel %vm587_vm9, %v3430_v13, %v967_v4  ;;  %v673_v44 = vadd.f32 %v671_v27, %v663_v15  ;;  %v3512_v13 = vsel %vm706_vm11, %v705_v11, %v3432_v14 }
 0x12e   : > { %v3442_v26 = vpop.permute.xlu1 %789  ;;  %v970_v14 = vadd.f32 %v968_v43, %v960_v23 }
 0x12f   : > { %v791_v34 = vrot.slane %v3442_v26, 7  ;;  %v684_v59 = vadd.f32 %v682_v31, %v673_v44 }
 0x131   : > { %v738_v40 = vpop.permute.xlu0 %737  ;;  %v792_v49 = vsel %vm598_vm10, %v791_v34, %v3442_v26  ;;  %v692_v26 = vsel %vm622_vm13, %v691_v17, %v3438_v21 }
 0x132   : > { %v3444_v25 = vpop.permute.xlu1 %986  ;;  %v739_v42 = vrot.slane %v738_v40, 7  ;;  %v694_v21 = vadd.f32 %v692_v26, %v684_v59 }
 0x133   : > { %v988_v3 = vrot.slane %v3444_v25, 7 }
 0x134   : > { %v740_v53 = vsel %vm598_vm10, %v739_v42, %v738_v40 }
 0x135   : > { %v3446_v28 = vpop.permute.xlu0 %839  ;;  %v742_v61 = vadd.f32 %v740_v53, %v731_v54  ;;  %v784_v53 = vadd.f32 %v782_v37, %v774_v60 }
 0x136   : > { %v3448_v29 = vpop.permute.xlu1 %1070  ;;  %v841_v18 = vrot.slane %v3446_v28, 1 }
 0x137   : > { %v794_v60 = vadd.f32 %v792_v49, %v784_v53 }
 0x139   : > { %v3450_v30 = vpop.permute.xlu0 %1018 }
 0x13a   : > { %v749_v32 = vpop.permute.xlu1 %748  ;;  %v1020_v50 = vrot.slane %v3450_v30, 1 }
 0x13b   : > { %v750_v45 = vrot.slane %v749_v32, 7 }
 0x13c   : > { %v1021_v1 = vsel %vm587_vm9, %v3450_v30, %v1020_v50 }
 0x13d   : > { %v3452_v33 = vpop.permute.xlu0 %799  ;;  %v751_v58 = vsel %vm611_vm12, %v750_v45, %v749_v32  ;;  %v1013_v45 = vmul.f32 %v1012_v6, %v3369_v57  ;;  %v977_v57 = vrot.slane %v3440_v24, 1  ;;  %v1072_v6 = vrot.slane %v3448_v29, 1 }
 0x13e   : > { %v3454_v35 = vpop.permute.xlu1 %850  ;;  %v753_v8 = vadd.f32 %v751_v58, %v742_v61  ;;  %v801_v42 = vrot.slane %v3452_v33, 7 }
 0x13f   : > { %v852_v61 = vrot.slane %v3454_v35, 7 }
 0x140   : > { %v802_v56 = vsel %vm611_vm12, %v801_v42, %v3452_v33  ;;  %v978_v33 = vsel %vm598_vm10, %v3440_v24, %v977_v57 }
 0x141   : > { %v3458_v39 = vpop.permute.xlu0 %996  ;;  %v804_v23 = vadd.f32 %v802_v56, %v794_v60  ;;  %v853_v34 = vsel %vm598_vm10, %v852_v61, %v3454_v35  ;;  %v980_v42 = vadd.f32 %v978_v33, %v970_v14 }
 0x142   : > { %v3460_v41 = vpop.permute.xlu1 %1029 }
 0x143   : > { %v1031_v58 = vrot.slane %v3460_v41, 7 }
 0x145   : > { %v3470_v47 = vpop.permute.xlu0 %1080 }
 0x146   : > { %v3472_v48 = vpop.permute.xlu1 %1122 }
 0x147   : > { %v1124_v24 = vrot.slane %v3472_v48, 1 }
 0x149   : > { %v759_v62 = vpop.permute.xlu0 %758  ;;  %v1125_v50 = vsel %vm587_vm9, %v3472_v48, %v1124_v24 }
 0x14a   : > { %v810_v63 = vpop.permute.xlu1 %809  ;;  %v760_v19 = vrot.slane %v759_v62, 7 }
 0x14b   : > { %v811_v51 = vrot.slane %v810_v63, 7 }
 0x14c   : > { %v761_v10 = vsel %vm622_vm13, %v760_v19, %v759_v62  ;;  %v842_v62 = vsel %vm587_vm9, %v3446_v28, %v841_v18  ;;  %v1032_v28 = vsel %vm598_vm10, %v1031_v58, %v3460_v41  ;;  %v1082_v41 = vrot.slane %v3470_v47, 7 }
 0x14d   : > { %v861_v40 = vpop.permute.xlu0 %860  ;;  %v763_v32 = vadd.f32 %v761_v10, %v753_v8  ;;  %v812_v0 = vsel %vm622_vm13, %v811_v51, %v810_v63  ;;  %v844_v27 = vadd.f32 %v842_v62, %v834_v5  ;;  %v1023_v63 = vadd.f32 %v1021_v1, %v1013_v45 }
 0x14e   : > { %v1041_v36 = vpop.permute.xlu1 %1040  ;;  %v862_v8 = vrot.slane %v861_v40, 7  ;;  %v814_v9 = vadd.f32 %v812_v0, %v804_v23  ;;  %v1073_v45 = vsel %vm587_vm9, %v3448_v29, %v1072_v6  ;;  %v1083_v29 = vsel %vm598_vm10, %v1082_v41, %v3470_v47 }
 0x14f   : > { %765 = vrot.lane.b32.xlu1 %v763_v32, %s3067_s29  ;;  %v1042_v2 = vrot.slane %v1041_v36, 7  ;;  %v998_v32 = vrot.slane %v3458_v39, 7  ;;  %v1034_v55 = vadd.f32 %v1032_v28, %v1023_v63  ;;  %v855_v49 = vadd.f32 %v853_v34, %v844_v27 }
 0x150   : > { %v863_v35 = vsel %vm611_vm12, %v862_v8, %v861_v40  ;;  %v1075_v61 = vadd.f32 %v1073_v45, %v3492_v20  ;;  %v1127_v62 = vadd.f32 %v1125_v50, %v3503_v46 }
 0x151   : > { %v3515_v16 = vpop.permute.xlu0 %1090  ;;  %v1043_v10 = vsel %vm611_vm12, %v1042_v2, %v1041_v36  ;;  %v989_v36 = vsel %vm611_vm12, %v988_v3, %v3444_v25  ;;  %v999_v25 = vsel %vm622_vm13, %v998_v32, %v3458_v39  ;;  %v865_v57 = vadd.f32 %v863_v35, %v855_v49 }
 0x152   : > { %v1134_v54 = vpop.permute.xlu1 %1133  ;;  %v1045_v18 = vadd.f32 %v1043_v10, %v1034_v55  ;;  %v1092_v51 = vrot.slane %v3515_v16, 7  ;;  %v991_v60 = vadd.f32 %v989_v36, %v980_v42  ;;  %v1085_v33 = vadd.f32 %v1083_v29, %v1075_v61 }
 0x153   : > { %v1135_v43 = vrot.slane %v1134_v54, 7  ;;  %v578_v10 = vstv %s577_s27  ;;  %s2663_s27 = sld [smem:[#allocation10 + $0x83]] }
 0x154   : > { %v1093_v39 = vsel %vm611_vm12, %v1092_v51, %v3515_v16  ;;  %v1001_v2 = vadd.f32 %v999_v25, %v991_v60  ;;  %v579_v41 = vmul.f32 %v578_v10, %v3409_v52 }
 0x155   : > { %v817_v19 = vpop.permute.xlu0 %816  ;;  %v1136_v58 = vsel %vm598_vm10, %v1135_v43, %v1134_v54  ;;  %v709_v54 = vmul.f32 %v3512_v13, %v694_v21 }
 0x156   : > { %v871_v4 = vpop.permute.xlu1 %870  ;;  %v818_v30 = vrot.slane %v817_v19, 7  ;;  %v1138_v3 = vadd.f32 %v1136_v58, %v1127_v62  ;;  %v1002_v8 = vmul.f32 %v1001_v2, %v3512_v13 }
 0x157   : > { %v872_v15 = vrot.slane %v871_v4, 7 }
 0x158   : > { %v3541_v11 = vsel %vm819_vm14, %v818_v30, %v817_v19 }
 0x159   : > { %v1051_v37 = vpop.permute.xlu0 %1050  ;;  %v822_v5 = vmul.f32 %v3541_v11, %v814_v9  ;;  %v873_v40 = vsel %vm622_vm13, %v872_v15, %v871_v4  ;;  %v1095_v4 = vadd.f32 %v1093_v39, %v1085_v33 }
 0x15a   : > { %v1101_v17 = vpop.permute.xlu1 %1100  ;;  %v1052_v44 = vrot.slane %v1051_v37, 7  ;;  %v875_v1 = vadd.f32 %v873_v40, %v865_v57 }
 0x15b   : > { %824 = vrot.lane.b32.xlu1 %v822_v5, %s4373_s25  ;;  %v1102_v14 = vrot.slane %v1101_v17, 7  ;;  %v912_v5 = vstv %s2631_s12  ;;  %s2659_s12 = sld [smem:[#allocation10 + $0x3]] }
 0x15c   : > { %v1053_v53 = vsel %vm622_vm13, %v1052_v44, %v1051_v37  ;;  %v913_v43 = vmul.f32 %v912_v5, %v3413_v38 }
 0x15d   : > { %v1144_v31 = vpop.permute.xlu0 %1143  ;;  %v1055_v26 = vadd.f32 %v1053_v53, %v1045_v18  ;;  %v1103_v46 = vsel %vm622_vm13, %v1102_v14, %v1101_v17 }
 0x15e   : > { %v892_v56 = vpop.permute.xlu1 %891  ;;  %v1145_v48 = vrot.slane %v1144_v31, 7  ;;  %v1105_v21 = vadd.f32 %v1103_v46, %v1095_v4 }
 0x15f   : > { %v893_v59 = vrot.slane %v892_v56, 7  ;;  %1057 = vrot.lane.b32.xlu0 %v1055_v26, %s3067_s29 }
 0x160   : > { %v1146_v47 = vsel %vm611_vm12, %v1145_v48, %v1144_v31  ;;  %v1106_v27 = vmul.f32 %v1105_v21, %v3541_v11 }
 0x161   : > { %v3569_v0 = vsel %vm894_vm15, %v893_v59, %v892_v56  ;;  %v1154_v23 = vpop.permute.xlu0 %1153  ;;  %v1148_v6 = vadd.f32 %v1146_v47, %v1138_v3 }
 0x162   : > { %v897_v20 = vmul.f32 %v3569_v0, %v875_v1  ;;  %v1155_v19 = vrot.slane %v1154_v23, 7  ;;  %v585_v63 = vpop.permute.xlu1 %584 }
 0x163   : > { %711 = vrot.lane.b32.xlu0 %v709_v54, %s4375_s26  ;;  %v586_v15 = vrot.slane %v585_v63, 1 }
 0x164   : > { %899 = vrot.lane.b32.xlu1 %v897_v20, %s4371_s28  ;;  %v1156_v16 = vsel %vm622_vm13, %v1155_v19, %v1154_v23 }
 0x165   : > { %v1158_v28 = vadd.f32 %v1156_v16, %v1148_v6  ;;  %v596_v24 = vpop.permute.xlu0 %595  ;;  %v588_v37 = vsel %vm587_vm9, %v585_v63, %v586_v15 }
 0x166   : > { %v919_v34 = vpop.permute.xlu1 %918  ;;  %v597_v42 = vrot.slane %v596_v24, 1  ;;  %v590_v35 = vadd.f32 %v588_v37, %v579_v41 }
 0x167   : > { %1004 = vrot.lane.b32.xlu0 %v1002_v8, %s4375_s26  ;;  %v1159_v30 = vmul.f32 %v1158_v28, %v3569_v0  ;;  %v920_v17 = vrot.slane %v919_v34, 1  ;;  %s2666_s26 = sld [smem:[#allocation10 + $0x101]] }
 0x168   : > { %v599_v18 = vsel %vm598_vm10, %v596_v24, %v597_v42  ;;  %v907_v24 = vstv %s3596_s16  ;;  %s2673_s16 = sld [smem:[#allocation10 + $0x183]] }
 0x169   : > { %1161 = vrot.lane.b32.xlu1 %v1159_v30, %s4371_s28  ;;  %v609_v55 = vpop.permute.xlu0 %608  ;;  %v921_v45 = vsel %vm587_vm9, %v919_v34, %v920_v17  ;;  %v601_v40 = vadd.f32 %v599_v18, %v590_v35  ;;  %s2668_s28 = sld [smem:[#allocation10 + $0x103]] }
 0x16a   : > { %v929_v9 = vpop.permute.xlu1 %928  ;;  %v610_v50 = vrot.slane %v609_v55, 7  ;;  %v923_v51 = vadd.f32 %v921_v45, %v913_v43  ;;  %v1215_v45 = vstv %s3603_s18  ;;  %s2661_s18 = sld [smem:[#allocation10 + $0x81]] }
 0x16b   : > { %1108 = vrot.lane.b32.xlu0 %v1106_v27, %s4373_s25  ;;  %v930_v49 = vrot.slane %v929_v9, 1  ;;  %s3071_s25 = smov 34  }
 0x16c   : > { %v612_v25 = vsel %vm611_vm12, %v610_v50, %v609_v55  ;;  %v1184_v50 = vstv %s2658_s22  ;;  %s1176_s22 = sld [smem:[#allocation10]] }
 0x16d   : > { %v620_v36 = vpop.permute.xlu0 %619  ;;  %v931_v52 = vsel %vm598_vm10, %v929_v9, %v930_v49  ;;  %v614_v38 = vadd.f32 %v612_v25, %v601_v40 }
 0x16e   : > { %v941_v32 = vpop.permute.xlu1 %940  ;;  %v621_v29 = vrot.slane %v620_v36, 7  ;;  %v933_v26 = vadd.f32 %v931_v52, %v923_v51 }
 0x16f   : > { %v942_v53 = vrot.slane %v941_v32, 7 }
 0x170   : > { %v623_v14 = vsel %vm622_vm13, %v621_v29, %v620_v36  ;;  %v1275_v29 = vstv %s2672_s20  ;;  %s2657_s20 = sld [smem:[#allocation10 + $0x1]] }
 0x171   : > { %v644_v31 = vpop.permute.xlu0 %643  ;;  %v943_v56 = vsel %vm611_vm12, %v942_v53, %v941_v32  ;;  %v625_v62 = vadd.f32 %v623_v14, %v614_v38 }
 0x172   : > { %v951_v44 = vpop.permute.xlu1 %950  ;;  %v645_v48 = vrot.slane %v644_v31, 7  ;;  %v945_v61 = vadd.f32 %v943_v56, %v933_v26  ;;  %v1225_v56 = vstv %s2663_s27  ;;  %s2671_s27 = sld [smem:[#allocation10 + $0x181]] }
 0x173   : > { %v952_v58 = vrot.slane %v951_v44, 7 }
 0x174   : > { %v3594_v39 = vsel %vm646_vm0, %v645_v48, %v644_v31 }
 0x175   : > { %v953_v1 = vsel %vm622_vm13, %v952_v58, %v951_v44  ;;  %v649_v23 = vmul.f32 %v3594_v39, %v625_v62  ;;  %v1168_v44 = vstv %s3600_s17  ;;  %v1195_v58 = vstv %s2659_s12  ;;  %s2660_s17 = sld [smem:[#allocation10 + $0x80]] }
 0x176   : > { %v955_v3 = vadd.f32 %v953_v1, %v945_v61  ;;  %s2665_s12 = sld [smem:[#allocation10 + $0x100]] }
 0x178   : > { %v956_v30 = vmul.f32 %v955_v3, %v3594_v39 }
 0x17b   : > { %v1208_v1 = vstv %s2660_s17  ;;  %s3639_s17 = sld [smem:[#allocation11 + $0x2]] }
 0x1c1   : > { %v766_v57 = vpop.permute.xlu1 %765 }
 0x1c2   : > { %v767_v2 = vrot.slane %v766_v57, 1 }
 0x1c4   : > { %v769_v6 = vsel %vm768_vm2, %v766_v57, %v767_v2  ;;  %v1245_v57 = vstv %s2667_s21  ;;  %s2670_s21 = sld [smem:[#allocation10 + $0x180]]  ;;  %v1180_v2 = vstv %s2657_s20 }
 0x1c5   : > { %s2682_s20 = sld [smem:[#allocation13 + $0x10]] }
 0x1cd   : > { %v825_v59 = vpop.permute.xlu1 %824 }
 0x1ce   : > { %v826_v20 = vrot.slane %v825_v59, 1 }
 0x1d0   : > { %v828_v63 = vsel %vm827_vm3, %v825_v59, %v826_v20  ;;  %v1285_v59 = vstv %s2673_s16  ;;  %s3629_s16 = sld [smem:[#allocation11]] }
 0x1d1   : > { %v1058_v60 = vpop.permute.xlu0 %1057 }
 0x1d2   : > { %v1059_v16 = vrot.slane %v1058_v60, 1 }
 0x1d4   : > { %v1060_v32 = vsel %vm768_vm2, %v1058_v60, %v1059_v16  ;;  %v1255_v60 = vstv %s2668_s28  ;;  %v1238_v16 = vstv %s2665_s12  ;;  %s3627_s28 = sld [smem:[#allocation11 + $0x1]]  ;;  %s2757_s12 = sld [smem:[#allocation13 + $0x186]] }
 0x1d5   : > { %v712_v47 = vpop.permute.xlu0 %711 }
 0x1d6   : > { %v900_v54 = vpop.permute.xlu1 %899  ;;  %v713_v33 = vrot.slane %v712_v47, 1 }
 0x1d7   : > { %v901_v28 = vrot.slane %v900_v54, 1 }
 0x1d8   : > { %v715_v46 = vsel %vm714_vm1, %v712_v47, %v713_v33  ;;  %v1211_v47 = vstv %s2661_s18  ;;  %s3647_s18 = sld [smem:[#allocation13 + $0xa]] }
 0x1d9   : > { %v717_v19 = vadd.f32 %v715_v46, %v649_v23  ;;  %v1005_v4 = vpop.permute.xlu0 %1004  ;;  %v903_v55 = vsel %vm902_vm4, %v900_v54, %v901_v28  ;;  %v1177_v54 = vstv %s1176_s22  ;;  %v1209_v23 = vmul.f32 %v1208_v1, %v3336_v22  ;;  %s3649_s22 = sld [smem:[#allocation13 + $0x5]] }
 0x1da   : > { %v1006_v21 = vrot.slane %v1005_v4, 1  ;;  %v1212_v20 = vmul.f32 %v1211_v47, %v3327_v12  ;;  %v1178_v46 = vmul.f32 %v1177_v54, %v3336_v22 }
 0x1db   : > { %v771_v8 = vadd.f32 %v769_v6, %v717_v19  ;;  %v1162_v27 = vpop.permute.xlu1 %1161  ;;  %v1181_v19 = vmul.f32 %v1180_v2, %v3327_v12  ;;  %v1271_v6 = vstv %s2671_s27  ;;  %s3656_s27 = scalar_lea.vmem %s4368_s9, %s2786_s24  ;;  %s2680_s24 = sld [smem:[#allocation13 + $0x6]] }
 0x1dc   : > { %v1007_v34 = vsel %vm714_vm1, %v1005_v4, %v1006_v21  ;;  %v1163_v37 = vrot.slane %v1162_v27, 1  ;;  %v1268_v4 = vstv %s2670_s21  ;;  %v1241_v21 = vstv %s2666_s26  ;;  %s3637_s26 = sld [smem:[#allocation11 + $0x3]]  ;;  %s2707_s21 = sld [smem:[#allocation13 + $0x90]] }
 0x1dd   : > { %v1009_v9 = vadd.f32 %v1007_v34, %v956_v30  ;;  %v830_v10 = vadd.f32 %v828_v63, %v771_v8  ;;  %v1109_v15 = vpop.permute.xlu0 %1108  ;;  %v1269_v63 = vmul.f32 %v1268_v4, %v3336_v22  ;;  %v1272_v34 = vmul.f32 %v1271_v6, %v3327_v12 }
 0x1de   : > { %v1110_v41 = vrot.slane %v1109_v15, 1  ;;  %v1164_v36 = vsel %vm902_vm4, %v1162_v27, %v1163_v37 }
 0x1df   : > { %v905_v5 = vadd.f32 %v903_v55, %v830_v10  ;;  %v1062_v17 = vadd.f32 %v1060_v32, %v1009_v9  ;;  %v1239_v9 = vmul.f32 %v1238_v16, %v3336_v22  ;;  %v1213_v10 = vadd.f32 %v1212_v20, %v1209_v23  ;;  %v2895_v20 = vld [vmem:[%s3272_s10 + $0x2] ss:$8 sm:$0x3] }
 0x1e0   : > { %v1111_v42 = vsel %vm827_vm3, %v1109_v15, %v1110_v41  ;;  %v1182_v15 = vadd.f32 %v1181_v19, %v1178_v46  ;;  %v1318_v19 = vstv %s3647_s18  ;;  %v1308_v4 = vstv %s3649_s22  ;;  %s2732_s18 = sld [smem:[#allocation13 + $0x10b]]  ;;  %s2685_s22 = sld [smem:[#allocation13 + $0x7]] }
 0x1e1   : > { %v908_v35 = vadd.f32 %v907_v24, %v905_v5  ;;  %v1113_v43 = vadd.f32 %v1111_v42, %v1062_v17  ;;  %v1242_v24 = vmul.f32 %v1241_v21, %v3327_v12  ;;  %v1273_v42 = vadd.f32 %v1272_v34, %v1269_v63 }
 0x1e3   : > { %v1171_v49 = vmul.f32 0.1, %v908_v35  ;;  %v1166_v18 = vadd.f32 %v1164_v36, %v1113_v43  ;;  %vm1170_vm5 = vcmp.gt.f32.partialorder %v908_v35, 0.0  ;;  %v1243_v22 = vadd.f32 %v1242_v24, %v1239_v9 }
 0x1e4   : > { %v1235_v36 = vstv %s3627_s28  ;;  %s2731_s28 = sld [smem:[#allocation13 + $0x106]]  ;;  %v2135_v24 = vstv %s2757_s12  ;;  %s2710_s12 = sld [smem:[#allocation13 + $0x87]] }
 0x1e5   : > { %v1169_v51 = vadd.f32 %v1168_v44, %v1166_v18  ;;  %v1172_v40 = vsel %vm1170_vm5, %v908_v35, %v1171_v49 }
 0x1e6   : > { %v1216_v52 = vmul.f32 %v1215_v45, %v1172_v40  ;;  %v1185_v53 = vmul.f32 %v1184_v50, %v1172_v40  ;;  %v1276_v31 = vmul.f32 %v1275_v29, %v1172_v40  ;;  %v1246_v26 = vmul.f32 %v1245_v57, %v1172_v40 }
 0x1e7   : > { %v1174_v25 = vmul.f32 0.1, %v1169_v51  ;;  %vm1173_vm7 = vcmp.gt.f32.partialorder %v1169_v51, 0.0  ;;  %v1205_v45 = vstv %s3629_s16  ;;  %s2706_s16 = sld [smem:[#allocation13 + $0x8b]] }
 0x1e8   : > { %1218 = vrot.lane.b32.xlu1 %v1216_v52, %s3071_s25  ;;  %1187 = vrot.lane.b32.xlu0 %v1185_v53, %s3071_s25 }
 0x1e9   : > { %v1175_v38 = vsel %vm1173_vm7, %v1169_v51, %v1174_v25 }
 0x1ea   : > { %v1226_v14 = vmul.f32 %v1225_v56, %v1175_v38  ;;  %v1196_v48 = vmul.f32 %v1195_v58, %v1175_v38  ;;  %v1286_v61 = vmul.f32 %v1285_v59, %v1175_v38  ;;  %v1256_v62 = vmul.f32 %v1255_v60, %v1175_v38  ;;  %v2892_v60 = vld [vmem:[%s3272_s10 + $0x1] ss:$8 sm:$0x3] }
 0x1eb   : > { %v1295_v58 = vstv %s3637_s26  ;;  %s2681_s26 = sld [smem:[#allocation13 + $0xb]] }
 0x1ec   : > { %1278 = vrot.lane.b32.xlu1 %v1276_v31, %s3071_s25  ;;  %1248 = vrot.lane.b32.xlu0 %v1246_v26, %s3071_s25 }
 0x1f0   : > { %1228 = vrot.lane.b32.xlu1 %v1226_v14, %s3071_s25  ;;  %1198 = vrot.lane.b32.xlu0 %v1196_v48, %s3071_s25  ;;  %v1265_v48 = vstv %s3639_s17  ;;  %s2758_s17 = sld [smem:[#allocation13 + $0x18b]] }
 0x1f4   : > { %1288 = vrot.lane.b32.xlu1 %v1286_v61, %s3071_s25  ;;  %1258 = vrot.lane.b32.xlu0 %v1256_v62, %s3071_s25  ;;  %v2893_v62 = vld [vmem:[%s3272_s10] ss:$8 sm:$0x3] }
 0x25a   : > { %v1219_v33 = vpop.permute.xlu1 %1218  ;;  %v1188_v3 = vpop.permute.xlu0 %1187 }
 0x25b   : > { %v1220_v28 = vrot.slane %v1219_v33, 1  ;;  %v1189_v8 = vrot.slane %v1188_v3, 1 }
 0x25d   : > { %v1221_v32 = vsel %vm1190_vm8, %v1219_v33, %v1220_v28  ;;  %v1191_v55 = vsel %vm1190_vm8, %v1188_v3, %v1189_v8  ;;  %v2894_v3 = vld [vmem:[%s3272_s10 + $0x3] ss:$8 sm:$0x3]  ;;  %v1613_v8 = vstv %s2705_s13  ;;  %s2690_s13 = sld [smem:[#allocation13 + $0x8]] }
 0x25e   : > { %v1279_v30 = vpop.permute.xlu1 %1278  ;;  %v1249_v27 = vpop.permute.xlu0 %1248  ;;  %v1223_v43 = vadd.f32 %v1221_v32, %v1213_v10  ;;  %v1193_v44 = vadd.f32 %v1191_v55, %v1182_v15  ;;  %v1874_v15 = vstv %s2731_s28  ;;  %s2736_s28 = sld [smem:[#allocation13 + $0x107]] }
 0x25f   : > { %v1280_v41 = vrot.slane %v1279_v30, 1  ;;  %v1250_v37 = vrot.slane %v1249_v27, 1 }
 0x261   : > { %v1281_v49 = vsel %vm1190_vm8, %v1279_v30, %v1280_v41  ;;  %v1251_v18 = vsel %vm1190_vm8, %v1249_v27, %v1250_v37  ;;  %v1354_v27 = vstv %s2680_s24  ;;  %v1623_v41 = vstv %s2706_s16  ;;  %s2715_s24 = sld [smem:[#allocation13 + $0x88]] }
 0x262   : > { %v1229_v5 = vpop.permute.xlu1 %1228  ;;  %v1199_v17 = vpop.permute.xlu0 %1198  ;;  %v1283_v31 = vadd.f32 %v1281_v49, %v1273_v42  ;;  %v1253_v26 = vadd.f32 %v1251_v18, %v1243_v22  ;;  %v1364_v37 = vstv %s2681_s26  ;;  %v2145_v42 = vstv %s2758_s17  ;;  %s2733_s16 = sld [smem:[#allocation13 + $0x110]] }
 0x263   : > { %v1230_v35 = vrot.slane %v1229_v5, 1  ;;  %v1200_v12 = vrot.slane %v1199_v17, 1  ;;  %v1884_v22 = vstv %s2732_s18  ;;  %s2759_s26 = sld [smem:[#allocation13 + $0x190]] }
 0x264   : > { %s2741_s17 = sld [smem:[#allocation13 + $0x108]] }
 0x265   : > { %v1231_v50 = vsel %vm1190_vm8, %v1229_v5, %v1230_v35  ;;  %v1201_v51 = vsel %vm1190_vm8, %v1199_v17, %v1200_v12  ;;  %s2767_s18 = sld [smem:[#allocation13 + $0x188]] }
 0x266   : > { %v1233_v40 = vadd.f32 %v1231_v50, %v1223_v43  ;;  %v1203_v52 = vadd.f32 %v1201_v51, %v1193_v44  ;;  %v1289_v53 = vpop.permute.xlu1 %1288  ;;  %v1259_v25 = vpop.permute.xlu0 %1258  ;;  %v1407_v44 = vstv %s2685_s22  ;;  %v1634_v51 = vstv %s2707_s21  ;;  %s2762_s22 = sld [smem:[#allocation13 + $0x187]]  ;;  %s2683_s21 = sld [smem:[#allocation13 + $0x15]] }
 0x267   : > { %v1290_v29 = vrot.slane %v1289_v53, 1  ;;  %v1260_v57 = vrot.slane %v1259_v25, 1 }
 0x268   : > { %v1236_v38 = vadd.f32 %v1235_v36, %v1233_v40  ;;  %v1206_v56 = vadd.f32 %v1205_v45, %v1203_v52  ;;  %v1375_v45 = vstv %s2682_s20  ;;  %v1459_v40 = vstv %s2690_s13  ;;  %s2686_s20 = sld [smem:[#allocation13 + $0xc]]  ;;  %s2695_s13 = sld [smem:[#allocation13 + $0x9]] }
 0x269   : > { %v1291_v14 = vsel %vm1190_vm8, %v1289_v53, %v1290_v29  ;;  %v1261_v59 = vsel %vm1190_vm8, %v1259_v25, %v1260_v57  ;;  %v1718_v29 = vstv %s2715_s24  ;;  %v1666_v57 = vstv %s2710_s12  ;;  %s2691_s24 = sld [smem:[#allocation13 + $0xd]]  ;;  %s2711_s12 = sld [smem:[#allocation13 + $0x8c]] }
 0x26a   : > { %v2362_v61 = vadd.f32 %v2892_v60, %v1236_v38  ;;  %1298 = vst.msk [vmem:[#allocation2 + $0x5] ss:$4 sm:$0x3] %vm3322_vm6, %v1236_v38  ;;  %v2343_v1 = vadd.f32 %v2893_v62, %v1206_v56  ;;  %1297 = vst.msk [vmem:[#allocation2 + $0x4] ss:$4 sm:$0x3] %vm3322_vm6, %v1206_v56  ;;  %v1293_v47 = vadd.f32 %v1291_v14, %v1283_v31  ;;  %v1927_v56 = vstv %s2736_s28 }
 0x26b   : > { %v1263_v54 = vadd.f32 %v1261_v59, %v1253_v26  ;;  %v1895_v14 = vstv %s2733_s16  ;;  %v1979_v62 = vstv %s2741_s17  ;;  %s2708_s28 = sld [smem:[#allocation13 + $0x95]]  ;;  %s2720_s16 = sld [smem:[#allocation13 + $0x89]] }
 0x26c   : > { %2778 = vst.msk [vmem:[%s3656_s27 + $0x1] ss:$8 sm:$0x3] %vm3322_vm6, %v2362_v61  ;;  %2344 = vst.msk [vmem:[%s3656_s27] ss:$8 sm:$0x3] %vm3322_vm6, %v2343_v1  ;;  %v1296_v2 = vadd.f32 %v1295_v58, %v1293_v47  ;;  %v2156_v61 = vstv %s2759_s26 }
 0x26d   : > { %v1266_v33 = vadd.f32 %v1265_v48, %v1263_v54  ;;  %s2716_s26 = sld [smem:[#allocation13 + $0x8d]]  ;;  %s2737_s17 = sld [smem:[#allocation13 + $0x10c]] }
 0x26e   : > { %1302 = vst.msk [vmem:[#allocation2 + $0x7] ss:$4 sm:$0x3] %vm3322_vm6, %v1296_v2  ;;  %v2402_v23 = vadd.f32 %v2894_v3, %v1296_v2  ;;  %v2240_v2 = vstv %s2767_s18  ;;  %s2734_s18 = sld [smem:[#allocation13 + $0x115]] }
 0x26f   : > { %1300 = vst.msk [vmem:[#allocation2 + $0x6] ss:$4 sm:$0x3] %vm3322_vm6, %v1266_v33  ;;  %v2382_v46 = vadd.f32 %v2895_v20, %v1266_v33  ;;  %v2188_v33 = vstv %s2762_s22  ;;  %s2746_s22 = sld [smem:[#allocation13 + $0x109]] }
 0x270   : > { %2782 = vst.msk [vmem:[%s3656_s27 + $0x3] ss:$8 sm:$0x3] %vm3322_vm6, %v2402_v23 }
 0x271   : > { %2780 = vst.msk [vmem:[%s3656_s27 + $0x2] ss:$8 sm:$0x3] %vm3322_vm6, %v2382_v46  ;;  %v1303_v6 = vld [vmem:[#allocation2] ss:$4 sm:$0x7]  ;;  %v1418_v46 = vstv %s2686_s20 }
 0x272   : > { %v1319_v16 = vmul.f32 %v1318_v19, %v1303_v6  ;;  %v1309_v21 = vmul.f32 %v1308_v4, %v1303_v6  ;;  %v3688_v28 = vld [vmem:[#allocation2 + $0x1] ss:$4 sm:$0x7]  ;;  %v3690_v30 = vld [vmem:[#allocation2] ss:$4 sm:$0x7]  ;;  %v1385_v19 = vstv %s2683_s21 }
 0x273   : > { %v1614_v63 = vmul.f32 %v1613_v8, %v3688_v28  ;;  %v1355_v34 = vmul.f32 %v1354_v27, %v3690_v30  ;;  %v1624_v5 = vmul.f32 %v1623_v41, %v3688_v28  ;;  %v1365_v17 = vmul.f32 %v1364_v37, %v3690_v30  ;;  %v3712_v43 = vld [vmem:[#allocation2] ss:$4 sm:$0x7]  ;;  %v3717_v50 = vld [vmem:[#allocation2 + $0x5] ss:$4 sm:$0x7] }
 0x274   : > { %1321 = vrot.lane.b32.xlu1 %v1319_v16, %s3062_s14  ;;  %1311 = vrot.lane.b32.xlu0 %v1309_v21, %s3060_s11  ;;  %v1373_v36 = vld [vmem:[#allocation2 + $0x4] ss:$4 sm:$0x7]  ;;  %v1408_v49 = vmul.f32 %v1407_v44, %v3712_v43  ;;  %v1635_v52 = vmul.f32 %v1634_v51, %v3717_v50  ;;  %v1460_v53 = vmul.f32 %v1459_v40, %v3712_v43  ;;  %v3723_v25 = vld [vmem:[#allocation2 + $0x1] ss:$4 sm:$0x7]  ;;  %v1511_v21 = vstv %s2695_s13 }
 0x275   : > { %v3696_v9 = vld [vmem:[#allocation2 + $0x3] ss:$4 sm:$0x7]  ;;  %v1376_v18 = vmul.f32 %v1375_v45, %v1373_v36  ;;  %v1719_v31 = vmul.f32 %v1718_v29, %v3723_v25  ;;  %v1667_v26 = vmul.f32 %v1666_v57, %v3723_v25  ;;  %v1416_v20 = vld [vmem:[#allocation2 + $0x4] ss:$4 sm:$0x3]  ;;  %v1386_v6 = vmul.f32 %v1385_v19, %v1373_v36 }
 0x276   : > { %v3698_v10 = vld [vmem:[#allocation2 + $0x2] ss:$4 sm:$0x7]  ;;  %v2136_v32 = vmul.f32 %v2135_v24, %v3696_v9  ;;  %v2146_v35 = vmul.f32 %v2145_v42, %v3696_v9  ;;  %v3737_v60 = vld [vmem:[#allocation2 + $0x7] ss:$4 sm:$0x7]  ;;  %v1419_v4 = vmul.f32 %v1418_v46, %v1416_v20  ;;  %v1469_v27 = vstv %s2691_s24 }
 0x277   : > { %v1875_v55 = vmul.f32 %v1874_v15, %v3698_v10  ;;  %v1885_v12 = vmul.f32 %v1884_v22, %v3698_v10  ;;  %v3729_v38 = vld [vmem:[#allocation2 + $0x2] ss:$4 sm:$0x7]  ;;  %v2157_v1 = vmul.f32 %v2156_v61, %v3737_v60  ;;  %v3743_v54 = vld [vmem:[#allocation2 + $0x3] ss:$4 sm:$0x7]  ;;  %v1677_v15 = vstv %s2711_s12 }
 0x278   : > { %1616 = vrot.lane.b32.xlu1 %v1614_v63, %s3060_s11  ;;  %1357 = vrot.lane.b32.xlu0 %v1355_v34, %s3060_s11  ;;  %v3731_v58 = vld [vmem:[#allocation2 + $0x6] ss:$4 sm:$0x7]  ;;  %v1928_v48 = vmul.f32 %v1927_v56, %v3729_v38  ;;  %v1980_v47 = vmul.f32 %v1979_v62, %v3729_v38  ;;  %v2241_v3 = vmul.f32 %v2240_v2, %v3743_v54  ;;  %v3751_v16 = vld [vmem:[#allocation2] ss:$4 sm:$0x7]  ;;  %v1728_v42 = vstv %s2716_s26 }
 0x279   : > { %v1896_v59 = vmul.f32 %v1895_v14, %v3731_v58  ;;  %v2189_v23 = vmul.f32 %v2188_v33, %v3743_v54  ;;  %v3753_v8 = vld [vmem:[#allocation2 + $0x4] ss:$4 sm:$0x7]  ;;  %v1512_v63 = vmul.f32 %v1511_v21, %v3751_v16  ;;  %v1675_v24 = vld [vmem:[#allocation2 + $0x5] ss:$4 sm:$0x3]  ;;  %v1938_v44 = vstv %s2737_s17 }
 0x27a   : > { %v1470_v34 = vmul.f32 %v1469_v27, %v3753_v8  ;;  %s2742_s20 = sld [smem:[#allocation13 + $0x10d]]  ;;  %v3762_v37 = vld [vmem:[#allocation2 + $0x1] ss:$4 sm:$0x7]  ;;  %s2763_s21 = sld [smem:[#allocation13 + $0x18c]]  ;;  %v1905_v36 = vstv %s2734_s18 }
 0x27b   : > { %s2760_s13 = sld [smem:[#allocation13 + $0x195]]  ;;  %s2772_s24 = sld [smem:[#allocation13 + $0x189]]  ;;  %v3775_v51 = vld [vmem:[#allocation2 + $0x6] ss:$4 sm:$0x7] }
 0x27c   : > { %2138 = vrot.lane.b32.xlu1 %v2136_v32, %s3060_s11  ;;  %1877 = vrot.lane.b32.xlu0 %v1875_v55, %s3060_s11  ;;  %v1644_v32 = vstv %s2708_s28  ;;  %v1678_v55 = vmul.f32 %v1677_v15, %v1675_v24  ;;  %s2768_s12 = sld [smem:[#allocation13 + $0x18d]]  ;;  %s2692_s28 = sld [smem:[#allocation13 + $0x12]]  ;;  %v2197_v29 = vld [vmem:[#allocation2 + $0x7] ss:$4 sm:$0x3] }
 0x27d   : > { %v1645_v41 = vmul.f32 %v1644_v32, %v3717_v50  ;;  %v2031_v50 = vstv %s2746_s22  ;;  %s2712_s26 = sld [smem:[#allocation13 + $0x91]]  ;;  %s2696_s17 = sld [smem:[#allocation13 + $0xe]]  ;;  %v3802_v19 = vld [vmem:[#allocation2 + $0x5] ss:$4 sm:$0x7] }
 0x27e   : > { %s2721_s18 = sld [smem:[#allocation13 + $0x8e]]  ;;  %s2717_s22 = sld [smem:[#allocation13 + $0x92]] }
 0x280   : > { %1626 = vrot.lane.b32.xlu1 %v1624_v5, %s3062_s14  ;;  %1367 = vrot.lane.b32.xlu0 %v1365_v17, %s3062_s14  ;;  %v1770_v5 = vstv %s2720_s16  ;;  %v3764_v17 = vld [vmem:[#allocation2 + $0x5] ss:$4 sm:$0x7]  ;;  %v1989_v40 = vstv %s2742_s20  ;;  %s2687_s16 = sld [smem:[#allocation13 + $0x11]]  ;;  %s2743_s20 = sld [smem:[#allocation13 + $0x112]] }
 0x281   : > { %v1771_v22 = vmul.f32 %v1770_v5, %v3762_v37  ;;  %v2199_v57 = vstv %s2763_s21  ;;  %v2292_v14 = vstv %s2772_s24  ;;  %s2738_s21 = sld [smem:[#allocation13 + $0x111]]  ;;  %s2747_s24 = sld [smem:[#allocation13 + $0x10e]] }
 0x283   : > { %v1688_v33 = vstv %s2712_s26  ;;  %s2688_s26 = sld [smem:[#allocation13 + $0x16]] }
 0x284   : > { %2148 = vrot.lane.b32.xlu1 %v2146_v35, %s3062_s14  ;;  %1887 = vrot.lane.b32.xlu0 %v1885_v12, %s3062_s14  ;;  %v1729_v35 = vmul.f32 %v1728_v42, %v3764_v17  ;;  %v1936_v12 = vld [vmem:[#allocation2 + $0x6] ss:$4 sm:$0x3]  ;;  %v1689_v20 = vmul.f32 %v1688_v33, %v3764_v17 }
 0x285   : > { %v1939_v45 = vmul.f32 %v1938_v44, %v1936_v12 }
 0x288   : > { %1410 = vrot.lane.b32.xlu1 %v1408_v49, %s3060_s11  ;;  %1378 = vrot.lane.b32.xlu0 %v1376_v18, %s3061_s19  ;;  %v1906_v49 = vmul.f32 %v1905_v36, %v3731_v58  ;;  %v3773_v18 = vld [vmem:[#allocation2 + $0x2] ss:$4 sm:$0x7]  ;;  %v3784_v58 = vld [vmem:[#allocation2 + $0x3] ss:$4 sm:$0x7] }
 0x289   : > { %v2293_v61 = vmul.f32 %v2292_v14, %v3784_v58 }
 0x28c   : > { %1637 = vrot.lane.b32.xlu1 %v1635_v52, %s3061_s19  ;;  %1462 = vrot.lane.b32.xlu0 %v1460_v53, %s3060_s11  ;;  %v2032_v52 = vmul.f32 %v2031_v50, %v3773_v18  ;;  %v1990_v53 = vmul.f32 %v1989_v40, %v3775_v51 }
 0x290   : > { %1721 = vrot.lane.b32.xlu1 %v1719_v31, %s3060_s11  ;;  %1669 = vrot.lane.b32.xlu0 %v1667_v26, %s3060_s11  ;;  %v2166_v31 = vstv %s2760_s13  ;;  %v2200_v26 = vmul.f32 %v2199_v57, %v2197_v29  ;;  %s2764_s13 = sld [smem:[#allocation13 + $0x191]] }
 0x291   : > { %v2167_v56 = vmul.f32 %v2166_v31, %v3737_v60 }
 0x294   : > { %1930 = vrot.lane.b32.xlu1 %v1928_v48, %s3060_s11  ;;  %1898 = vrot.lane.b32.xlu0 %v1896_v59, %s3061_s19  ;;  %v3786_v48 = vld [vmem:[#allocation2 + $0x7] ss:$4 sm:$0x7]  ;;  %v2250_v59 = vstv %s2768_s12  ;;  %s2773_s12 = sld [smem:[#allocation13 + $0x18e]] }
 0x295   : > { %v2251_v62 = vmul.f32 %v2250_v59, %v3786_v48 }
 0x296   : > { %v2210_v32 = vstv %s2764_s13  ;;  %s2739_s13 = sld [smem:[#allocation13 + $0x116]] }
 0x297   : > { %v2211_v5 = vmul.f32 %v2210_v32, %v3786_v48 }
 0x298   : > { %2159 = vrot.lane.b32.xlu1 %v2157_v1, %s3061_s19  ;;  %1982 = vrot.lane.b32.xlu0 %v1980_v47, %s3060_s11  ;;  %v1479_v1 = vstv %s2692_s28  ;;  %v1429_v47 = vstv %s2687_s16  ;;  %s2769_s28 = sld [smem:[#allocation13 + $0x192]]  ;;  %s2693_s16 = sld [smem:[#allocation13 + $0x17]] }
 0x299   : > { %v1480_v60 = vmul.f32 %v1479_v1, %v3753_v8  ;;  %v1430_v2 = vmul.f32 %v1429_v47, %v3753_v8 }
 0x29c   : > { %2243 = vrot.lane.b32.xlu1 %v2241_v3, %s3060_s11  ;;  %2191 = vrot.lane.b32.xlu0 %v2189_v23, %s3060_s11  ;;  %v3796_v3 = vld [vmem:[#allocation2 + $0x4] ss:$4 sm:$0x7]  ;;  %v1522_v23 = vstv %s2696_s17  ;;  %s2713_s17 = sld [smem:[#allocation13 + $0x96]]  ;;  %v1959_v59 = vstv %s2739_s13  ;;  %s3860_s13 = sld [smem:[#allocation13 + $0x181]] }
 0x29d   : > { %v1523_v46 = vmul.f32 %v1522_v23, %v3796_v3 }
 0x29e   : > { %v2260_v12 = vstv %s2769_s28  ;;  %s2774_s28 = sld [smem:[#allocation13 + $0x193]] }
 0x29f   : > { %v2261_v36 = vmul.f32 %v2260_v12, %v3786_v48 }
 0x2a0   : > { %1421 = vrot.lane.b32.xlu1 %v1419_v4, %s3062_s14  ;;  %1388 = vrot.lane.b32.xlu0 %v1386_v6, %s3063_s23  ;;  %v1781_v4 = vstv %s2721_s18  ;;  %v1738_v6 = vstv %s2717_s22  ;;  %s2697_s18 = sld [smem:[#allocation13 + $0x13]] }
 0x2a1   : > { %v1782_v21 = vmul.f32 %v1781_v4, %v3802_v19  ;;  %v1739_v27 = vmul.f32 %v1738_v6, %v3764_v17  ;;  %s2722_s22 = sld [smem:[#allocation13 + $0x93]] }
 0x2a4   : > { %1514 = vrot.lane.b32.xlu1 %v1512_v63, %s3060_s11  ;;  %1472 = vrot.lane.b32.xlu0 %v1470_v34, %s3062_s14  ;;  %v1999_v63 = vstv %s2743_s20  ;;  %v1949_v34 = vstv %s2738_s21  ;;  %s2718_s20 = sld [smem:[#allocation13 + $0x97]] }
 0x2a5   : > { %v2000_v24 = vmul.f32 %v1999_v63, %v3775_v51  ;;  %v1950_v15 = vmul.f32 %v1949_v34, %v3775_v51  ;;  %s2744_s21 = sld [smem:[#allocation13 + $0x117]] }
 0x2a7   : > { %v1791_v31 = vstv %s2722_s22  ;;  %s3850_s22 = sld [smem:[#allocation13 + $0x1]] }
 0x2a8   : > { %1680 = vrot.lane.b32.xlu1 %v1678_v55, %s3062_s14  ;;  %1647 = vrot.lane.b32.xlu0 %v1645_v41, %s3063_s23  ;;  %v3812_v55 = vld [vmem:[#allocation2 + $0x6] ss:$4 sm:$0x7]  ;;  %v2042_v41 = vstv %s2747_s24  ;;  %s2765_s24 = sld [smem:[#allocation13 + $0x196]] }
 0x2a9   : > { %v2043_v42 = vmul.f32 %v2042_v41, %v3812_v55 }
 0x2ab   : > { %v2009_v14 = vstv %s2744_s21  ;;  %s3854_s21 = sld [smem:[#allocation13 + $0x118]] }
 0x2ac   : > { %1773 = vrot.lane.b32.xlu1 %v1771_v22, %s3060_s11  ;;  %1731 = vrot.lane.b32.xlu0 %v1729_v35, %s3062_s14  ;;  %v3818_v22 = vld [vmem:[#allocation2 + $0x7] ss:$4 sm:$0x7]  ;;  %v2303_v35 = vstv %s2773_s12  ;;  %s2748_s12 = sld [smem:[#allocation13 + $0x113]] }
 0x2ad   : > { %v2304_v44 = vmul.f32 %v2303_v35, %v3818_v22 }
 0x2ae   : > { %v2220_v1 = vstv %s2765_s24  ;;  %s3862_s24 = sld [smem:[#allocation13 + $0x101]] }
 0x2b0   : > { %1941 = vrot.lane.b32.xlu1 %v1939_v45, %s3062_s14  ;;  %1908 = vrot.lane.b32.xlu0 %v1906_v49, %s3063_s23  ;;  %v1489_v45 = vstv %s2693_s16  ;;  %v1439_v49 = vstv %s2688_s26  ;;  %s2770_s16 = sld [smem:[#allocation13 + $0x197]]  ;;  %s2723_s26 = sld [smem:[#allocation13 + $0x98]] }
 0x2b1   : > { %v1490_v50 = vmul.f32 %v1489_v45, %v3753_v8  ;;  %v1440_v40 = vmul.f32 %v1439_v49, %v3753_v8  ;;  %v1792_v8 = vmul.f32 %v1791_v31, %v3802_v19  ;;  %v2062_v35 = vstv %s3854_s21  ;;  %s3921_s21 = sld [smem:[#allocation13 + $0x83]] }
 0x2b2   : > { %v2052_v47 = vstv %s2748_s12  ;;  %s3872_s12 = sld [smem:[#allocation13 + $0x85]] }
 0x2b3   : > { %v2053_v33 = vmul.f32 %v2052_v47, %v3812_v55  ;;  %v3906_v47 = vld [vmem:[#allocation2 + $0x1] ss:$4 sm:$0x7] }
 0x2b4   : > { %2034 = vrot.lane.b32.xlu1 %v2032_v52, %s3060_s11  ;;  %1992 = vrot.lane.b32.xlu0 %v1990_v53, %s3062_s14  ;;  %v1698_v52 = vstv %s2713_s17  ;;  %v1532_v53 = vstv %s2697_s18  ;;  %s2698_s17 = sld [smem:[#allocation13 + $0x18]]  ;;  %s3848_s18 = sld [smem:[#allocation13 + $0x81]] }
 0x2b5   : > { %v1699_v29 = vmul.f32 %v1698_v52, %v3764_v17  ;;  %v1533_v57 = vmul.f32 %v1532_v53, %v3796_v3  ;;  %v2063_v52 = vmul.f32 %v2062_v35, %v3812_v55  ;;  %v2132_v53 = vstv %s3860_s13  ;;  %s3923_s13 = sld [smem:[#allocation13 + $0x82]] }
 0x2b6   : > { %v2270_v23 = vstv %s2770_s16  ;;  %s3880_s16 = sld [smem:[#allocation13 + $0x2]] }
 0x2b7   : > { %v2271_v6 = vmul.f32 %v2270_v23, %v3786_v48  ;;  %v3911_v23 = vld [vmem:[#allocation2 + $0x2] ss:$4 sm:$0x7] }
 0x2b8   : > { %2202 = vrot.lane.b32.xlu1 %v2200_v26, %s3062_s14  ;;  %2169 = vrot.lane.b32.xlu0 %v2167_v56, %s3063_s23  ;;  %v1748_v26 = vstv %s2718_s20  ;;  %s3852_s20 = sld [smem:[#allocation13 + $0x198]] }
 0x2b9   : > { %v1749_v56 = vmul.f32 %v1748_v26, %v3764_v17 }
 0x2bc   : > { %2295 = vrot.lane.b32.xlu1 %v2293_v61, %s3060_s11  ;;  %2253 = vrot.lane.b32.xlu0 %v2251_v62, %s3062_s14  ;;  %v2010_v61 = vmul.f32 %v2009_v14, %v3775_v51  ;;  %v1960_v62 = vmul.f32 %v1959_v59, %v3775_v51  ;;  %v2313_v51 = vstv %s2774_s28  ;;  %s3874_s28 = sld [smem:[#allocation13 + $0x105]] }
 0x2bd   : > { %v2314_v4 = vmul.f32 %v2313_v51, %v3818_v22  ;;  %v1567_v51 = vstv %s3872_s12  ;;  %s3933_s12 = sld [smem:[#allocation13 + $0x8f]] }
 0x2c0   : > { %1482 = vrot.lane.b32.xlu1 %v1480_v60, %s3061_s19  ;;  %1432 = vrot.lane.b32.xlu0 %v1430_v2, %s3061_s19  ;;  %v2221_v2 = vmul.f32 %v2220_v1, %v3786_v48  ;;  %v1610_v48 = vstv %s3848_s18  ;;  %s3898_s18 = sld [smem:[#allocation13 + $0x3]] }
 0x2c4   : > { %1691 = vrot.lane.b32.xlu1 %v1689_v20, %s3061_s19  ;;  %1525 = vrot.lane.b32.xlu0 %v1523_v46, %s3062_s14 }
 0x2c8   : > { %1784 = vrot.lane.b32.xlu1 %v1782_v21, %s3062_s14  ;;  %1741 = vrot.lane.b32.xlu0 %v1739_v27, %s3061_s19  ;;  %v1801_v21 = vstv %s2723_s26  ;;  %v1542_v27 = vstv %s2698_s17  ;;  %s3888_s26 = sld [smem:[#allocation13 + $0x185]]  ;;  %s3890_s17 = sld [smem:[#allocation13 + $0x8a]] }
 0x2c9   : > { %v1802_v32 = vmul.f32 %v1801_v21, %v3802_v19  ;;  %v1543_v41 = vmul.f32 %v1542_v27, %v3796_v3  ;;  %v1404_v27 = vstv %s3880_s16  ;;  %s3955_s16 = sld [smem:[#allocation13 + $0x10f]] }
 0x2cc   : > { %2002 = vrot.lane.b32.xlu1 %v2000_v24, %s3061_s19  ;;  %1952 = vrot.lane.b32.xlu0 %v1950_v15, %s3061_s19 }
 0x2ce   : > { %v2088_v35 = vstv %s3888_s26  ;;  %s3957_s26 = sld [smem:[#allocation13 + $0x18f]] }
 0x2d0   : > { %2213 = vrot.lane.b32.xlu1 %v2211_v5, %s3061_s19  ;;  %2045 = vrot.lane.b32.xlu0 %v2043_v42, %s3062_s14  ;;  %v1351_v5 = vstv %s3850_s22  ;;  %v2323_v42 = vstv %s3852_s20  ;;  %s3900_s22 = sld [smem:[#allocation13 + $0x10a]] }
 0x2d1   : > { %v1352_v45 = vmul.f32 %v1351_v5, %v3690_v30  ;;  %s3908_s20 = sld [smem:[#allocation13 + $0x18a]] }
 0x2d4   : > { %2306 = vrot.lane.b32.xlu1 %v2304_v44, %s3062_s14  ;;  %2263 = vrot.lane.b32.xlu0 %v2261_v36, %s3061_s19  ;;  %v1611_v36 = vmul.f32 %v1610_v48, %v3688_v28 }
 0x2d8   : > { %1492 = vrot.lane.b32.xlu1 %v1490_v50, %s3063_s23  ;;  %1442 = vrot.lane.b32.xlu0 %v1440_v40, %s3063_s23  ;;  %v2324_v40 = vmul.f32 %v2323_v42, %v3818_v22  ;;  %v3935_v42 = vld [vmem:[#allocation2 + $0x3] ss:$4 sm:$0x7] }
 0x2dc   : > { %1701 = vrot.lane.b32.xlu1 %v1699_v29, %s3063_s23  ;;  %1535 = vrot.lane.b32.xlu0 %v1533_v57, %s3061_s19  ;;  %v1871_v29 = vstv %s3862_s24  ;;  %s3931_s24 = sld [smem:[#allocation13 + $0xf]] }
 0x2dd   : > { %v1872_v14 = vmul.f32 %v1871_v29, %v3698_v10  ;;  %v2896_v10 = vld [vmem:[%s3272_s10 + $0x5] ss:$8 sm:$0x3] }
 0x2e0   : > { %1794 = vrot.lane.b32.xlu1 %v1792_v8, %s3061_s19  ;;  %1751 = vrot.lane.b32.xlu0 %v1749_v56, %s3063_s23  ;;  %v2133_v56 = vmul.f32 %v2132_v53, %v3696_v9 }
 0x2e4   : > { %2012 = vrot.lane.b32.xlu1 %v2010_v61, %s3063_s23  ;;  %1962 = vrot.lane.b32.xlu0 %v1960_v62, %s3063_s23 }
 0x2e6   : > { %v3842_v17 = vpop.permute.xlu1 %1321  ;;  %v3844_v60 = vpop.permute.xlu0 %1311 }
 0x2e8   : > { %2223 = vrot.lane.b32.xlu1 %v2221_v2, %s3063_s23  ;;  %2055 = vrot.lane.b32.xlu0 %v2053_v33, %s3061_s19 }
 0x2ea   : > { %v1617_v20 = vpop.permute.xlu1 %1616  ;;  %v1358_v46 = vpop.permute.xlu0 %1357 }
 0x2eb   : > { %v1618_v63 = vrot.slane %v1617_v20, 1  ;;  %v1359_v34 = vrot.slane %v1358_v46, 1 }
 0x2ec   : > { %2316 = vrot.lane.b32.xlu1 %v2314_v4, %s3061_s19  ;;  %2273 = vrot.lane.b32.xlu0 %v2271_v6, %s3063_s23  ;;  %v2897_v4 = vld [vmem:[%s3272_s10 + $0x4] ss:$8 sm:$0x3] }
 0x2ed   : > { %v1619_v12 = vsel %vm587_vm9, %v1617_v20, %v1618_v63  ;;  %v1360_v19 = vsel %vm587_vm9, %v1358_v46, %v1359_v34  ;;  %v1827_v20 = vstv %s3874_s28  ;;  %s3945_s28 = sld [smem:[#allocation13 + $0x102]] }
 0x2ee   : > { %v2139_v24 = vpop.permute.xlu1 %2138  ;;  %v1878_v15 = vpop.permute.xlu0 %1877  ;;  %v1621_v26 = vadd.f32 %v1619_v12, %v1611_v36  ;;  %v1362_v8 = vadd.f32 %v1360_v19, %v1352_v45  ;;  %v1577_v12 = vstv %s3890_s17  ;;  %v1405_v19 = vmul.f32 %v1404_v27, %v3712_v43  ;;  %s3966_s17 = sld [smem:[#allocation13 + $0x103]] }
 0x2ef   : > { %v2140_v44 = vrot.slane %v2139_v24, 1  ;;  %v1879_v3 = vrot.slane %v1878_v15, 1  ;;  %v1456_v36 = vstv %s3898_s18  ;;  %v1578_v53 = vmul.f32 %v1577_v12, %v3906_v47  ;;  %s3968_s18 = sld [smem:[#allocation13 + $0x14]] }
 0x2f0   : > { %1804 = vrot.lane.b32.xlu1 %v1802_v32, %s3063_s23  ;;  %1545 = vrot.lane.b32.xlu0 %v1543_v41, %s3063_s23  ;;  %v1568_v32 = vmul.f32 %v1567_v51, %v3906_v47  ;;  %v1828_v41 = vmul.f32 %v1827_v20, %v3911_v23  ;;  %v1329_v20 = vstv %s3931_s24  ;;  %v1849_v12 = vstv %s3955_s16  ;;  %s4106_s24 = sld [smem:[#allocation13 + $0x184]]  ;;  %s2699_s16 = sld [smem:[#allocation13 + $0x80]] }
 0x2f1   : > { %v2141_v28 = vsel %vm587_vm9, %v2139_v24, %v2140_v44  ;;  %v1880_v30 = vsel %vm587_vm9, %v1878_v15, %v1879_v3 }
 0x2f2   : > { %v1627_v49 = vpop.permute.xlu1 %1626  ;;  %v1368_v50 = vpop.permute.xlu0 %1367  ;;  %v2143_v9 = vadd.f32 %v2141_v28, %v2133_v56  ;;  %v1882_v46 = vadd.f32 %v1880_v30, %v1872_v14 }
 0x2f3   : > { %v1628_v57 = vrot.slane %v1627_v49, 1  ;;  %v1369_v31 = vrot.slane %v1368_v50, 1 }
 0x2f4   : > { %2326 = vrot.lane.b32.xlu1 %v2324_v40, %s3063_s23  ;;  %2065 = vrot.lane.b32.xlu0 %v2063_v52, %s3063_s23  ;;  %v2089_v52 = vmul.f32 %v2088_v35, %v3935_v42 }
 0x2f5   : > { %v1629_v55 = vsel %vm598_vm10, %v1627_v49, %v1628_v57  ;;  %v1370_v22 = vsel %vm598_vm10, %v1368_v50, %v1369_v31  ;;  %v1837_v31 = vstv %s3900_s22  ;;  %s3985_s22 = sld [smem:[#allocation13 + $0x183]] }
 0x2f6   : > { %v3904_v59 = vadd.f32 %v1629_v55, %v1621_v26  ;;  %v1372_v61 = vadd.f32 %v1370_v22, %v1362_v8  ;;  %v2149_v62 = vpop.permute.xlu1 %2148  ;;  %v1888_v1 = vpop.permute.xlu0 %1887  ;;  %v2098_v26 = vstv %s3908_s20  ;;  %v1457_v8 = vmul.f32 %v1456_v36, %v3712_v43  ;;  %s3990_s20 = sld [smem:[#allocation13 + $0x182]] }
 0x2f7   : > { %v2150_v2 = vrot.slane %v2149_v62, 1  ;;  %v1889_v33 = vrot.slane %v1888_v1, 1  ;;  %v1715_v55 = vstv %s3921_s21  ;;  %v1663_v22 = vstv %s3923_s13  ;;  %s3992_s21 = sld [smem:[#allocation13 + $0x114]] }
 0x2f8   : > { %2367 = vrot.lane.b32.xlu1 %v2896_v10, %s3066_s15  ;;  %2347 = vrot.lane.b32.xlu0 %v2897_v4, %s3066_s15  ;;  %v1664_v10 = vmul.f32 %v1663_v22, %v3723_v25  ;;  %s4022_s13 = sld [smem:[#allocation13 + $0x4]] }
 0x2f9   : > { %v2151_v6 = vsel %vm598_vm10, %v2149_v62, %v2150_v2  ;;  %v1890_v21 = vsel %vm598_vm10, %v1888_v1, %v1889_v33  ;;  %v1838_v62 = vmul.f32 %v1837_v31, %v3911_v23  ;;  %v2099_v1 = vmul.f32 %v2098_v26, %v3935_v42  ;;  %v1327_v2 = vld [vmem:[#allocation2 + $0x4] ss:$4 sm:$0x7] }
 0x2fa   : > { %v3925_v63 = vadd.f32 %v2151_v6, %v2143_v9  ;;  %v3927_v34 = vadd.f32 %v1890_v21, %v1882_v46  ;;  %v1411_v24 = vpop.permute.xlu1 %1410  ;;  %v1379_v15 = vpop.permute.xlu0 %1378  ;;  %v1586_v9 = vld [vmem:[#allocation2 + $0x5] ss:$4 sm:$0x7]  ;;  %v1588_v46 = vstv %s3933_s12  ;;  %v1924_v21 = vstv %s3945_s28  ;;  %s4393_s12 = smov 127   ;;  %s4395_s28 = smov 124  }
 0x2fb   : > { %v1412_v48 = vrot.slane %v1411_v24, 1  ;;  %v1380_v5 = vrot.slane %v1379_v15, 7 }
 0x2fc   : > { %1570 = vrot.lane.b32.xlu0 %v1568_v32, %s3060_s11  ;;  %1830 = vrot.lane.b32.xlu1 %v1828_v41, %s3060_s11  ;;  %v1330_v32 = vmul.f32 %v1329_v20, %v1327_v2  ;;  %v1589_v41 = vmul.f32 %v1588_v46, %v1586_v9 }
 0x2fd   : > { %v1413_v44 = vsel %vm587_vm9, %v1411_v24, %v1412_v48  ;;  %v1381_v3 = vsel %vm611_vm12, %v1380_v5, %v1379_v15  ;;  %v1847_v48 = vld [vmem:[#allocation2 + $0x6] ss:$4 sm:$0x7] }
 0x2fe   : > { %v3947_v45 = vadd.f32 %v1413_v44, %v1405_v19  ;;  %v3949_v49 = vadd.f32 %v1381_v3, %v1372_v61  ;;  %v1638_v50 = vpop.permute.xlu1 %1637  ;;  %v1463_v40 = vpop.permute.xlu0 %1462  ;;  %v2108_v19 = vld [vmem:[#allocation2 + $0x7] ss:$4 sm:$0x7]  ;;  %v2110_v44 = vstv %s3957_s26  ;;  %v1925_v3 = vmul.f32 %v1924_v21, %v3729_v38  ;;  %s2751_s26 = sld [smem:[#allocation13 + $0x180]] }
 0x2ff   : > { %v1639_v29 = vrot.slane %v1638_v50, 7  ;;  %v1464_v57 = vrot.slane %v1463_v40, 1  ;;  %v1850_v31 = vmul.f32 %v1849_v12, %v1847_v48  ;;  %v2111_v26 = vmul.f32 %v2110_v44, %v2108_v19 }
 0x300   : > { %2091 = vrot.lane.b32.xlu0 %v2089_v52, %s3060_s11  ;;  %1580 = vrot.lane.b32.xlu1 %v1578_v53, %s3062_s14  ;;  %s3977_s11 = sld [smem:[#allocation13 + $0x94]]  ;;  %v1508_v44 = vstv %s4022_s13 }
 0x301   : > { %v1640_v28 = vsel %vm611_vm12, %v1639_v29, %v1638_v50  ;;  %v1465_v30 = vsel %vm587_vm9, %v1463_v40, %v1464_v57  ;;  %v1976_v40 = vstv %s3966_s17  ;;  %s4285_s17 = sld [smem:[#allocation14]] }
 0x302   : > { %v3971_v56 = vadd.f32 %v1640_v28, %v3904_v59  ;;  %v3973_v43 = vadd.f32 %v1465_v30, %v1457_v8  ;;  %v1722_v14 = vpop.permute.xlu1 %1721  ;;  %v1670_v61 = vpop.permute.xlu0 %1669  ;;  %v1716_v59 = vmul.f32 %v1715_v55, %v3723_v25  ;;  %v1339_v30 = vstv %s3968_s18  ;;  %s4294_s18 = sld [smem:[#allocation14 + $0x1]] }
 0x303   : > { %v1723_v33 = vrot.slane %v1722_v14, 1  ;;  %v1671_v51 = vrot.slane %v1670_v61, 1  ;;  %v1977_v22 = vmul.f32 %v1976_v40, %v3729_v38  ;;  %v1340_v20 = vmul.f32 %v1339_v30, %v1327_v2 }
 0x304   : > { %1840 = vrot.lane.b32.xlu0 %v1838_v62, %s3062_s14  ;;  %2101 = vrot.lane.b32.xlu1 %v2099_v1, %s3062_s14  ;;  %s3998_s14 = sld [smem:[#allocation13 + $0x194]]  ;;  %v2185_v62 = vstv %s3990_s20 }
 0x305   : > { %v1724_v4 = vsel %vm587_vm9, %v1722_v14, %v1723_v33  ;;  %v1672_v6 = vsel %vm587_vm9, %v1670_v61, %v1671_v51  ;;  %v2237_v61 = vstv %s3985_s22  ;;  %s4317_s22 = sld [smem:[#allocation14 + $0x3]] }
 0x306   : > { %v3994_v27 = vadd.f32 %v1724_v4, %v1716_v59  ;;  %v3996_v25 = vadd.f32 %v1672_v6, %v1664_v10  ;;  %v1931_v24 = vpop.permute.xlu1 %1930  ;;  %v1899_v15 = vpop.permute.xlu0 %1898  ;;  %v1598_v55 = vstv %s3977_s11  ;;  %v1859_v4 = vstv %s3992_s21  ;;  %s4300_s11 = sld [smem:[#allocation14 + $0x2]] }
 0x307   : > { %v1932_v5 = vrot.slane %v1931_v24, 1  ;;  %v1900_v35 = vrot.slane %v1899_v15, 7  ;;  %v1599_v46 = vmul.f32 %v1598_v55, %v1586_v9  ;;  %v2238_v21 = vmul.f32 %v2237_v61, %v3743_v54 }
 0x308   : > { %1332 = vrot.lane.b32.xlu0 %v1330_v32, %s3061_s19  ;;  %1591 = vrot.lane.b32.xlu1 %v1589_v41, %s3061_s19 }
 0x309   : > { %v1933_v36 = vsel %vm587_vm9, %v1931_v24, %v1932_v5  ;;  %v1901_v50 = vsel %vm611_vm12, %v1900_v35, %v1899_v15  ;;  %v2186_v24 = vmul.f32 %v2185_v62, %v3743_v54  ;;  %v1860_v5 = vmul.f32 %v1859_v4, %v1847_v48 }
 0x30a   : > { %v4008_v52 = vadd.f32 %v1933_v36, %v1925_v3  ;;  %v4011_v53 = vadd.f32 %v1901_v50, %v3927_v34  ;;  %v2160_v29 = vpop.permute.xlu1 %2159  ;;  %v1983_v57 = vpop.permute.xlu0 %1982  ;;  %v2120_v6 = vstv %s3998_s14 }
 0x30b   : > { %v2161_v8 = vrot.slane %v2160_v29, 7  ;;  %v1984_v28 = vrot.slane %v1983_v57, 1  ;;  %v2121_v35 = vmul.f32 %v2120_v6, %v2108_v19 }
 0x30c   : > { %1852 = vrot.lane.b32.xlu0 %v1850_v31, %s3061_s19  ;;  %2113 = vrot.lane.b32.xlu1 %v2111_v26, %s3061_s19  ;;  %s2719_s19 = sld [smem:[#allocation13 + $0x84]] }
 0x30d   : > { %v2162_v14 = vsel %vm611_vm12, %v2161_v8, %v2160_v29  ;;  %v1985_v34 = vsel %vm587_vm9, %v1983_v57, %v1984_v28  ;;  %v1509_v57 = vmul.f32 %v1508_v44, %v3751_v16 }
 0x30e   : > { %v4025_v1 = vadd.f32 %v2162_v14, %v3925_v63  ;;  %v4027_v33 = vadd.f32 %v1985_v34, %v1977_v22  ;;  %v2244_v38 = vpop.permute.xlu1 %2243  ;;  %v2192_v51 = vpop.permute.xlu0 %2191 }
 0x30f   : > { %v2245_v59 = vrot.slane %v2244_v38, 1  ;;  %v2193_v10 = vrot.slane %v2192_v51, 1 }
 0x310   : > { %1342 = vrot.lane.b32.xlu0 %v1340_v20, %s3063_s23  ;;  %1601 = vrot.lane.b32.xlu1 %v1599_v46, %s3063_s23 }
 0x311   : > { %v2246_v63 = vsel %vm587_vm9, %v2244_v38, %v2245_v59  ;;  %v2194_v15 = vsel %vm587_vm9, %v2192_v51, %v2193_v10 }
 0x312   : > { %v4037_v32 = vadd.f32 %v2246_v63, %v2238_v21  ;;  %v4039_v2 = vadd.f32 %v2194_v15, %v2186_v24  ;;  %v4041_v9 = vpop.permute.xlu1 %1421  ;;  %v1389_v41 = vpop.permute.xlu0 %1388  ;;  %v1767_v55 = vstv %s2719_s19 }
 0x313   : > { %v1390_v12 = vrot.slane %v1389_v41, 7  ;;  %v1768_v62 = vmul.f32 %v1767_v55, %v3762_v37 }
 0x314   : > { %1862 = vrot.lane.b32.xlu0 %v1860_v5, %s3063_s23  ;;  %2123 = vrot.lane.b32.xlu1 %v2121_v35, %s3063_s23  ;;  %s2745_s23 = sld [smem:[#allocation13 + $0x104]] }
 0x315   : > { %v1391_v54 = vsel %vm622_vm13, %v1390_v12, %v1389_v41 }
 0x316   : > { %v4048_v3 = vadd.f32 %v1391_v54, %v3949_v49  ;;  %v1515_v36 = vpop.permute.xlu1 %1514  ;;  %v1473_v50 = vpop.permute.xlu0 %1472 }
 0x317   : > { %v1516_v40 = vrot.slane %v1515_v36, 1  ;;  %v1474_v29 = vrot.slane %v1473_v50, 7 }
 0x319   : > { %v1517_v48 = vsel %vm587_vm9, %v1515_v36, %v1516_v40  ;;  %v1475_v19 = vsel %vm598_vm10, %v1474_v29, %v1473_v50 }
 0x31a   : > { %v4053_v31 = vadd.f32 %v1517_v48, %v1509_v57  ;;  %v4056_v26 = vadd.f32 %v1475_v19, %v3973_v43  ;;  %v1681_v8 = vpop.permute.xlu1 %1680  ;;  %v1648_v28 = vpop.permute.xlu0 %1647  ;;  %v2028_v10 = vstv %s2745_s23  ;;  %v1423_v57 = vrot.slane %v4041_v9, 7 }
 0x31b   : > { %v1649_v30 = vrot.slane %v1648_v28, 7  ;;  %v2029_v21 = vmul.f32 %v2028_v10, %v3773_v18 }
 0x31d   : > { %v1650_v49 = vsel %vm622_vm13, %v1649_v30, %v1648_v28  ;;  %v1424_v30 = vsel %vm598_vm10, %v1423_v57, %v4041_v9 }
 0x31e   : > { %v4060_v22 = vadd.f32 %v1650_v49, %v3971_v56  ;;  %v1774_v16 = vpop.permute.xlu1 %1773  ;;  %v1732_v14 = vpop.permute.xlu0 %1731  ;;  %v1682_v49 = vrot.slane %v1681_v8, 7 }
 0x31f   : > { %v1775_v34 = vrot.slane %v1774_v16, 1  ;;  %v1733_v61 = vrot.slane %v1732_v14, 7 }
 0x321   : > { %v1776_v38 = vsel %vm587_vm9, %v1774_v16, %v1775_v34  ;;  %v1734_v43 = vsel %vm598_vm10, %v1733_v61, %v1732_v14  ;;  %v1426_v14 = vadd.f32 %v1424_v30, %v3947_v45 }
 0x322   : > { %v4065_v51 = vadd.f32 %v1776_v38, %v1768_v62  ;;  %v4068_v20 = vadd.f32 %v1734_v43, %v3994_v27  ;;  %v1942_v46 = vpop.permute.xlu1 %1941  ;;  %v1909_v59 = vpop.permute.xlu0 %1908  ;;  %v1683_v62 = vsel %vm598_vm10, %v1682_v49, %v1681_v8 }
 0x323   : > { %v1685_v9 = vadd.f32 %v1683_v62, %v3996_v25  ;;  %v1943_v45 = vrot.slane %v1942_v46, 7  ;;  %v1910_v8 = vrot.slane %v1909_v59, 7 }
 0x325   : > { %v1944_v25 = vsel %vm598_vm10, %v1943_v45, %v1942_v46  ;;  %v1394_v45 = vmul.f32 %v4048_v3, %v3512_v13 }
 0x326   : > { %v2035_v56 = vpop.permute.xlu1 %2034  ;;  %v4070_v4 = vpop.permute.xlu0 %1992 }
 0x327   : > { %v2036_v6 = vrot.slane %v2035_v56, 1 }
 0x329   : > { %v2037_v37 = vsel %vm587_vm9, %v2035_v56, %v2036_v6 }
 0x32a   : > { %v4074_v24 = vadd.f32 %v2037_v37, %v2029_v21  ;;  %v2203_v63 = vpop.permute.xlu1 %2202  ;;  %v4076_v15 = vpop.permute.xlu0 %2169 }
 0x32b   : > { %v2171_v62 = vrot.slane %v4076_v15, 7 }
 0x32e   : > { %v4078_v41 = vpop.permute.xlu1 %2295  ;;  %v4080_v27 = vpop.permute.xlu0 %2253 }
 0x332   : > { %v4082_v5 = vpop.permute.xlu1 %1482  ;;  %v1433_v35 = vpop.permute.xlu0 %1432 }
 0x333   : > { %v1434_v48 = vrot.slane %v1433_v35, 7 }
 0x335   : > { %v1435_v55 = vsel %vm611_vm12, %v1434_v48, %v1433_v35 }
 0x336   : > { %v1692_v12 = vpop.permute.xlu1 %1691  ;;  %v4084_v54 = vpop.permute.xlu0 %1525  ;;  %v1437_v43 = vadd.f32 %v1435_v55, %v1426_v14  ;;  %v2289_v14 = vstv %s4106_s24 }
 0x337   : > { %v1693_v16 = vrot.slane %v1692_v12, 7 }
 0x339   : > { %v1694_v10 = vsel %vm611_vm12, %v1693_v16, %v1692_v12  ;;  %v2204_v16 = vrot.slane %v2203_v63, 7 }
 0x33a   : > { %v4086_v44 = vpop.permute.xlu1 %1784  ;;  %v4088_v18 = vpop.permute.xlu0 %1741  ;;  %v1696_v57 = vadd.f32 %v1694_v10, %v1685_v9  ;;  %v1946_v10 = vadd.f32 %v1944_v25, %v4008_v52  ;;  %v1484_v52 = vrot.slane %v4082_v5, 7  ;;  %v1527_v25 = vrot.slane %v4084_v54, 7 }
 0x33e   : > { %v4090_v36 = vpop.permute.xlu1 %2002  ;;  %v1953_v50 = vpop.permute.xlu0 %1952 }
 0x33f   : > { %v1954_v48 = vrot.slane %v1953_v50, 7 }
 0x342   : > { %v2214_v40 = vpop.permute.xlu1 %2213  ;;  %v4092_v29 = vpop.permute.xlu0 %2045 }
 0x346   : > { %v4095_v19 = vpop.permute.xlu1 %2306  ;;  %v4097_v28 = vpop.permute.xlu0 %2263 }
 0x34a   : > { %v4103_v34 = vpop.permute.xlu1 %1492  ;;  %v1443_v61 = vpop.permute.xlu0 %1442 }
 0x34b   : > { %v1444_v38 = vrot.slane %v1443_v61, 7 }
 0x34d   : > { %v1445_v56 = vsel %vm622_vm13, %v1444_v38, %v1443_v61  ;;  %v1911_v61 = vsel %vm622_vm13, %v1910_v8, %v1909_v59  ;;  %v1955_v38 = vsel %vm611_vm12, %v1954_v48, %v1953_v50  ;;  %v4132_v59 = vmul.f32 %v2289_v14, %v3784_v58 }
 0x34e   : > { %v1447_v6 = vadd.f32 %v1445_v56, %v1437_v43  ;;  %v1702_v21 = vpop.permute.xlu1 %1701  ;;  %v4111_v37 = vpop.permute.xlu0 %1535  ;;  %v2215_v43 = vrot.slane %v2214_v40, 7  ;;  %v2172_v50 = vsel %vm622_vm13, %v2171_v62, %v4076_v15  ;;  %v1485_v62 = vsel %vm611_vm12, %v1484_v52, %v4082_v5 }
 0x34f   : > { %v1703_v35 = vrot.slane %v1702_v21, 7  ;;  %v1528_v5 = vsel %vm598_vm10, %v1527_v25, %v4084_v54  ;;  %v1487_v52 = vadd.f32 %v1485_v62, %v4056_v26 }
 0x350   : > { %1449 = vrot.lane.b32.xlu0 %v1447_v6, %s3067_s29  ;;  %v1994_v6 = vrot.slane %v4070_v4, 7  ;;  %v2216_v8 = vsel %vm611_vm12, %v2215_v43, %v2214_v40  ;;  %v1494_v40 = vrot.slane %v4103_v34, 7  ;;  %v1530_v26 = vadd.f32 %v1528_v5, %v4053_v31 }
 0x351   : > { %v1704_v30 = vsel %vm622_vm13, %v1703_v35, %v1702_v21  ;;  %v2205_v21 = vsel %vm598_vm10, %v2204_v16, %v2203_v63  ;;  %v1913_v35 = vadd.f32 %v1911_v61, %v4011_v53  ;;  %v1653_v63 = vmul.f32 %v4060_v22, %v3512_v13 }
 0x352   : > { %v1706_v49 = vadd.f32 %v1704_v30, %v1696_v57  ;;  %v4115_v12 = vpop.permute.xlu1 %1794  ;;  %v4117_v55 = vpop.permute.xlu0 %1751  ;;  %v1957_v57 = vadd.f32 %v1955_v38, %v1946_v10  ;;  %v2207_v3 = vadd.f32 %v2205_v21, %v4039_v2  ;;  %v2255_v53 = vrot.slane %v4080_v27, 7 }
 0x353   : > { %v1995_v15 = vsel %vm598_vm10, %v1994_v6, %v4070_v4  ;;  %v1914_v14 = vmul.f32 %v1913_v35, %v3512_v13  ;;  %v2174_v22 = vadd.f32 %v2172_v50, %v4025_v1  ;;  %v2297_v2 = vrot.slane %v4078_v41, 1 }
 0x354   : > { %1708 = vrot.lane.b32.xlu1 %v1706_v49, %s3067_s29  ;;  %v2218_v61 = vadd.f32 %v2216_v8, %v2207_v3  ;;  %v1743_v38 = vrot.slane %v4088_v18, 7  ;;  %v2004_v4 = vrot.slane %v4090_v36, 7  ;;  %v1997_v10 = vadd.f32 %v1995_v15, %v4027_v33 }
 0x355   : > { %v1786_v1 = vrot.slane %v4086_v44, 7  ;;  %v1495_v35 = vsel %vm622_vm13, %v1494_v40, %v4103_v34  ;;  %v2175_v33 = vmul.f32 %v2174_v22, %v3512_v13  ;;  %v2047_v8 = vrot.slane %v4092_v29, 7 }
 0x356   : > { %v2013_v56 = vpop.permute.xlu1 %2012  ;;  %v1963_v9 = vpop.permute.xlu0 %1962  ;;  %v1744_v54 = vsel %vm611_vm12, %v1743_v38, %v4088_v18  ;;  %v2005_v34 = vsel %vm611_vm12, %v2004_v4, %v4090_v36  ;;  %v1537_v13 = vrot.slane %v4111_v37, 7  ;;  %v2308_v31 = vrot.slane %v4095_v19, 7 }
 0x357   : > { %v1964_v46 = vrot.slane %v1963_v9, 7  ;;  %v2014_v50 = vrot.slane %v2013_v56, 7  ;;  %v1787_v3 = vsel %vm598_vm10, %v1786_v1, %v4086_v44  ;;  %v1746_v25 = vadd.f32 %v1744_v54, %v4068_v20 }
 0x358   : > { %v2007_v40 = vadd.f32 %v2005_v34, %v1997_v10 }
 0x359   : > { %v1965_v48 = vsel %vm622_vm13, %v1964_v46, %v1963_v9  ;;  %v2256_v9 = vsel %vm598_vm10, %v2255_v53, %v4080_v27  ;;  %v2298_v27 = vsel %vm587_vm9, %v4078_v41, %v2297_v2  ;;  %v1497_v53 = vadd.f32 %v1495_v35, %v1487_v52 }
 0x35a   : > { %v1967_v30 = vadd.f32 %v1965_v48, %v1957_v57  ;;  %v2224_v58 = vpop.permute.xlu1 %2223  ;;  %v4143_v49 = vpop.permute.xlu0 %2055  ;;  %v1753_v57 = vrot.slane %v4117_v55, 7  ;;  %v2265_v48 = vrot.slane %v4097_v28, 7  ;;  %v2258_v41 = vadd.f32 %v2256_v9, %v4037_v32 }
 0x35b   : > { %v2225_v16 = vrot.slane %v2224_v58, 7  ;;  %v2048_v32 = vsel %vm598_vm10, %v2047_v8, %v4092_v29  ;;  %v2057_v20 = vrot.slane %v4143_v49, 7  ;;  %v1498_v29 = vmul.f32 %v1497_v53, %v3541_v11 }
 0x35c   : > { %1969 = vrot.lane.b32.xlu0 %v1967_v30, %s3067_s29  ;;  %v1754_v18 = vsel %vm622_vm13, %v1753_v57, %v4117_v55  ;;  %v2266_v44 = vsel %vm611_vm12, %v2265_v48, %v4097_v28  ;;  %v1538_v55 = vsel %vm611_vm12, %v1537_v13, %v4111_v37  ;;  %v2050_v38 = vadd.f32 %v2048_v32, %v4074_v24 }
 0x35d   : > { %v2226_v43 = vsel %vm622_vm13, %v2225_v16, %v2224_v58  ;;  %v2015_v58 = vsel %vm622_vm13, %v2014_v50, %v2013_v56  ;;  %v1796_v56 = vrot.slane %v4115_v12, 7  ;;  %v1789_v16 = vadd.f32 %v1787_v3, %v4065_v51  ;;  %v2899_v3 = vld [vmem:[%s3272_s10 + $0x7] ss:$8 sm:$0x3] }
 0x35e   : > { %v2228_v6 = vadd.f32 %v2226_v43, %v2218_v61  ;;  %v4162_v21 = vpop.permute.xlu1 %2316  ;;  %v2274_v46 = vpop.permute.xlu0 %2273  ;;  %v1756_v22 = vadd.f32 %v1754_v18, %v1746_v25  ;;  %v2017_v2 = vadd.f32 %v2015_v58, %v2007_v40  ;;  %v2268_v37 = vadd.f32 %v2266_v44, %v2258_v41 }
 0x35f   : > { %v2275_v36 = vrot.slane %v2274_v46, 7  ;;  %v1540_v4 = vadd.f32 %v1538_v55, %v1530_v26  ;;  %v2309_v51 = vsel %vm598_vm10, %v2308_v31, %v4095_v19  ;;  %v1797_v10 = vsel %vm611_vm12, %v1796_v56, %v4115_v12  ;;  %v2898_v26 = vld [vmem:[%s3272_s10 + $0x6] ss:$8 sm:$0x3]  ;;  %s1304_s10 = sld [smem:[#allocation13]] }
 0x360   : > { %2230 = vrot.lane.b32.xlu1 %v2228_v6, %s3067_s29  ;;  %1396 = vrot.lane.b32.xlu0 %v1394_v45, %s4393_s12  ;;  %s4394_s29 = smov 125   ;;  %v2058_v9 = vsel %vm611_vm12, %v2057_v20, %v4143_v49  ;;  %v2318_v1 = vrot.slane %v4162_v21, 7  ;;  %v1757_v24 = vmul.f32 %v1756_v22, %v3541_v11  ;;  %v2018_v6 = vmul.f32 %v2017_v2, %v3541_v11 }
 0x361   : > { %v2300_v35 = vadd.f32 %v2298_v27, %v4132_v59  ;;  %v2060_v12 = vadd.f32 %v2058_v9, %v2050_v38  ;;  %v1313_v20 = vrot.slane %v3844_v60, 1 }
 0x362   : > { %v1805_v30 = vpop.permute.xlu1 %1804  ;;  %v1546_v45 = vpop.permute.xlu0 %1545  ;;  %v2319_v52 = vsel %vm611_vm12, %v2318_v1, %v4162_v21 }
 0x363   : > { %v1547_v15 = vrot.slane %v1546_v45, 7  ;;  %v2311_v49 = vadd.f32 %v2309_v51, %v2300_v35  ;;  %v1314_v2 = vsel %vm587_vm9, %v3844_v60, %v1313_v20  ;;  %v2085_v51 = vstv %s2751_s26 }
 0x364   : > { %1655 = vrot.lane.b32.xlu1 %v1653_v63, %s4393_s12  ;;  %1916 = vrot.lane.b32.xlu0 %v1914_v14, %s4393_s12  ;;  %v2276_v63 = vsel %vm622_vm13, %v2275_v36, %v2274_v46  ;;  %v1806_v14 = vrot.slane %v1805_v30, 7 }
 0x365   : > { %v1548_v62 = vsel %vm622_vm13, %v1547_v15, %v1546_v45  ;;  %v2278_v46 = vadd.f32 %v2276_v63, %v2268_v37  ;;  %v2321_v48 = vadd.f32 %v2319_v52, %v2311_v49  ;;  %v1305_v22 = vstv %s1304_s10 }
 0x366   : > { %v2066_v61 = vpop.permute.xlu0 %2065  ;;  %v2327_v43 = vpop.permute.xlu1 %2326  ;;  %v1550_v5 = vadd.f32 %v1548_v62, %v1540_v4  ;;  %v1807_v57 = vsel %vm622_vm13, %v1806_v14, %v1805_v30  ;;  %v1323_v63 = vrot.slane %v3842_v17, 1  ;;  %v2900_v14 = vld [vmem:[#allocation2] ss:$4 sm:$0x7] }
 0x367   : > { %v2067_v28 = vrot.slane %v2066_v61, 7  ;;  %v2328_v50 = vrot.slane %v2327_v43, 7  ;;  %v2279_v8 = vmul.f32 %v2278_v46, %v3541_v11  ;;  %v1306_v62 = vmul.f32 %v2900_v14, %v1305_v22 }
 0x368   : > { %2177 = vrot.lane.b32.xlu1 %v2175_v33, %s4393_s12  ;;  %1500 = vrot.lane.b32.xlu0 %v1498_v29, %s4394_s29  ;;  %v1799_v33 = vadd.f32 %v1797_v10, %v1789_v16  ;;  %v1551_v59 = vmul.f32 %v1550_v5, %v3569_v0  ;;  %v1324_v5 = vsel %vm598_vm10, %v3842_v17, %v1323_v63 }
 0x369   : > { %v2068_v19 = vsel %vm622_vm13, %v2067_v28, %v2066_v61  ;;  %v2329_v34 = vsel %vm622_vm13, %v2328_v50, %v2327_v43  ;;  %v1564_v43 = vstv %s2699_s16  ;;  %v1316_v9 = vadd.f32 %v1314_v2, %v1306_v62 }
 0x36a   : > { %v1809_v54 = vadd.f32 %v1807_v57, %v1799_v33  ;;  %v2070_v27 = vadd.f32 %v2068_v19, %v2060_v12  ;;  %v2331_v41 = vadd.f32 %v2329_v34, %v2321_v48  ;;  %v4239_v53 = vpop.permute.xlu0 %2347  ;;  %v4241_v30 = vpop.permute.xlu1 %2367  ;;  %v1565_v35 = vmul.f32 %v1564_v43, %v3906_v47 }
 0x36b   : > { %v2086_v57 = vmul.f32 %v2085_v51, %v3935_v42  ;;  %v1326_v17 = vadd.f32 %v1324_v5, %v1316_v9 }
 0x36c   : > { %1759 = vrot.lane.b32.xlu1 %v1757_v24, %s4394_s29  ;;  %2020 = vrot.lane.b32.xlu0 %v2018_v6, %s4394_s29  ;;  %v1810_v13 = vmul.f32 %v1809_v54, %v3569_v0  ;;  %v2071_v21 = vmul.f32 %v2070_v27, %v3569_v0  ;;  %v2332_v11 = vmul.f32 %v2331_v41, %v3569_v0 }
 0x36e   : > { %v1571_v45 = vpop.permute.xlu0 %1570  ;;  %v1831_v18 = vpop.permute.xlu1 %1830 }
 0x36f   : > { %v1572_v61 = vrot.slane %v1571_v45, 1  ;;  %v1832_v4 = vrot.slane %v1831_v18, 1 }
 0x370   : > { %2281 = vrot.lane.b32.xlu1 %v2279_v8, %s4394_s29  ;;  %1553 = vrot.lane.b32.xlu0 %v1551_v59, %s4395_s28 }
 0x371   : > { %v1573_v60 = vsel %vm587_vm9, %v1571_v45, %v1572_v61  ;;  %v1833_v12 = vsel %vm587_vm9, %v1831_v18, %v1832_v4 }
 0x372   : > { %v2092_v58 = vpop.permute.xlu0 %2091  ;;  %v1581_v36 = vpop.permute.xlu1 %1580  ;;  %v1575_v8 = vadd.f32 %v1573_v60, %v1565_v35 }
 0x373   : > { %v1582_v1 = vrot.slane %v1581_v36, 1  ;;  %v2093_v50 = vrot.slane %v2092_v58, 1 }
 0x374   : > { %1812 = vrot.lane.b32.xlu1 %v1810_v13, %s4395_s28  ;;  %2073 = vrot.lane.b32.xlu0 %v2071_v21, %s4395_s28 }
 0x375   : > { %v1583_v54 = vsel %vm598_vm10, %v1581_v36, %v1582_v1  ;;  %v2094_v13 = vsel %vm587_vm9, %v2092_v58, %v2093_v50  ;;  %v2369_v1 = vrot.slane %v4241_v30, 7 }
 0x376   : > { %v1841_v15 = vpop.permute.xlu0 %1840  ;;  %v4243_v25 = vpop.permute.xlu1 %2101  ;;  %v2096_v22 = vadd.f32 %v2094_v13, %v2086_v57  ;;  %v1560_v13 = vstv %s4285_s17 }
 0x377   : > { %v1842_v6 = vrot.slane %v1841_v15, 1  ;;  %v2103_v59 = vrot.slane %v4243_v25, 1 }
 0x378   : > { %2334 = vrot.lane.b32.xlu1 %v2332_v11, %s4395_s28  ;;  %2387 = vrot.lane.b32.xlu0 %v2898_v26, %s3066_s15 }
 0x379   : > { %v1843_v47 = vsel %vm598_vm10, %v1841_v15, %v1842_v6  ;;  %v2104_v15 = vsel %vm598_vm10, %v4243_v25, %v2103_v59 }
 0x37a   : > { %v1333_v0 = vpop.permute.xlu0 %1332  ;;  %v1592_v40 = vpop.permute.xlu1 %1591  ;;  %v2106_v62 = vadd.f32 %v2104_v15, %v2096_v22  ;;  %v1819_v22 = vstv %s4294_s18 }
 0x37b   : > { %v1334_v10 = vrot.slane %v1333_v0, 7  ;;  %v1593_v49 = vrot.slane %v1592_v40, 7 }
 0x37c   : > { %2407 = vrot.lane.b32.xlu1 %v2899_v3, %s3066_s15  ;;  %s2725_s15 = sld [smem:[#allocation13 + $0x100]]  ;;  %v1585_v3 = vadd.f32 %v1583_v54, %v1575_v8  ;;  %v2349_v54 = vrot.slane %v4239_v53, 7 }
 0x37d   : > { %v1594_v45 = vsel %vm611_vm12, %v1593_v49, %v1592_v40 }
 0x37e   : > { %v1853_v32 = vpop.permute.xlu0 %1852  ;;  %v4245_v31 = vpop.permute.xlu1 %2113  ;;  %v1596_v61 = vadd.f32 %v1594_v45, %v1585_v3 }
 0x37f   : > { %v1854_v52 = vrot.slane %v1853_v32, 7  ;;  %v2115_v21 = vrot.slane %v4245_v31, 7 }
 0x381   : > { %v1855_v18 = vsel %vm611_vm12, %v1854_v52, %v1853_v32  ;;  %v2116_v63 = vsel %vm611_vm12, %v2115_v21, %v4245_v31 }
 0x382   : > { %v1343_v44 = vpop.permute.xlu0 %1342  ;;  %v1602_v55 = vpop.permute.xlu1 %1601  ;;  %v1824_v28 = vstv %s2725_s15 }
 0x383   : > { %v1825_v24 = vmul.f32 %v1824_v28, %v3911_v23  ;;  %v1344_v46 = vrot.slane %v1343_v44, 7  ;;  %v1335_v23 = vsel %vm611_vm12, %v1334_v10, %v1333_v0  ;;  %v1603_v27 = vrot.slane %v1602_v55, 7 }
 0x384   : > { %v1337_v41 = vadd.f32 %v1335_v23, %v1326_v17  ;;  %v2118_v10 = vadd.f32 %v2116_v63, %v2106_v62 }
 0x385   : > { %v1345_v42 = vsel %vm622_vm13, %v1344_v46, %v1343_v44  ;;  %v1835_v48 = vadd.f32 %v1833_v12, %v1825_v24  ;;  %v1604_v58 = vsel %vm622_vm13, %v1603_v27, %v1602_v55 }
 0x386   : > { %v1863_v56 = vpop.permute.xlu0 %1862  ;;  %v4248_v16 = vpop.permute.xlu1 %2123  ;;  %v1347_v44 = vadd.f32 %v1345_v42, %v1337_v41  ;;  %v1606_v43 = vadd.f32 %v1604_v58, %v1596_v61 }
 0x387   : > { %v1864_v34 = vrot.slane %v1863_v56, 7  ;;  %v1845_v0 = vadd.f32 %v1843_v47, %v1835_v48  ;;  %v2125_v20 = vrot.slane %v4248_v16, 7 }
 0x389   : > { %v1865_v2 = vsel %vm622_vm13, %v1864_v34, %v1863_v56  ;;  %v1857_v40 = vadd.f32 %v1855_v18, %v1845_v0  ;;  %v2126_v55 = vsel %vm622_vm13, %v2125_v20, %v4248_v16  ;;  %v1348_v56 = vmul.f32 %v1347_v44, %v3594_v39 }
 0x38a   : > { %v2128_v46 = vadd.f32 %v2126_v55, %v2118_v10 }
 0x38b   : > { %v1867_v51 = vadd.f32 %v1865_v2, %v1857_v40 }
 0x38c   : > { %v2129_v34 = vmul.f32 %v2128_v46, %v3594_v39 }
 0x38d   : > { %v1868_v12 = vmul.f32 %v1867_v51, %v3594_v39 }
 0x3c2   : > { %v4250_v29 = vpop.permute.xlu0 %1449 }
 0x3c3   : > { %v1451_v31 = vrot.slane %v4250_v29, 1 }
 0x3c5   : > { %v1452_v49 = vsel %vm768_vm2, %v4250_v29, %v1451_v31 }
 0x3c6   : > { %v4255_v38 = vpop.permute.xlu1 %1708 }
 0x3c7   : > { %v1710_v16 = vrot.slane %v4255_v38, 1 }
 0x3c9   : > { %v1711_v29 = vsel %vm768_vm2, %v4255_v38, %v1710_v16 }
 0x3ce   : > { %v4257_v37 = vpop.permute.xlu0 %1969 }
 0x3cf   : > { %v1971_v50 = vrot.slane %v4257_v37, 1 }
 0x3d1   : > { %v1972_v21 = vsel %vm768_vm2, %v4257_v37, %v1971_v50  ;;  %v2350_v37 = vsel %vm646_vm0, %v2349_v54, %v4239_v53 }
 0x3d2   : > { %v4265_v19 = vpop.permute.xlu1 %2230  ;;  %v1397_v33 = vpop.permute.xlu0 %1396 }
 0x3d3   : > { %v1398_v36 = vrot.slane %v1397_v33, 1 }
 0x3d5   : > { %v1399_v28 = vsel %vm714_vm1, %v1397_v33, %v1398_v36  ;;  %v1607_v33 = vmul.f32 %v1606_v43, %v3594_v39 }
 0x3d6   : > { %v1656_v11 = vpop.permute.xlu1 %1655  ;;  %v1917_v26 = vpop.permute.xlu0 %1916  ;;  %v1401_v24 = vadd.f32 %v1399_v28, %v1348_v56 }
 0x3d7   : > { %v1657_v25 = vrot.slane %v1656_v11, 1  ;;  %v1918_v4 = vrot.slane %v1917_v26, 1 }
 0x3d8   : > { %v1454_v47 = vadd.f32 %v1452_v49, %v1401_v24 }
 0x3d9   : > { %v1658_v5 = vsel %vm714_vm1, %v1656_v11, %v1657_v25  ;;  %v1919_v35 = vsel %vm714_vm1, %v1917_v26, %v1918_v4  ;;  %v2232_v11 = vrot.slane %v4265_v19, 1 }
 0x3da   : > { %v2178_v14 = vpop.permute.xlu1 %2177  ;;  %v1501_v32 = vpop.permute.xlu0 %1500  ;;  %v1660_v59 = vadd.f32 %v1658_v5, %v1607_v33  ;;  %v1921_v17 = vadd.f32 %v1919_v35, %v1868_v12  ;;  %v2341_v5 = vstv %s4317_s22 }
 0x3db   : > { %v1502_v9 = vrot.slane %v1501_v32, 1  ;;  %v2179_v57 = vrot.slane %v2178_v14, 1 }
 0x3dc   : > { %v1713_v15 = vadd.f32 %v1711_v29, %v1660_v59  ;;  %v1974_v38 = vadd.f32 %v1972_v21, %v1921_v17 }
 0x3dd   : > { %v1503_v23 = vsel %vm827_vm3, %v1501_v32, %v1502_v9  ;;  %v2180_v48 = vsel %vm714_vm1, %v2178_v14, %v2179_v57  ;;  %v2080_v14 = vstv %s4300_s11  ;;  %v2233_v32 = vsel %vm768_vm2, %v4265_v19, %v2232_v11 }
 0x3de   : > { %v1760_v60 = vpop.permute.xlu1 %1759  ;;  %v2021_v6 = vpop.permute.xlu0 %2020  ;;  %v1505_v26 = vadd.f32 %v1503_v23, %v1454_v47  ;;  %v2182_v36 = vadd.f32 %v2180_v48, %v2129_v34  ;;  %v2370_v19 = vsel %vm646_vm0, %v2369_v1, %v4241_v30 }
 0x3df   : > { %v1761_v52 = vrot.slane %v1760_v60, 1  ;;  %v2022_v8 = vrot.slane %v2021_v6, 1 }
 0x3e0   : > { %v2235_v4 = vadd.f32 %v2233_v32, %v2182_v36 }
 0x3e1   : > { %v1762_v3 = vsel %vm827_vm3, %v1760_v60, %v1761_v52  ;;  %v2023_v45 = vsel %vm827_vm3, %v2021_v6, %v2022_v8 }
 0x3e2   : > { %v2282_v27 = vpop.permute.xlu1 %2281  ;;  %v1554_v42 = vpop.permute.xlu0 %1553  ;;  %v1764_v61 = vadd.f32 %v1762_v3, %v1713_v15  ;;  %v2025_v63 = vadd.f32 %v2023_v45, %v1974_v38 }
 0x3e3   : > { %v1555_v41 = vrot.slane %v1554_v42, 1  ;;  %v2283_v18 = vrot.slane %v2282_v27, 1 }
 0x3e5   : > { %v1556_v39 = vsel %vm902_vm4, %v1554_v42, %v1555_v41  ;;  %v2284_v62 = vsel %vm827_vm3, %v2282_v27, %v2283_v18 }
 0x3e6   : > { %v1558_v0 = vadd.f32 %v1556_v39, %v1505_v26  ;;  %v1813_v44 = vpop.permute.xlu1 %1812  ;;  %v2074_v20 = vpop.permute.xlu0 %2073  ;;  %v2286_v9 = vadd.f32 %v2284_v62, %v2235_v4 }
 0x3e7   : > { %v1814_v58 = vrot.slane %v1813_v44, 1  ;;  %v2075_v2 = vrot.slane %v2074_v20, 1 }
 0x3e8   : > { %v1561_v40 = vadd.f32 %v1560_v13, %v1558_v0 }
 0x3e9   : > { %v1815_v28 = vsel %vm902_vm4, %v1813_v44, %v1814_v58  ;;  %v2076_v25 = vsel %vm902_vm4, %v2074_v20, %v2075_v2 }
 0x3ea   : > { %v2352_v43 = vadd.f32 %v2350_v37, %v1561_v40  ;;  %v1817_v53 = vadd.f32 %v1815_v28, %v1764_v61  ;;  %v2078_v55 = vadd.f32 %v2076_v25, %v2025_v63  ;;  %v2335_v51 = vpop.permute.xlu1 %2334  ;;  %v2388_v56 = vpop.permute.xlu0 %2387 }
 0x3eb   : > { %v2336_v10 = vrot.slane %v2335_v51, 1  ;;  %v2389_v31 = vrot.slane %v2388_v56, 7 }
 0x3ec   : > { %v1820_v24 = vadd.f32 %v1819_v22, %v1817_v53  ;;  %v2081_v60 = vadd.f32 %v2080_v14, %v2078_v55  ;;  %2354 = vrot.lane.b32.xlu0 %v2352_v43, %s3071_s25 }
 0x3ed   : > { %v2337_v6 = vsel %vm902_vm4, %v2335_v51, %v2336_v10  ;;  %v2390_v46 = vsel %vm646_vm0, %v2389_v31, %v2388_v56 }
 0x3ee   : > { %v2372_v35 = vadd.f32 %v2370_v19, %v1820_v24  ;;  %v2339_v57 = vadd.f32 %v2337_v6, %v2286_v9  ;;  %v2392_v16 = vadd.f32 %v2390_v46, %v2081_v60  ;;  %v2408_v50 = vpop.permute.xlu1 %2407 }
 0x3ef   : > { %v2409_v33 = vrot.slane %v2408_v50, 7 }
 0x3f0   : > { %v2342_v12 = vadd.f32 %v2341_v5, %v2339_v57  ;;  %2374 = vrot.lane.b32.xlu1 %v2372_v35, %s3071_s25  ;;  %2394 = vrot.lane.b32.xlu0 %v2392_v16, %s3071_s25 }
 0x3f1   : > { %v2410_v30 = vsel %vm646_vm0, %v2409_v33, %v2408_v50 }
 0x3f2   : > { %v2412_v1 = vadd.f32 %v2410_v30, %v2342_v12 }
 0x3f4   : > { %2414 = vrot.lane.b32.xlu1 %v2412_v1, %s3071_s25 }
 0x45e   : > { %v2355_v49 = vpop.permute.xlu0 %2354 }
 0x45f   : > { %v2356_v23 = vrot.slane %v2355_v49, 1 }
 0x461   : > { %v2357_v52 = vsel %vm1190_vm8, %v2355_v49, %v2356_v23 }
 0x462   : > { %2777 = vst.msk [vmem:[%s3656_s27 + $0x4] ss:$8 sm:$0x3] %vm3322_vm6, %v2357_v52  ;;  %v2375_v8 = vpop.permute.xlu1 %2374  ;;  %v2395_v54 = vpop.permute.xlu0 %2394 }
 0x463   : > { %v2376_v59 = vrot.slane %v2375_v8, 1  ;;  %v2396_v17 = vrot.slane %v2395_v54, 1 }
 0x465   : > { %v2377_v47 = vsel %vm1190_vm8, %v2375_v8, %v2376_v59  ;;  %v2397_v27 = vsel %vm1190_vm8, %v2395_v54, %v2396_v17 }
 0x466   : > { %2779 = vst.msk [vmem:[%s3656_s27 + $0x5] ss:$8 sm:$0x3] %vm3322_vm6, %v2377_v47  ;;  %2781 = vst.msk [vmem:[%s3656_s27 + $0x6] ss:$8 sm:$0x3] %vm3322_vm6, %v2397_v27  ;;  %v2415_v42 = vpop.permute.xlu1 %2414 }
 0x467   : > { %v2416_v34 = vrot.slane %v2415_v42, 1 }
 0x469   : > { %v2417_v48 = vsel %vm1190_vm8, %v2415_v42, %v2416_v34 }
 0x46a   : > { %2783 = vst.msk [vmem:[%s3656_s27 + $0x7] ss:$8 sm:$0x3] %vm3322_vm6, %v2417_v48 }
 0x46b PF: > { %s24_s30 = sadd.s32 1, %s3047_s30  }
 0x46c   : > { %p21_p3 = scmp.ge.s32.totalorder %s24_s30, 4  }
 0x46e   :  { %23 = sbr.rel (!%p21_p3) target bundleno = 5 (0x5), region = 144 }
 0x475   :  { %2443 = vsyncpa [#allocation4], 1 }
 0x476   :  { %2445 = vsyncpa [#allocation4 + $0x1], 1 }
 0x477   :  { %2446 = vsyncpa [#allocation6], 1 }
 0x478   :  { %2447 = vsyncpa [#allocation9], 1 }
 0x479   :  { %2448 = vsyncpa [#allocation12], 1 }
 0x47a   :  { %2449 = vsyncpa [#allocation15], 1 }

</bundles_post_ra>
